<compile_context>
chip_gen: v6e
topology: v6e:2x2x1
jax: 0.10.0
libtpu: 0.0.40
codegen_flags: <defaults>
</compile_context>

<pallas_src>
import functools

import jax
import jax.numpy as jnp
from jax.experimental import pallas as pl
from jax.experimental.pallas import tpu as pltpu

LANE = 128
VMEM = pltpu.MemorySpace.VMEM


def _pad2d(a, rows, cols):
    r, c = a.shape
    return jnp.pad(a, ((0, rows - r), (0, cols - c)))


# ------------------------------ Pallas kernels ------------------------------

def _conv_pool_kernel(x_ref, w_ref, b_ref, o_ref, *, n_taps):
    """x:(T, M, Kp) pool-tap-stacked im2col slabs, w:(Kp,128), b:(1,128) -> (M,128).

    o = relu(max_t(x[t] @ w) + b)  ==  maxpool2x2(relu(conv(x) + b)).
    """
    m = jnp.dot(x_ref[0], w_ref[...], preferred_element_type=jnp.float32)
    for t in range(1, n_taps):
        m = jnp.maximum(
            m, jnp.dot(x_ref[t], w_ref[...], preferred_element_type=jnp.float32))
    o_ref[...] = jnp.maximum(m + b_ref[...], 0.0)


def _conv_pool_fc_kernel(x_ref, w2_ref, b2_ref, wfc1_ref, bfc1_ref,
                         wfc2_ref, bfc2_ref, wfc3_ref, bfc3_ref, o_ref,
                         *, n_taps, n_pos, n_batch, c2):
    """conv2 + ReLU + pool2 + fc1 + fc2 + fc3, fully VMEM-resident.

    x: (T, n_pos*n_batch, Kp) pool-tap-stacked conv2 im2col slabs whose rows
    are ordered (spatial position, image).
    """
    m = jnp.dot(x_ref[0], w2_ref[...], preferred_element_type=jnp.float32)
    for t in range(1, n_taps):
        m = jnp.maximum(
            m, jnp.dot(x_ref[t], w2_ref[...], preferred_element_type=jnp.float32))
    h2 = jnp.maximum(m + b2_ref[...], 0.0)                      # (n_pos*n_batch, 128)

    # fc1: contract over (channel, spatial position); spatial position p owns
    # rows [p*n_batch : (p+1)*n_batch] of h2 (static slices, no reshape).
    acc = jnp.zeros((n_batch, LANE), dtype=jnp.float32)
    for p in range(n_pos):
        rows = h2[p * n_batch:(p + 1) * n_batch, :c2]           # (n_batch, c2)
        acc = acc + jnp.dot(rows, wfc1_ref[p],
                            preferred_element_type=jnp.float32)
    a1 = jnp.maximum(acc + bfc1_ref[...], 0.0)                  # (n_batch, 128)
    a2 = jnp.maximum(
        jnp.dot(a1, wfc2_ref[...], preferred_element_type=jnp.float32)
        + bfc2_ref[...], 0.0)                                   # (n_batch, 128)
    o_ref[...] = (jnp.dot(a2, wfc3_ref[...], preferred_element_type=jnp.float32)
                  + bfc3_ref[...])                              # (n_batch, 10)


# ------------------------------ kernel wrappers ------------------------------

def conv_pool_block(x_slab, w, b):
    n_taps, m_rows, _ = x_slab.shape
    return pl.pallas_call(
        functools.partial(_conv_pool_kernel, n_taps=n_taps),
        out_shape=jax.ShapeDtypeStruct((m_rows, LANE), jnp.float32),
        in_specs=[pl.BlockSpec(memory_space=VMEM)] * 3,
        out_specs=pl.BlockSpec(memory_space=VMEM),
    )(x_slab, w, b)


def conv_pool_fc_block(x_slab, pk, n_batch):
    n_taps, m_rows, _ = x_slab.shape
    n_pos = m_rows // n_batch
    return pl.pallas_call(
        functools.partial(_conv_pool_fc_kernel, n_taps=n_taps, n_pos=n_pos,
                          n_batch=n_batch, c2=16),
        out_shape=jax.ShapeDtypeStruct((n_batch, 10), jnp.float32),
        in_specs=[pl.BlockSpec(memory_space=VMEM)] * 9,
        out_specs=pl.BlockSpec(memory_space=VMEM),
    )(x_slab, pk["w2m"], pk["b2m"], pk["wfc1"], pk["bfc1"],
      pk["wfc2"], pk["bfc2"], pk["wfc3"], pk["bfc3"])


# --------------------------------- JAX glue ---------------------------------

def _pool_tap_slabs(x_nhwc, kh, kw):
    """im2col with the four 2x2-pool taps split onto a leading axis.

    Returns (4, N, OH//2, OW//2, C, kh*kw); per-patch flatten order (c, kh, kw)
    matches torch weight.reshape(Cout, Cin*kh*kw).
    """
    _, H, W, _ = x_nhwc.shape
    OH, OW = H - kh + 1, W - kw + 1
    patches = jnp.stack(
        [x_nhwc[:, i:i + OH, j:j + OW, :] for i in range(kh) for j in range(kw)],
        axis=-1)                                                # (N,OH,OW,C,kh*kw)
    taps = jnp.stack(
        [patches[:, dh::2, dw::2] for dh in (0, 1) for dw in (0, 1)],
        axis=0)                                                 # (4,N,OH/2,OW/2,C,kh*kw)
    return taps


@jax.jit
def net_forward(pk, x):
    """x: (N, 3, 32, 32) NCHW (PyTorch convention) -> (N, 10) logits."""
    N = x.shape[0]
    x_nhwc = jnp.transpose(x.astype(jnp.float32), (0, 2, 3, 1))       # (N,32,32,3)

    # conv1 + relu + pool  ->  (N*14*14, 128), rows ordered (n, hp, wp)
    t1 = _pool_tap_slabs(x_nhwc, 5, 5)                                # (4,N,14,14,3,25)
    x1 = t1.reshape(4, N * 14 * 14, 3 * 25)
    x1 = jnp.pad(x1, ((0, 0), (0, 0), (0, LANE - 3 * 25)))            # K: 75 -> 128
    h1 = conv_pool_block(x1, pk["w1m"], pk["b1m"])                    # (N*196, 128)
    h1 = h1[:, :6].reshape(N, 14, 14, 6)                              # NHWC

    # conv2 + relu + pool + fc1/fc2/fc3 in one kernel.
    t2 = _pool_tap_slabs(h1, 5, 5)                                    # (4,N,5,5,6,25)
    # Rows within each tap ordered (hp2, wp2, n) so fc1 can slice per-position
    # row pairs in-kernel without any reshape.
    x2 = jnp.transpose(t2, (0, 2, 3, 1, 4, 5)).reshape(4, 5 * 5 * N, 6 * 25)
    x2 = jnp.pad(x2, ((0, 0), (0, 0), (0, 2 * LANE - 6 * 25)))        # K: 150 -> 256
    return conv_pool_fc_block(x2, pk, N)


# ------------------------------ parameter init ------------------------------

def init_params(key):
    def uniform(key, shape, fan_in):
        bound = 1.0 / jnp.sqrt(jnp.float32(fan_in))
        return jax.random.uniform(key, shape, jnp.float32, -bound, bound)

    ks = jax.random.split(key, 10)
    return {
        "conv1_w": uniform(ks[0], (6, 3, 5, 5), 3 * 5 * 5),
        "conv1_b": uniform(ks[1], (6,), 3 * 5 * 5),
        "conv2_w": uniform(ks[2], (16, 6, 5, 5), 6 * 5 * 5),
        "conv2_b": uniform(ks[3], (16,), 6 * 5 * 5),
        "fc1_w": uniform(ks[4], (120, 400), 400),   # PyTorch Linear: (out, in)
        "fc1_b": uniform(ks[5], (120,), 400),
        "fc2_w": uniform(ks[6], (84, 120), 120),
        "fc2_b": uniform(ks[7], (84,), 120),
        "fc3_w": uniform(ks[8], (10, 84), 84),
        "fc3_b": uniform(ks[9], (10,), 84),
    }


def pack_params(p):
    """One-time repack of PyTorch-layout weights into padded, MXU-ready matrices."""
    w1m = _pad2d(p["conv1_w"].reshape(6, 75).T, LANE, LANE)           # (128,128)
    b1m = _pad2d(p["conv1_b"].reshape(1, 6), 1, LANE)
    w2m = _pad2d(p["conv2_w"].reshape(16, 150).T, 2 * LANE, LANE)     # (256,128)
    b2m = _pad2d(p["conv2_b"].reshape(1, 16), 1, LANE)
    # fc1 weight (120, 400) with input order (c, h, w): split per spatial
    # position p = h*5 + w into (16, 120) blocks -> (25, 16, 128).
    wfc1 = jnp.transpose(p["fc1_w"].reshape(120, 16, 25), (2, 1, 0))  # (25,16,120)
    wfc1 = jnp.pad(wfc1, ((0, 0), (0, 0), (0, LANE - 120)))
    bfc1 = _pad2d(p["fc1_b"].reshape(1, 120), 1, LANE)
    wfc2 = _pad2d(p["fc2_w"].T, LANE, LANE)                           # (128,128)
    bfc2 = _pad2d(p["fc2_b"].reshape(1, 84), 1, LANE)
    wfc3 = _pad2d(p["fc3_w"].T, LANE, 10)                             # (128,10)
    bfc3 = p["fc3_b"].reshape(1, 10)
    return {"w1m": w1m, "b1m": b1m, "w2m": w2m, "b2m": b2m,
            "wfc1": wfc1, "bfc1": bfc1, "wfc2": wfc2, "bfc2": bfc2,
            "wfc3": wfc3, "bfc3": bfc3}


if __name__ == "__main__":
    key = jax.random.PRNGKey(0)
    k_param, k_x = jax.random.split(key)
    params = init_params(k_param)
    packed = pack_params(params)          # done once, outside the forward jit
    # Module's forward requires 32x32 spatial input (16*5*5 flatten); batch=2.
    x = jax.random.normal(k_x, (2, 3, 32, 32), dtype=jnp.float32)
    out = net_forward(packed, x)
    out = jax.block_until_ready(out)
    assert out.shape == (2, 10)
    print("KERNEL_OK")
</pallas_src>

<mosaic_0001>
module attributes {stable_mosaic.version = 11 : i64} {
  func.func @_conv_pool_kernel(%arg0: memref<4x392x128xf32, #tpu.memory_space<vmem>>, %arg1: memref<128x128xf32, #tpu.memory_space<vmem>>, %arg2: memref<1x128xf32, #tpu.memory_space<vmem>>, %arg3: memref<392x128xf32, #tpu.memory_space<vmem>>) attributes {dimension_semantics = [], scalar_prefetch = 0 : i64, scratch_operands = 0 : i64, tpu.core_type = #tpu.core_type<tc>} {
    %c0 = arith.constant 0 : index
    %c0_0 = arith.constant 0 : index
    %c0_1 = arith.constant 0 : index
    %0 = vector.load %arg0[%c0, %c0_0, %c0_1] : memref<4x392x128xf32, #tpu.memory_space<vmem>>, vector<1x392x128xf32>
    %1 = vector.shape_cast %0 : vector<1x392x128xf32> to vector<392x128xf32>
    %c0_2 = arith.constant 0 : index
    %c0_3 = arith.constant 0 : index
    %2 = vector.load %arg1[%c0_2, %c0_3] : memref<128x128xf32, #tpu.memory_space<vmem>>, vector<128x128xf32>
    %cst = arith.constant dense<0.000000e+00> : vector<392x128xf32>
    %3 = tpu.matmul %1, %2, %cst {dimension_numbers = #tpu.dot_dimension_numbers<[1], [0], [0], [1], [0, 0, 1, 1], [], []>} : vector<392x128xf32>, vector<128x128xf32>, vector<392x128xf32> -> vector<392x128xf32>
    %c1 = arith.constant 1 : index
    %c0_4 = arith.constant 0 : index
    %c0_5 = arith.constant 0 : index
    %4 = vector.load %arg0[%c1, %c0_4, %c0_5] : memref<4x392x128xf32, #tpu.memory_space<vmem>>, vector<1x392x128xf32>
    %5 = vector.shape_cast %4 : vector<1x392x128xf32> to vector<392x128xf32>
    %c0_6 = arith.constant 0 : index
    %c0_7 = arith.constant 0 : index
    %6 = vector.load %arg1[%c0_6, %c0_7] : memref<128x128xf32, #tpu.memory_space<vmem>>, vector<128x128xf32>
    %cst_8 = arith.constant dense<0.000000e+00> : vector<392x128xf32>
    %7 = tpu.matmul %5, %6, %cst_8 {dimension_numbers = #tpu.dot_dimension_numbers<[1], [0], [0], [1], [0, 0, 1, 1], [], []>} : vector<392x128xf32>, vector<128x128xf32>, vector<392x128xf32> -> vector<392x128xf32>
    %8 = arith.maximumf %3, %7 : vector<392x128xf32>
    %c2 = arith.constant 2 : index
    %c0_9 = arith.constant 0 : index
    %c0_10 = arith.constant 0 : index
    %9 = vector.load %arg0[%c2, %c0_9, %c0_10] : memref<4x392x128xf32, #tpu.memory_space<vmem>>, vector<1x392x128xf32>
    %10 = vector.shape_cast %9 : vector<1x392x128xf32> to vector<392x128xf32>
    %c0_11 = arith.constant 0 : index
    %c0_12 = arith.constant 0 : index
    %11 = vector.load %arg1[%c0_11, %c0_12] : memref<128x128xf32, #tpu.memory_space<vmem>>, vector<128x128xf32>
    %cst_13 = arith.constant dense<0.000000e+00> : vector<392x128xf32>
    %12 = tpu.matmul %10, %11, %cst_13 {dimension_numbers = #tpu.dot_dimension_numbers<[1], [0], [0], [1], [0, 0, 1, 1], [], []>} : vector<392x128xf32>, vector<128x128xf32>, vector<392x128xf32> -> vector<392x128xf32>
    %13 = arith.maximumf %8, %12 : vector<392x128xf32>
    %c3 = arith.constant 3 : index
    %c0_14 = arith.constant 0 : index
    %c0_15 = arith.constant 0 : index
    %14 = vector.load %arg0[%c3, %c0_14, %c0_15] : memref<4x392x128xf32, #tpu.memory_space<vmem>>, vector<1x392x128xf32>
    %15 = vector.shape_cast %14 : vector<1x392x128xf32> to vector<392x128xf32>
    %c0_16 = arith.constant 0 : index
    %c0_17 = arith.constant 0 : index
    %16 = vector.load %arg1[%c0_16, %c0_17] : memref<128x128xf32, #tpu.memory_space<vmem>>, vector<128x128xf32>
    %cst_18 = arith.constant dense<0.000000e+00> : vector<392x128xf32>
    %17 = tpu.matmul %15, %16, %cst_18 {dimension_numbers = #tpu.dot_dimension_numbers<[1], [0], [0], [1], [0, 0, 1, 1], [], []>} : vector<392x128xf32>, vector<128x128xf32>, vector<392x128xf32> -> vector<392x128xf32>
    %18 = arith.maximumf %13, %17 : vector<392x128xf32>
    %c0_19 = arith.constant 0 : index
    %c0_20 = arith.constant 0 : index
    %19 = vector.load %arg2[%c0_19, %c0_20] : memref<1x128xf32, #tpu.memory_space<vmem>>, vector<1x128xf32>
    %20 = vector.broadcast %19 : vector<1x128xf32> to vector<392x128xf32>
    %21 = arith.addf %18, %20 : vector<392x128xf32>
    %cst_21 = arith.constant 0.000000e+00 : f32
    %22 = vector.broadcast %cst_21 : f32 to vector<392x128xf32>
    %23 = arith.maximumf %21, %22 : vector<392x128xf32>
    %c0_22 = arith.constant 0 : index
    %c0_23 = arith.constant 0 : index
    %24 = vector.load %arg3[%c0_22, %c0_23] : memref<392x128xf32, #tpu.memory_space<vmem>>, vector<392x128xf32>
    tpu.vector_store %arg3[%c0_22, %c0_23], %23 {strides = array<i32>} : memref<392x128xf32, #tpu.memory_space<vmem>>, vector<392x128xf32>,
    return
  }
}

module attributes {stable_mosaic.version = 11 : i64} {
  func.func @_conv_pool_fc_kernel(%arg0: memref<4x50x256xf32, #tpu.memory_space<vmem>>, %arg1: memref<256x128xf32, #tpu.memory_space<vmem>>, %arg2: memref<1x128xf32, #tpu.memory_space<vmem>>, %arg3: memref<25x16x128xf32, #tpu.memory_space<vmem>>, %arg4: memref<1x128xf32, #tpu.memory_space<vmem>>, %arg5: memref<128x128xf32, #tpu.memory_space<vmem>>, %arg6: memref<1x128xf32, #tpu.memory_space<vmem>>, %arg7: memref<128x10xf32, #tpu.memory_space<vmem>>, %arg8: memref<1x10xf32, #tpu.memory_space<vmem>>, %arg9: memref<2x10xf32, #tpu.memory_space<vmem>>) attributes {dimension_semantics = [], scalar_prefetch = 0 : i64, scratch_operands = 0 : i64, tpu.core_type = #tpu.core_type<tc>} {
    %c0 = arith.constant 0 : index
    %c0_0 = arith.constant 0 : index
    %c0_1 = arith.constant 0 : index
    %0 = vector.load %arg0[%c0, %c0_0, %c0_1] : memref<4x50x256xf32, #tpu.memory_space<vmem>>, vector<1x50x256xf32>
    %1 = vector.shape_cast %0 : vector<1x50x256xf32> to vector<50x256xf32>
    %c0_2 = arith.constant 0 : index
    %c0_3 = arith.constant 0 : index
    %2 = vector.load %arg1[%c0_2, %c0_3] : memref<256x128xf32, #tpu.memory_space<vmem>>, vector<256x128xf32>
    %cst = arith.constant dense<0.000000e+00> : vector<50x128xf32>
    %3 = tpu.matmul %1, %2, %cst {dimension_numbers = #tpu.dot_dimension_numbers<[1], [0], [0], [1], [0, 0, 1, 1], [], []>} : vector<50x256xf32>, vector<256x128xf32>, vector<50x128xf32> -> vector<50x128xf32>
    %c1 = arith.constant 1 : index
    %c0_4 = arith.constant 0 : index
    %c0_5 = arith.constant 0 : index
    %4 = vector.load %arg0[%c1, %c0_4, %c0_5] : memref<4x50x256xf32, #tpu.memory_space<vmem>>, vector<1x50x256xf32>
    %5 = vector.shape_cast %4 : vector<1x50x256xf32> to vector<50x256xf32>
    %c0_6 = arith.constant 0 : index
    %c0_7 = arith.constant 0 : index
    %6 = vector.load %arg1[%c0_6, %c0_7] : memref<256x128xf32, #tpu.memory_space<vmem>>, vector<256x128xf32>
    %cst_8 = arith.constant dense<0.000000e+00> : vector<50x128xf32>
    %7 = tpu.matmul %5, %6, %cst_8 {dimension_numbers = #tpu.dot_dimension_numbers<[1], [0], [0], [1], [0, 0, 1, 1], [], []>} : vector<50x256xf32>, vector<256x128xf32>, vector<50x128xf32> -> vector<50x128xf32>
    %8 = arith.maximumf %3, %7 : vector<50x128xf32>
    %c2 = arith.constant 2 : index
    %c0_9 = arith.constant 0 : index
    %c0_10 = arith.constant 0 : index
    %9 = vector.load %arg0[%c2, %c0_9, %c0_10] : memref<4x50x256xf32, #tpu.memory_space<vmem>>, vector<1x50x256xf32>
    %10 = vector.shape_cast %9 : vector<1x50x256xf32> to vector<50x256xf32>
    %c0_11 = arith.constant 0 : index
    %c0_12 = arith.constant 0 : index
    %11 = vector.load %arg1[%c0_11, %c0_12] : memref<256x128xf32, #tpu.memory_space<vmem>>, vector<256x128xf32>
    %cst_13 = arith.constant dense<0.000000e+00> : vector<50x128xf32>
    %12 = tpu.matmul %10, %11, %cst_13 {dimension_numbers = #tpu.dot_dimension_numbers<[1], [0], [0], [1], [0, 0, 1, 1], [], []>} : vector<50x256xf32>, vector<256x128xf32>, vector<50x128xf32> -> vector<50x128xf32>
    %13 = arith.maximumf %8, %12 : vector<50x128xf32>
    %c3 = arith.constant 3 : index
    %c0_14 = arith.constant 0 : index
    %c0_15 = arith.constant 0 : index
    %14 = vector.load %arg0[%c3, %c0_14, %c0_15] : memref<4x50x256xf32, #tpu.memory_space<vmem>>, vector<1x50x256xf32>
    %15 = vector.shape_cast %14 : vector<1x50x256xf32> to vector<50x256xf32>
    %c0_16 = arith.constant 0 : index
    %c0_17 = arith.constant 0 : index
    %16 = vector.load %arg1[%c0_16, %c0_17] : memref<256x128xf32, #tpu.memory_space<vmem>>, vector<256x128xf32>
    %cst_18 = arith.constant dense<0.000000e+00> : vector<50x128xf32>
    %17 = tpu.matmul %15, %16, %cst_18 {dimension_numbers = #tpu.dot_dimension_numbers<[1], [0], [0], [1], [0, 0, 1, 1], [], []>} : vector<50x256xf32>, vector<256x128xf32>, vector<50x128xf32> -> vector<50x128xf32>
    %18 = arith.maximumf %13, %17 : vector<50x128xf32>
    %c0_19 = arith.constant 0 : index
    %c0_20 = arith.constant 0 : index
    %19 = vector.load %arg2[%c0_19, %c0_20] : memref<1x128xf32, #tpu.memory_space<vmem>>, vector<1x128xf32>
    %20 = vector.broadcast %19 : vector<1x128xf32> to vector<50x128xf32>
    %21 = arith.addf %18, %20 : vector<50x128xf32>
    %cst_21 = arith.constant 0.000000e+00 : f32
    %22 = vector.broadcast %cst_21 : f32 to vector<50x128xf32>
    %23 = arith.maximumf %21, %22 : vector<50x128xf32>
    %cst_22 = arith.constant 0.000000e+00 : f32
    %24 = vector.broadcast %cst_22 : f32 to vector<2x128xf32>
    %25 = vector.extract_strided_slice %23 {offsets = [0, 0], sizes = [2, 16], strides = [1, 1]} : vector<50x128xf32> to vector<2x16xf32>
    %c0_23 = arith.constant 0 : index
    %c0_24 = arith.constant 0 : index
    %c0_25 = arith.constant 0 : index
    %26 = vector.load %arg3[%c0_23, %c0_24, %c0_25] : memref<25x16x128xf32, #tpu.memory_space<vmem>>, vector<1x16x128xf32>
    %27 = vector.shape_cast %26 : vector<1x16x128xf32> to vector<16x128xf32>
    %cst_26 = arith.constant dense<0.000000e+00> : vector<2x128xf32>
    %28 = tpu.matmul %25, %27, %cst_26 {dimension_numbers = #tpu.dot_dimension_numbers<[1], [0], [0], [1], [0, 0, 1, 1], [], []>} : vector<2x16xf32>, vector<16x128xf32>, vector<2x128xf32> -> vector<2x128xf32>
    %29 = arith.addf %24, %28 : vector<2x128xf32>
    %30 = vector.extract_strided_slice %23 {offsets = [2, 0], sizes = [2, 16], strides = [1, 1]} : vector<50x128xf32> to vector<2x16xf32>
    %c1_27 = arith.constant 1 : index
    %c0_28 = arith.constant 0 : index
    %c0_29 = arith.constant 0 : index
    %31 = vector.load %arg3[%c1_27, %c0_28, %c0_29] : memref<25x16x128xf32, #tpu.memory_space<vmem>>, vector<1x16x128xf32>
    %32 = vector.shape_cast %31 : vector<1x16x128xf32> to vector<16x128xf32>
    %cst_30 = arith.constant dense<0.000000e+00> : vector<2x128xf32>
    %33 = tpu.matmul %30, %32, %cst_30 {dimension_numbers = #tpu.dot_dimension_numbers<[1], [0], [0], [1], [0, 0, 1, 1], [], []>} : vector<2x16xf32>, vector<16x128xf32>, vector<2x128xf32> -> vector<2x128xf32>
    %34 = arith.addf %29, %33 : vector<2x128xf32>
    %35 = vector.extract_strided_slice %23 {offsets = [4, 0], sizes = [2, 16], strides = [1, 1]} : vector<50x128xf32> to vector<2x16xf32>
    %c2_31 = arith.constant 2 : index
    %c0_32 = arith.constant 0 : index
    %c0_33 = arith.constant 0 : index
    %36 = vector.load %arg3[%c2_31, %c0_32, %c0_33] : memref<25x16x128xf32, #tpu.memory_space<vmem>>, vector<1x16x128xf32>
    %37 = vector.shape_cast %36 : vector<1x16x128xf32> to vector<16x128xf32>
    %cst_34 = arith.constant dense<0.000000e+00> : vector<2x128xf32>
    %38 = tpu.matmul %35, %37, %cst_34 {dimension_numbers = #tpu.dot_dimension_numbers<[1], [0], [0], [1], [0, 0, 1, 1], [], []>} : vector<2x16xf32>, vector<16x128xf32>, vector<2x128xf32> -> vector<2x128xf32>
    %39 = arith.addf %34, %38 : vector<2x128xf32>
    %40 = vector.extract_strided_slice %23 {offsets = [6, 0], sizes = [2, 16], strides = [1, 1]} : vector<50x128xf32> to vector<2x16xf32>
    %c3_35 = arith.constant 3 : index
    %c0_36 = arith.constant 0 : index
    %c0_37 = arith.constant 0 : index
    %41 = vector.load %arg3[%c3_35, %c0_36, %c0_37] : memref<25x16x128xf32, #tpu.memory_space<vmem>>, vector<1x16x128xf32>
    %42 = vector.shape_cast %41 : vector<1x16x128xf32> to vector<16x128xf32>
    %cst_38 = arith.constant dense<0.000000e+00> : vector<2x128xf32>
    %43 = tpu.matmul %40, %42, %cst_38 {dimension_numbers = #tpu.dot_dimension_numbers<[1], [0], [0], [1], [0, 0, 1, 1], [], []>} : vector<2x16xf32>, vector<16x128xf32>, vector<2x128xf32> -> vector<2x128xf32>
    %44 = arith.addf %39, %43 : vector<2x128xf32>
    %45 = vector.extract_strided_slice %23 {offsets = [8, 0], sizes = [2, 16], strides = [1, 1]} : vector<50x128xf32> to vector<2x16xf32>
    %c4 = arith.constant 4 : index
    %c0_39 = arith.constant 0 : index
    %c0_40 = arith.constant 0 : index
    %46 = vector.load %arg3[%c4, %c0_39, %c0_40] : memref<25x16x128xf32, #tpu.memory_space<vmem>>, vector<1x16x128xf32>
    %47 = vector.shape_cast %46 : vector<1x16x128xf32> to vector<16x128xf32>
    %cst_41 = arith.constant dense<0.000000e+00> : vector<2x128xf32>
    %48 = tpu.matmul %45, %47, %cst_41 {dimension_numbers = #tpu.dot_dimension_numbers<[1], [0], [0], [1], [0, 0, 1, 1], [], []>} : vector<2x16xf32>, vector<16x128xf32>, vector<2x128xf32> -> vector<2x128xf32>
    %49 = arith.addf %44, %48 : vector<2x128xf32>
    %50 = vector.extract_strided_slice %23 {offsets = [10, 0], sizes = [2, 16], strides = [1, 1]} : vector<50x128xf32> to vector<2x16xf32>
    %c5 = arith.constant 5 : index
    %c0_42 = arith.constant 0 : index
    %c0_43 = arith.constant 0 : index
    %51 = vector.load %arg3[%c5, %c0_42, %c0_43] : memref<25x16x128xf32, #tpu.memory_space<vmem>>, vector<1x16x128xf32>
    %52 = vector.shape_cast %51 : vector<1x16x128xf32> to vector<16x128xf32>
    %cst_44 = arith.constant dense<0.000000e+00> : vector<2x128xf32>
    %53 = tpu.matmul %50, %52, %cst_44 {dimension_numbers = #tpu.dot_dimension_numbers<[1], [0], [0], [1], [0, 0, 1, 1], [], []>} : vector<2x16xf32>, vector<16x128xf32>, vector<2x128xf32> -> vector<2x128xf32>
    %54 = arith.addf %49, %53 : vector<2x128xf32>
    %55 = vector.extract_strided_slice %23 {offsets = [12, 0], sizes = [2, 16], strides = [1, 1]} : vector<50x128xf32> to vector<2x16xf32>
    %c6 = arith.constant 6 : index
    %c0_45 = arith.constant 0 : index
    %c0_46 = arith.constant 0 : index
    %56 = vector.load %arg3[%c6, %c0_45, %c0_46] : memref<25x16x128xf32, #tpu.memory_space<vmem>>, vector<1x16x128xf32>
    %57 = vector.shape_cast %56 : vector<1x16x128xf32> to vector<16x128xf32>
    %cst_47 = arith.constant dense<0.000000e+00> : vector<2x128xf32>
    %58 = tpu.matmul %55, %57, %cst_47 {dimension_numbers = #tpu.dot_dimension_numbers<[1], [0], [0], [1], [0, 0, 1, 1], [], []>} : vector<2x16xf32>, vector<16x128xf32>, vector<2x128xf32> -> vector<2x128xf32>
    %59 = arith.addf %54, %58 : vector<2x128xf32>
    %60 = vector.extract_strided_slice %23 {offsets = [14, 0], sizes = [2, 16], strides = [1, 1]} : vector<50x128xf32> to vector<2x16xf32>
    %c7 = arith.constant 7 : index
    %c0_48 = arith.constant 0 : index
    %c0_49 = arith.constant 0 : index
    %61 = vector.load %arg3[%c7, %c0_48, %c0_49] : memref<25x16x128xf32, #tpu.memory_space<vmem>>, vector<1x16x128xf32>
    %62 = vector.shape_cast %61 : vector<1x16x128xf32> to vector<16x128xf32>
    %cst_50 = arith.constant dense<0.000000e+00> : vector<2x128xf32>
    %63 = tpu.matmul %60, %62, %cst_50 {dimension_numbers = #tpu.dot_dimension_numbers<[1], [0], [0], [1], [0, 0, 1, 1], [], []>} : vector<2x16xf32>, vector<16x128xf32>, vector<2x128xf32> -> vector<2x128xf32>
    %64 = arith.addf %59, %63 : vector<2x128xf32>
    %65 = vector.extract_strided_slice %23 {offsets = [16, 0], sizes = [2, 16], strides = [1, 1]} : vector<50x128xf32> to vector<2x16xf32>
    %c8 = arith.constant 8 : index
    %c0_51 = arith.constant 0 : index
    %c0_52 = arith.constant 0 : index
    %66 = vector.load %arg3[%c8, %c0_51, %c0_52] : memref<25x16x128xf32, #tpu.memory_space<vmem>>, vector<1x16x128xf32>
    %67 = vector.shape_cast %66 : vector<1x16x128xf32> to vector<16x128xf32>
    %cst_53 = arith.constant dense<0.000000e+00> : vector<2x128xf32>
    %68 = tpu.matmul %65, %67, %cst_53 {dimension_numbers = #tpu.dot_dimension_numbers<[1], [0], [0], [1], [0, 0, 1, 1], [], []>} : vector<2x16xf32>, vector<16x128xf32>, vector<2x128xf32> -> vector<2x128xf32>
    %69 = arith.addf %64, %68 : vector<2x128xf32>
    %70 = vector.extract_strided_slice %23 {offsets = [18, 0], sizes = [2, 16], strides = [1, 1]} : vector<50x128xf32> to vector<2x16xf32>
    %c9 = arith.constant 9 : index
    %c0_54 = arith.constant 0 : index
    %c0_55 = arith.constant 0 : index
    %71 = vector.load %arg3[%c9, %c0_54, %c0_55] : memref<25x16x128xf32, #tpu.memory_space<vmem>>, vector<1x16x128xf32>
    %72 = vector.shape_cast %71 : vector<1x16x128xf32> to vector<16x128xf32>
    %cst_56 = arith.constant dense<0.000000e+00> : vector<2x128xf32>
    %73 = tpu.matmul %70, %72, %cst_56 {dimension_numbers = #tpu.dot_dimension_numbers<[1], [0], [0], [1], [0, 0, 1, 1], [], []>} : vector<2x16xf32>, vector<16x128xf32>, vector<2x128xf32> -> vector<2x128xf32>
    %74 = arith.addf %69, %73 : vector<2x128xf32>
    %75 = vector.extract_strided_slice %23 {offsets = [20, 0], sizes = [2, 16], strides = [1, 1]} : vector<50x128xf32> to vector<2x16xf32>
    %c10 = arith.constant 10 : index
    %c0_57 = arith.constant 0 : index
    %c0_58 = arith.constant 0 : index
    %76 = vector.load %arg3[%c10, %c0_57, %c0_58] : memref<25x16x128xf32, #tpu.memory_space<vmem>>, vector<1x16x128xf32>
    %77 = vector.shape_cast %76 : vector<1x16x128xf32> to vector<16x128xf32>
    %cst_59 = arith.constant dense<0.000000e+00> : vector<2x128xf32>
    %78 = tpu.matmul %75, %77, %cst_59 {dimension_numbers = #tpu.dot_dimension_numbers<[1], [0], [0], [1], [0, 0, 1, 1], [], []>} : vector<2x16xf32>, vector<16x128xf32>, vector<2x128xf32> -> vector<2x128xf32>
    %79 = arith.addf %74, %78 : vector<2x128xf32>
    %80 = vector.extract_strided_slice %23 {offsets = [22, 0], sizes = [2, 16], strides = [1, 1]} : vector<50x128xf32> to vector<2x16xf32>
    %c11 = arith.constant 11 : index
    %c0_60 = arith.constant 0 : index
    %c0_61 = arith.constant 0 : index
    %81 = vector.load %arg3[%c11, %c0_60, %c0_61] : memref<25x16x128xf32, #tpu.memory_space<vmem>>, vector<1x16x128xf32>
    %82 = vector.shape_cast %81 : vector<1x16x128xf32> to vector<16x128xf32>
    %cst_62 = arith.constant dense<0.000000e+00> : vector<2x128xf32>
    %83 = tpu.matmul %80, %82, %cst_62 {dimension_numbers = #tpu.dot_dimension_numbers<[1], [0], [0], [1], [0, 0, 1, 1], [], []>} : vector<2x16xf32>, vector<16x128xf32>, vector<2x128xf32> -> vector<2x128xf32>
    %84 = arith.addf %79, %83 : vector<2x128xf32>
    %85 = vector.extract_strided_slice %23 {offsets = [24, 0], sizes = [2, 16], strides = [1, 1]} : vector<50x128xf32> to vector<2x16xf32>
    %c12 = arith.constant 12 : index
    %c0_63 = arith.constant 0 : index
    %c0_64 = arith.constant 0 : index
    %86 = vector.load %arg3[%c12, %c0_63, %c0_64] : memref<25x16x128xf32, #tpu.memory_space<vmem>>, vector<1x16x128xf32>
    %87 = vector.shape_cast %86 : vector<1x16x128xf32> to vector<16x128xf32>
    %cst_65 = arith.constant dense<0.000000e+00> : vector<2x128xf32>
    %88 = tpu.matmul %85, %87, %cst_65 {dimension_numbers = #tpu.dot_dimension_numbers<[1], [0], [0], [1], [0, 0, 1, 1], [], []>} : vector<2x16xf32>, vector<16x128xf32>, vector<2x128xf32> -> vector<2x128xf32>
    %89 = arith.addf %84, %88 : vector<2x128xf32>
    %90 = vector.extract_strided_slice %23 {offsets = [26, 0], sizes = [2, 16], strides = [1, 1]} : vector<50x128xf32> to vector<2x16xf32>
    %c13 = arith.constant 13 : index
    %c0_66 = arith.constant 0 : index
    %c0_67 = arith.constant 0 : index
    %91 = vector.load %arg3[%c13, %c0_66, %c0_67] : memref<25x16x128xf32, #tpu.memory_space<vmem>>, vector<1x16x128xf32>
    %92 = vector.shape_cast %91 : vector<1x16x128xf32> to vector<16x128xf32>
    %cst_68 = arith.constant dense<0.000000e+00> : vector<2x128xf32>
    %93 = tpu.matmul %90, %92, %cst_68 {dimension_numbers = #tpu.dot_dimension_numbers<[1], [0], [0], [1], [0, 0, 1, 1], [], []>} : vector<2x16xf32>, vector<16x128xf32>, vector<2x128xf32> -> vector<2x128xf32>
    %94 = arith.addf %89, %93 : vector<2x128xf32>
    %95 = vector.extract_strided_slice %23 {offsets = [28, 0], sizes = [2, 16], strides = [1, 1]} : vector<50x128xf32> to vector<2x16xf32>
    %c14 = arith.constant 14 : index
    %c0_69 = arith.constant 0 : index
    %c0_70 = arith.constant 0 : index
    %96 = vector.load %arg3[%c14, %c0_69, %c0_70] : memref<25x16x128xf32, #tpu.memory_space<vmem>>, vector<1x16x128xf32>
    %97 = vector.shape_cast %96 : vector<1x16x128xf32> to vector<16x128xf32>
    %cst_71 = arith.constant dense<0.000000e+00> : vector<2x128xf32>
    %98 = tpu.matmul %95, %97, %cst_71 {dimension_numbers = #tpu.dot_dimension_numbers<[1], [0], [0], [1], [0, 0, 1, 1], [], []>} : vector<2x16xf32>, vector<16x128xf32>, vector<2x128xf32> -> vector<2x128xf32>
    %99 = arith.addf %94, %98 : vector<2x128xf32>
    %100 = vector.extract_strided_slice %23 {offsets = [30, 0], sizes = [2, 16], strides = [1, 1]} : vector<50x128xf32> to vector<2x16xf32>
    %c15 = arith.constant 15 : index
    %c0_72 = arith.constant 0 : index
    %c0_73 = arith.constant 0 : index
    %101 = vector.load %arg3[%c15, %c0_72, %c0_73] : memref<25x16x128xf32, #tpu.memory_space<vmem>>, vector<1x16x128xf32>
    %102 = vector.shape_cast %101 : vector<1x16x128xf32> to vector<16x128xf32>
    %cst_74 = arith.constant dense<0.000000e+00> : vector<2x128xf32>
    %103 = tpu.matmul %100, %102, %cst_74 {dimension_numbers = #tpu.dot_dimension_numbers<[1], [0], [0], [1], [0, 0, 1, 1], [], []>} : vector<2x16xf32>, vector<16x128xf32>, vector<2x128xf32> -> vector<2x128xf32>
    %104 = arith.addf %99, %103 : vector<2x128xf32>
    %105 = vector.extract_strided_slice %23 {offsets = [32, 0], sizes = [2, 16], strides = [1, 1]} : vector<50x128xf32> to vector<2x16xf32>
    %c16 = arith.constant 16 : index
    %c0_75 = arith.constant 0 : index
    %c0_76 = arith.constant 0 : index
    %106 = vector.load %arg3[%c16, %c0_75, %c0_76] : memref<25x16x128xf32, #tpu.memory_space<vmem>>, vector<1x16x128xf32>
    %107 = vector.shape_cast %106 : vector<1x16x128xf32> to vector<16x128xf32>
    %cst_77 = arith.constant dense<0.000000e+00> : vector<2x128xf32>
    %108 = tpu.matmul %105, %107, %cst_77 {dimension_numbers = #tpu.dot_dimension_numbers<[1], [0], [0], [1], [0, 0, 1, 1], [], []>} : vector<2x16xf32>, vector<16x128xf32>, vector<2x128xf32> -> vector<2x128xf32>
    %109 = arith.addf %104, %108 : vector<2x128xf32>
    %110 = vector.extract_strided_slice %23 {offsets = [34, 0], sizes = [2, 16], strides = [1, 1]} : vector<50x128xf32> to vector<2x16xf32>
    %c17 = arith.constant 17 : index
    %c0_78 = arith.constant 0 : index
    %c0_79 = arith.constant 0 : index
    %111 = vector.load %arg3[%c17, %c0_78, %c0_79] : memref<25x16x128xf32, #tpu.memory_space<vmem>>, vector<1x16x128xf32>
    %112 = vector.shape_cast %111 : vector<1x16x128xf32> to vector<16x128xf32>
    %cst_80 = arith.constant dense<0.000000e+00> : vector<2x128xf32>
    %113 = tpu.matmul %110, %112, %cst_80 {dimension_numbers = #tpu.dot_dimension_numbers<[1], [0], [0], [1], [0, 0, 1, 1], [], []>} : vector<2x16xf32>, vector<16x128xf32>, vector<2x128xf32> -> vector<2x128xf32>
    %114 = arith.addf %109, %113 : vector<2x128xf32>
    %115 = vector.extract_strided_slice %23 {offsets = [36, 0], sizes = [2, 16], strides = [1, 1]} : vector<50x128xf32> to vector<2x16xf32>
    %c18 = arith.constant 18 : index
    %c0_81 = arith.constant 0 : index
    %c0_82 = arith.constant 0 : index
    %116 = vector.load %arg3[%c18, %c0_81, %c0_82] : memref<25x16x128xf32, #tpu.memory_space<vmem>>, vector<1x16x128xf32>
    %117 = vector.shape_cast %116 : vector<1x16x128xf32> to vector<16x128xf32>
    %cst_83 = arith.constant dense<0.000000e+00> : vector<2x128xf32>
    %118 = tpu.matmul %115, %117, %cst_83 {dimension_numbers = #tpu.dot_dimension_numbers<[1], [0], [0], [1], [0, 0, 1, 1], [], []>} : vector<2x16xf32>, vector<16x128xf32>, vector<2x128xf32> -> vector<2x128xf32>
    %119 = arith.addf %114, %118 : vector<2x128xf32>
    %120 = vector.extract_strided_slice %23 {offsets = [38, 0], sizes = [2, 16], strides = [1, 1]} : vector<50x128xf32> to vector<2x16xf32>
    %c19 = arith.constant 19 : index
    %c0_84 = arith.constant 0 : index
    %c0_85 = arith.constant 0 : index
    %121 = vector.load %arg3[%c19, %c0_84, %c0_85] : memref<25x16x128xf32, #tpu.memory_space<vmem>>, vector<1x16x128xf32>
    %122 = vector.shape_cast %121 : vector<1x16x128xf32> to vector<16x128xf32>
    %cst_86 = arith.constant dense<0.000000e+00> : vector<2x128xf32>
    %123 = tpu.matmul %120, %122, %cst_86 {dimension_numbers = #tpu.dot_dimension_numbers<[1], [0], [0], [1], [0, 0, 1, 1], [], []>} : vector<2x16xf32>, vector<16x128xf32>, vector<2x128xf32> -> vector<2x128xf32>
    %124 = arith.addf %119, %123 : vector<2x128xf32>
    %125 = vector.extract_strided_slice %23 {offsets = [40, 0], sizes = [2, 16], strides = [1, 1]} : vector<50x128xf32> to vector<2x16xf32>
    %c20 = arith.constant 20 : index
    %c0_87 = arith.constant 0 : index
    %c0_88 = arith.constant 0 : index
    %126 = vector.load %arg3[%c20, %c0_87, %c0_88] : memref<25x16x128xf32, #tpu.memory_space<vmem>>, vector<1x16x128xf32>
    %127 = vector.shape_cast %126 : vector<1x16x128xf32> to vector<16x128xf32>
    %cst_89 = arith.constant dense<0.000000e+00> : vector<2x128xf32>
    %128 = tpu.matmul %125, %127, %cst_89 {dimension_numbers = #tpu.dot_dimension_numbers<[1], [0], [0], [1], [0, 0, 1, 1], [], []>} : vector<2x16xf32>, vector<16x128xf32>, vector<2x128xf32> -> vector<2x128xf32>
    %129 = arith.addf %124, %128 : vector<2x128xf32>
    %130 = vector.extract_strided_slice %23 {offsets = [42, 0], sizes = [2, 16], strides = [1, 1]} : vector<50x128xf32> to vector<2x16xf32>
    %c21 = arith.constant 21 : index
    %c0_90 = arith.constant 0 : index
    %c0_91 = arith.constant 0 : index
    %131 = vector.load %arg3[%c21, %c0_90, %c0_91] : memref<25x16x128xf32, #tpu.memory_space<vmem>>, vector<1x16x128xf32>
    %132 = vector.shape_cast %131 : vector<1x16x128xf32> to vector<16x128xf32>
    %cst_92 = arith.constant dense<0.000000e+00> : vector<2x128xf32>
    %133 = tpu.matmul %130, %132, %cst_92 {dimension_numbers = #tpu.dot_dimension_numbers<[1], [0], [0], [1], [0, 0, 1, 1], [], []>} : vector<2x16xf32>, vector<16x128xf32>, vector<2x128xf32> -> vector<2x128xf32>
    %134 = arith.addf %129, %133 : vector<2x128xf32>
    %135 = vector.extract_strided_slice %23 {offsets = [44, 0], sizes = [2, 16], strides = [1, 1]} : vector<50x128xf32> to vector<2x16xf32>
    %c22 = arith.constant 22 : index
    %c0_93 = arith.constant 0 : index
    %c0_94 = arith.constant 0 : index
    %136 = vector.load %arg3[%c22, %c0_93, %c0_94] : memref<25x16x128xf32, #tpu.memory_space<vmem>>, vector<1x16x128xf32>
    %137 = vector.shape_cast %136 : vector<1x16x128xf32> to vector<16x128xf32>
    %cst_95 = arith.constant dense<0.000000e+00> : vector<2x128xf32>
    %138 = tpu.matmul %135, %137, %cst_95 {dimension_numbers = #tpu.dot_dimension_numbers<[1], [0], [0], [1], [0, 0, 1, 1], [], []>} : vector<2x16xf32>, vector<16x128xf32>, vector<2x128xf32> -> vector<2x128xf32>
    %139 = arith.addf %134, %138 : vector<2x128xf32>
    %140 = vector.extract_strided_slice %23 {offsets = [46, 0], sizes = [2, 16], strides = [1, 1]} : vector<50x128xf32> to vector<2x16xf32>
    %c23 = arith.constant 23 : index
    %c0_96 = arith.constant 0 : index
    %c0_97 = arith.constant 0 : index
    %141 = vector.load %arg3[%c23, %c0_96, %c0_97] : memref<25x16x128xf32, #tpu.memory_space<vmem>>, vector<1x16x128xf32>
    %142 = vector.shape_cast %141 : vector<1x16x128xf32> to vector<16x128xf32>
    %cst_98 = arith.constant dense<0.000000e+00> : vector<2x128xf32>
    %143 = tpu.matmul %140, %142, %cst_98 {dimension_numbers = #tpu.dot_dimension_numbers<[1], [0], [0], [1], [0, 0, 1, 1], [], []>} : vector<2x16xf32>, vector<16x128xf32>, vector<2x128xf32> -> vector<2x128xf32>
    %144 = arith.addf %139, %143 : vector<2x128xf32>
    %145 = vector.extract_strided_slice %23 {offsets = [48, 0], sizes = [2, 16], strides = [1, 1]} : vector<50x128xf32> to vector<2x16xf32>
    %c24 = arith.constant 24 : index
    %c0_99 = arith.constant 0 : index
    %c0_100 = arith.constant 0 : index
    %146 = vector.load %arg3[%c24, %c0_99, %c0_100] : memref<25x16x128xf32, #tpu.memory_space<vmem>>, vector<1x16x128xf32>
    %147 = vector.shape_cast %146 : vector<1x16x128xf32> to vector<16x128xf32>
    %cst_101 = arith.constant dense<0.000000e+00> : vector<2x128xf32>
    %148 = tpu.matmul %145, %147, %cst_101 {dimension_numbers = #tpu.dot_dimension_numbers<[1], [0], [0], [1], [0, 0, 1, 1], [], []>} : vector<2x16xf32>, vector<16x128xf32>, vector<2x128xf32> -> vector<2x128xf32>
    %149 = arith.addf %144, %148 : vector<2x128xf32>
    %c0_102 = arith.constant 0 : index
    %c0_103 = arith.constant 0 : index
    %150 = vector.load %arg4[%c0_102, %c0_103] : memref<1x128xf32, #tpu.memory_space<vmem>>, vector<1x128xf32>
    %151 = vector.broadcast %150 : vector<1x128xf32> to vector<2x128xf32>
    %152 = arith.addf %149, %151 : vector<2x128xf32>
    %cst_104 = arith.constant 0.000000e+00 : f32
    %153 = vector.broadcast %cst_104 : f32 to vector<2x128xf32>
    %154 = arith.maximumf %152, %153 : vector<2x128xf32>
    %c0_105 = arith.constant 0 : index
    %c0_106 = arith.constant 0 : index
    %155 = vector.load %arg5[%c0_105, %c0_106] : memref<128x128xf32, #tpu.memory_space<vmem>>, vector<128x128xf32>
    %cst_107 = arith.constant dense<0.000000e+00> : vector<2x128xf32>
    %156 = tpu.matmul %154, %155, %cst_107 {dimension_numbers = #tpu.dot_dimension_numbers<[1], [0], [0], [1], [0, 0, 1, 1], [], []>} : vector<2x128xf32>, vector<128x128xf32>, vector<2x128xf32> -> vector<2x128xf32>
    %c0_108 = arith.constant 0 : index
    %c0_109 = arith.constant 0 : index
    %157 = vector.load %arg6[%c0_108, %c0_109] : memref<1x128xf32, #tpu.memory_space<vmem>>, vector<1x128xf32>
    %158 = vector.broadcast %157 : vector<1x128xf32> to vector<2x128xf32>
    %159 = arith.addf %156, %158 : vector<2x128xf32>
    %cst_110 = arith.constant 0.000000e+00 : f32
    %160 = vector.broadcast %cst_110 : f32 to vector<2x128xf32>
    %161 = arith.maximumf %159, %160 : vector<2x128xf32>
    %c0_111 = arith.constant 0 : index
    %c0_112 = arith.constant 0 : index
    %162 = vector.load %arg7[%c0_111, %c0_112] : memref<128x10xf32, #tpu.memory_space<vmem>>, vector<128x10xf32>
    %cst_113 = arith.constant dense<0.000000e+00> : vector<2x10xf32>
    %163 = tpu.matmul %161, %162, %cst_113 {dimension_numbers = #tpu.dot_dimension_numbers<[1], [0], [0], [1], [0, 0, 1, 1], [], []>} : vector<2x128xf32>, vector<128x10xf32>, vector<2x10xf32> -> vector<2x10xf32>
    %c0_114 = arith.constant 0 : index
    %c0_115 = arith.constant 0 : index
    %164 = vector.load %arg8[%c0_114, %c0_115] : memref<1x10xf32, #tpu.memory_space<vmem>>, vector<1x10xf32>
    %165 = vector.broadcast %164 : vector<1x10xf32> to vector<2x10xf32>
    %166 = arith.addf %163, %165 : vector<2x10xf32>
    %c0_116 = arith.constant 0 : index
    %c0_117 = arith.constant 0 : index
    %167 = vector.load %arg9[%c0_116, %c0_117] : memref<2x10xf32, #tpu.memory_space<vmem>>, vector<2x10xf32>
    tpu.vector_store %arg9[%c0_116, %c0_117], %166 {strides = array<i32>} : memref<2x10xf32, #tpu.memory_space<vmem>>, vector<2x10xf32>,
    return
  }
}

</mosaic_0001>

<bundles_post_ra>
// kernel: net_forward.2
= control target key start
LH: loop header
LB: loop body
LE: loop exit
PB: predicated region body
PF: predicated region fallthrough
CT: control target
= control target key end

     0   :  { %v2900_v0 = vmov 0.0   ;;  %vm2901_vm0 = vmmov 0   ;;  %s4752_s1 = inlined_call_operand.vmem [shape: f32[128,128], index: 1, kind: input, shape index: {}]   ;;  %s4753_s0 = inlined_call_operand.vmem [shape: f32[4,392,128], index: 0, kind: input, shape index: {}]   ;;  %s4754_s2 = inlined_call_operand.vmem [shape: f32[1,128], index: 2, kind: input, shape index: {}]   ;;  %s4755_s3 = inlined_call_operand.vmem [shape: f32[392,128], index: 3, kind: output, shape index: {}]  }
   0x1   :  { %2182 = vmatprep.subr.mxu0 %v2900_v0  ;;  %v2926_v1 = vld [vmem:[%s4752_s1 + $0x78] sm:$0xff]  ;;  %2361 = vmatprep.subr.mxu1 %v2900_v0  ;;  %v2932_v2 = vld [vmem:[%s4752_s1 + $0x70] sm:$0xff]  ;;  %v2941_v3 = vld [vmem:[%s4752_s1 + $0x68] sm:$0xff] }
   0x2   :  { %2183 = vmatpush3.msra.mxu0 %v2926_v1  ;;  %2362 = vmatpush3.msra.mxu1 %v2926_v1  ;;  %v2950_v4 = vld [vmem:[%s4752_s1 + $0x60] sm:$0xff]  ;;  %v2959_v5 = vld [vmem:[%s4752_s1 + $0x58] sm:$0xff]  ;;  %v2968_v6 = vld [vmem:[%s4752_s1 + $0x50] sm:$0xff] }
   0x3   :  { %2184 = vmatprep.subr.mxu0 %v2900_v0  ;;  %2363 = vmatprep.subr.mxu1 %v2900_v0  ;;  %v2977_v7 = vld [vmem:[%s4752_s1 + $0x48] sm:$0xff]  ;;  %v2986_v8 = vld [vmem:[%s4752_s1 + $0x40] sm:$0xff]  ;;  %v2995_v9 = vld [vmem:[%s4752_s1 + $0x38] sm:$0xff] }
   0x4   :  { %2185 = vmatpush3.msra.mxu0 %v2932_v2  ;;  %2364 = vmatpush3.msra.mxu1 %v2932_v2  ;;  %v3004_v10 = vld [vmem:[%s4752_s1 + $0x30] sm:$0xff]  ;;  %v3013_v11 = vld [vmem:[%s4752_s1 + $0x28] sm:$0xff]  ;;  %v3022_v12 = vld [vmem:[%s4752_s1 + $0x20] sm:$0xff] }
   0x5   :  { %2186 = vmatprep.subr.mxu0 %v2900_v0  ;;  %2365 = vmatprep.subr.mxu1 %v2900_v0  ;;  %v3031_v13 = vld [vmem:[%s4752_s1 + $0x18] sm:$0xff]  ;;  %v3040_v14 = vld [vmem:[%s4752_s1 + $0x10] sm:$0xff]  ;;  %v3049_v15 = vld [vmem:[%s4752_s1 + $0x8] sm:$0xff] }
   0x6   :  { %2187 = vmatpush3.msra.mxu0 %v2941_v3  ;;  %2366 = vmatpush3.msra.mxu1 %v2941_v3  ;;  %v3058_v16 = vld [vmem:[%s4752_s1] sm:$0xff]  ;;  %v1774_v18 = vld [vmem:[%s4753_s0 + $0x188] sm:$0xff]  ;;  %v1775_v20 = vld [vmem:[%s4753_s0 + $0x190] sm:$0xff] }
   0x7   :  { %2188 = vmatprep.subr.mxu0 %v2900_v0  ;;  %2367 = vmatprep.subr.mxu1 %v2900_v0  ;;  %v14_v17 = vld [vmem:[%s4753_s0] sm:$0xff]  ;;  %v15_v19 = vld [vmem:[%s4753_s0 + $0x8] sm:$0xff]  ;;  %v16_v21 = vld [vmem:[%s4753_s0 + $0x10] sm:$0xff] }
   0x8   :  { %2189 = vmatpush3.msra.mxu0 %v2950_v4  ;;  %2368 = vmatpush3.msra.mxu1 %v2950_v4  ;;  %v1776_v22 = vld [vmem:[%s4753_s0 + $0x198] sm:$0xff]  ;;  %v1777_v24 = vld [vmem:[%s4753_s0 + $0x1a0] sm:$0xff]  ;;  %v1778_v26 = vld [vmem:[%s4753_s0 + $0x1a8] sm:$0xff] }
   0x9   :  { %2190 = vmatprep.subr.mxu0 %v2900_v0  ;;  %2369 = vmatprep.subr.mxu1 %v2900_v0  ;;  %v17_v23 = vld [vmem:[%s4753_s0 + $0x18] sm:$0xff]  ;;  %v18_v25 = vld [vmem:[%s4753_s0 + $0x20] sm:$0xff]  ;;  %v19_v27 = vld [vmem:[%s4753_s0 + $0x28] sm:$0xff] }
   0xa   :  { %2191 = vmatpush3.msra.mxu0 %v2959_v5  ;;  %2370 = vmatpush3.msra.mxu1 %v2959_v5  ;;  %v1779_v28 = vld [vmem:[%s4753_s0 + $0x1b0] sm:$0xff]  ;;  %v1780_v30 = vld [vmem:[%s4753_s0 + $0x1b8] sm:$0xff]  ;;  %v1781_v32 = vld [vmem:[%s4753_s0 + $0x1c0] sm:$0xff] }
   0xb   :  { %2192 = vmatprep.subr.mxu0 %v2900_v0  ;;  %2371 = vmatprep.subr.mxu1 %v2900_v0  ;;  %v20_v29 = vld [vmem:[%s4753_s0 + $0x30] sm:$0xff]  ;;  %v21_v31 = vld [vmem:[%s4753_s0 + $0x38] sm:$0xff]  ;;  %v22_v33 = vld [vmem:[%s4753_s0 + $0x40] sm:$0xff] }
   0xc   :  { %2193 = vmatpush3.msra.mxu0 %v2968_v6  ;;  %2372 = vmatpush3.msra.mxu1 %v2968_v6  ;;  %v1782_v34 = vld [vmem:[%s4753_s0 + $0x1c8] sm:$0xff]  ;;  %v1783_v36 = vld [vmem:[%s4753_s0 + $0x1d0] sm:$0xff]  ;;  %v1784_v38 = vld [vmem:[%s4753_s0 + $0x1d8] sm:$0xff] }
   0xd   :  { %2194 = vmatprep.subr.mxu0 %v2900_v0  ;;  %2373 = vmatprep.subr.mxu1 %v2900_v0  ;;  %v23_v35 = vld [vmem:[%s4753_s0 + $0x48] sm:$0xff]  ;;  %v24_v37 = vld [vmem:[%s4753_s0 + $0x50] sm:$0xff]  ;;  %v25_v39 = vld [vmem:[%s4753_s0 + $0x58] sm:$0xff] }
   0xe   :  { %2195 = vmatpush3.msra.mxu0 %v2977_v7  ;;  %2374 = vmatpush3.msra.mxu1 %v2977_v7  ;;  %v1785_v40 = vld [vmem:[%s4753_s0 + $0x1e0] sm:$0xff]  ;;  %v1786_v42 = vld [vmem:[%s4753_s0 + $0x1e8] sm:$0xff]  ;;  %v1787_v44 = vld [vmem:[%s4753_s0 + $0x1f0] sm:$0xff] }
   0xf   :  { %2196 = vmatprep.subr.mxu0 %v2900_v0  ;;  %2375 = vmatprep.subr.mxu1 %v2900_v0  ;;  %v26_v41 = vld [vmem:[%s4753_s0 + $0x60] sm:$0xff]  ;;  %v27_v43 = vld [vmem:[%s4753_s0 + $0x68] sm:$0xff]  ;;  %v28_v45 = vld [vmem:[%s4753_s0 + $0x70] sm:$0xff] }
  0x10   :  { %2197 = vmatpush3.msra.mxu0 %v2986_v8  ;;  %2376 = vmatpush3.msra.mxu1 %v2986_v8  ;;  %v1788_v46 = vld [vmem:[%s4753_s0 + $0x1f8] sm:$0xff]  ;;  %v1789_v48 = vld [vmem:[%s4753_s0 + $0x200] sm:$0xff]  ;;  %v1790_v50 = vld [vmem:[%s4753_s0 + $0x208] sm:$0xff] }
  0x11   :  { %2198 = vmatprep.subr.mxu0 %v2900_v0  ;;  %2377 = vmatprep.subr.mxu1 %v2900_v0  ;;  %v29_v47 = vld [vmem:[%s4753_s0 + $0x78] sm:$0xff]  ;;  %v30_v49 = vld [vmem:[%s4753_s0 + $0x80] sm:$0xff]  ;;  %v31_v51 = vld [vmem:[%s4753_s0 + $0x88] sm:$0xff] }
  0x12   :  { %2199 = vmatpush3.msra.mxu0 %v2995_v9  ;;  %2378 = vmatpush3.msra.mxu1 %v2995_v9  ;;  %v1791_v52 = vld [vmem:[%s4753_s0 + $0x210] sm:$0xff]  ;;  %v1792_v54 = vld [vmem:[%s4753_s0 + $0x218] sm:$0xff]  ;;  %v1793_v56 = vld [vmem:[%s4753_s0 + $0x220] sm:$0xff] }
  0x13   :  { %2200 = vmatprep.subr.mxu0 %v2900_v0  ;;  %2379 = vmatprep.subr.mxu1 %v2900_v0  ;;  %v32_v53 = vld [vmem:[%s4753_s0 + $0x90] sm:$0xff]  ;;  %v33_v55 = vld [vmem:[%s4753_s0 + $0x98] sm:$0xff]  ;;  %v34_v57 = vld [vmem:[%s4753_s0 + $0xa0] sm:$0xff] }
  0x14   :  { %2201 = vmatpush3.msra.mxu0 %v3004_v10  ;;  %2380 = vmatpush3.msra.mxu1 %v3004_v10  ;;  %v1794_v58 = vld [vmem:[%s4753_s0 + $0x228] sm:$0xff]  ;;  %v1795_v60 = vld [vmem:[%s4753_s0 + $0x230] sm:$0xff]  ;;  %v1796_v62 = vld [vmem:[%s4753_s0 + $0x238] sm:$0xff] }
  0x15   :  { %2202 = vmatprep.subr.mxu0 %v2900_v0  ;;  %2381 = vmatprep.subr.mxu1 %v2900_v0  ;;  %v35_v59 = vld [vmem:[%s4753_s0 + $0xa8] sm:$0xff]  ;;  %v36_v61 = vld [vmem:[%s4753_s0 + $0xb0] sm:$0xff]  ;;  %v37_v63 = vld [vmem:[%s4753_s0 + $0xb8] sm:$0xff] }
  0x16   :  { %2203 = vmatpush3.msra.mxu0 %v3013_v11  ;;  %2382 = vmatpush3.msra.mxu1 %v3013_v11 }
  0x17   :  { %2204 = vmatprep.subr.mxu0 %v2900_v0  ;;  %2383 = vmatprep.subr.mxu1 %v2900_v0 }
  0x18   :  { %2205 = vmatpush3.msra.mxu0 %v3022_v12  ;;  %2384 = vmatpush3.msra.mxu1 %v3022_v12 }
  0x19   :  { %2206 = vmatprep.subr.mxu0 %v2900_v0  ;;  %2385 = vmatprep.subr.mxu1 %v2900_v0 }
  0x1a   :  { %2207 = vmatpush3.msra.mxu0 %v3031_v13  ;;  %2386 = vmatpush3.msra.mxu1 %v3031_v13 }
  0x1b   :  { %2208 = vmatprep.subr.mxu0 %v2900_v0  ;;  %2387 = vmatprep.subr.mxu1 %v2900_v0 }
  0x1c   :  { %2209 = vmatpush3.msra.mxu0 %v3040_v14  ;;  %2388 = vmatpush3.msra.mxu1 %v3040_v14 }
  0x1d   :  { %2210 = vmatprep.subr.mxu0 %v2900_v0  ;;  %2389 = vmatprep.subr.mxu1 %v2900_v0 }
  0x1e   :  { %2211 = vmatpush3.msra.mxu0 %v3049_v15  ;;  %2390 = vmatpush3.msra.mxu1 %v3049_v15 }
  0x1f   :  { %2212 = vmatprep.subr.mxu0 %v2900_v0  ;;  %2214 = vmatprep.mubr.msk.f32.mxu0 %vm2901_vm0, %v2900_v0 }
  0x20   :  { %2213 = vmatpush3.msra.mxu0 %v3058_v16  ;;  %2391 = vmatprep.subr.mxu1 %v2900_v0 }
  0x21   :  { %2215 = vmatmul.mubr.f32.vlgmr.msra.gmra.mxu0 %v14_v17  ;;  %2392 = vmatpush3.msra.mxu1 %v3058_v16  ;;  %v1805_v17 = vld [vmem:[%s4753_s0 + $0x280] sm:$0xff] }
  0x22   :  { %2393 = vmatprep.mubr.msk.f32.mxu1 %vm2901_vm0, %v2900_v0  ;;  %2540 = vmatprep.subr.mxu0 %v2900_v0 }
  0x23   :  { %2394 = vmatmul.mubr.f32.vlgmr.msra.gmra.mxu1 %v1774_v18  ;;  %2541 = vmatpush3.msra.mxu0 %v2926_v1  ;;  %v46_v18 = vld [vmem:[%s4753_s0 + $0x100] sm:$0xff] }
  0x24   :  { %2719 = vmatprep.subr.mxu1 %v2900_v0  ;;  %2217 = vmatprep.mubr.msk.f32.mxu0 %vm2901_vm0, %v2900_v0 }
  0x25   :  { %2720 = vmatpush3.msra.mxu1 %v2926_v1  ;;  %2218 = vmatmul.mubr.f32.gmra.mxu0 %v15_v19  ;;  %v1797_v1 = vld [vmem:[%s4753_s0 + $0x240] sm:$0xff]  ;;  %v1806_v19 = vld [vmem:[%s4753_s0 + $0x288] sm:$0xff] }
  0x26   :  { %2396 = vmatprep.mubr.msk.f32.mxu1 %vm2901_vm0, %v2900_v0  ;;  %2220 = vmatprep.mubr.msk.f32.mxu0 %vm2901_vm0, %v2900_v0 }
  0x27   :  { %2397 = vmatmul.mubr.f32.gmra.mxu1 %v1775_v20  ;;  %2542 = vmatprep.subr.mxu0 %v2900_v0  ;;  %v47_v20 = vld [vmem:[%s4753_s0 + $0x108] sm:$0xff] }
  0x28   :  { %2399 = vmatprep.mubr.msk.f32.mxu1 %vm2901_vm0, %v2900_v0  ;;  %2543 = vmatpush3.msra.mxu0 %v2932_v2 }
  0x29   :  { %2221 = vmatmul.mubr.f32.gmra.mxu0 %v16_v21  ;;  %2721 = vmatprep.subr.mxu1 %v2900_v0  ;;  %v1807_v21 = vld [vmem:[%s4753_s0 + $0x290] sm:$0xff] }
  0x2a   :  { %2223 = vmatprep.mubr.msk.f32.mxu0 %vm2901_vm0, %v2900_v0  ;;  %2722 = vmatpush3.msra.mxu1 %v2932_v2  ;;  %v38_v2 = vld [vmem:[%s4753_s0 + $0xc0] sm:$0xff] }
  0x2b   :  { %2400 = vmatmul.mubr.f32.gmra.mxu1 %v1776_v22  ;;  %2544 = vmatprep.subr.mxu0 %v2900_v0  ;;  %v48_v22 = vld [vmem:[%s4753_s0 + $0x110] sm:$0xff] }
  0x2c   :  { %2402 = vmatprep.mubr.msk.f32.mxu1 %vm2901_vm0, %v2900_v0  ;;  %2545 = vmatpush3.msra.mxu0 %v2941_v3 }
  0x2d   :  { %2224 = vmatmul.mubr.f32.gmra.mxu0 %v17_v23  ;;  %2723 = vmatprep.subr.mxu1 %v2900_v0  ;;  %v1808_v23 = vld [vmem:[%s4753_s0 + $0x298] sm:$0xff] }
  0x2e   :  { %2226 = vmatprep.mubr.msk.f32.mxu0 %vm2901_vm0, %v2900_v0  ;;  %2724 = vmatpush3.msra.mxu1 %v2941_v3  ;;  %v1798_v3 = vld [vmem:[%s4753_s0 + $0x248] sm:$0xff] }
  0x2f   :  { %2403 = vmatmul.mubr.f32.gmra.mxu1 %v1777_v24  ;;  %2546 = vmatprep.subr.mxu0 %v2900_v0  ;;  %v49_v24 = vld [vmem:[%s4753_s0 + $0x118] sm:$0xff] }
  0x30   :  { %2405 = vmatprep.mubr.msk.f32.mxu1 %vm2901_vm0, %v2900_v0  ;;  %2547 = vmatpush3.msra.mxu0 %v2950_v4 }
  0x31   :  { %2227 = vmatmul.mubr.f32.gmra.mxu0 %v18_v25  ;;  %2725 = vmatprep.subr.mxu1 %v2900_v0  ;;  %v1809_v25 = vld [vmem:[%s4753_s0 + $0x2a0] sm:$0xff] }
  0x32   :  { %2229 = vmatprep.mubr.msk.f32.mxu0 %vm2901_vm0, %v2900_v0  ;;  %2726 = vmatpush3.msra.mxu1 %v2950_v4  ;;  %v39_v4 = vld [vmem:[%s4753_s0 + $0xc8] sm:$0xff] }
  0x33   :  { %2406 = vmatmul.mubr.f32.gmra.mxu1 %v1778_v26  ;;  %2548 = vmatprep.subr.mxu0 %v2900_v0  ;;  %v50_v26 = vld [vmem:[%s4753_s0 + $0x120] sm:$0xff] }
  0x34   :  { %2408 = vmatprep.mubr.msk.f32.mxu1 %vm2901_vm0, %v2900_v0  ;;  %2549 = vmatpush3.msra.mxu0 %v2959_v5 }
  0x35   :  { %2230 = vmatmul.mubr.f32.gmra.mxu0 %v19_v27  ;;  %2727 = vmatprep.subr.mxu1 %v2900_v0  ;;  %v1810_v27 = vld [vmem:[%s4753_s0 + $0x2a8] sm:$0xff] }
  0x36   :  { %2232 = vmatprep.mubr.msk.f32.mxu0 %vm2901_vm0, %v2900_v0  ;;  %2728 = vmatpush3.msra.mxu1 %v2959_v5  ;;  %v1799_v5 = vld [vmem:[%s4753_s0 + $0x250] sm:$0xff] }
  0x37   :  { %2409 = vmatmul.mubr.f32.gmra.mxu1 %v1779_v28  ;;  %2550 = vmatprep.subr.mxu0 %v2900_v0  ;;  %v51_v28 = vld [vmem:[%s4753_s0 + $0x128] sm:$0xff] }
  0x38   :  { %2411 = vmatprep.mubr.msk.f32.mxu1 %vm2901_vm0, %v2900_v0  ;;  %2551 = vmatpush3.msra.mxu0 %v2968_v6 }
  0x39   :  { %2233 = vmatmul.mubr.f32.gmra.mxu0 %v20_v29  ;;  %2729 = vmatprep.subr.mxu1 %v2900_v0  ;;  %v1811_v29 = vld [vmem:[%s4753_s0 + $0x2b0] sm:$0xff] }
  0x3a   :  { %2235 = vmatprep.mubr.msk.f32.mxu0 %vm2901_vm0, %v2900_v0  ;;  %2730 = vmatpush3.msra.mxu1 %v2968_v6  ;;  %v40_v6 = vld [vmem:[%s4753_s0 + $0xd0] sm:$0xff] }
  0x3b   :  { %2412 = vmatmul.mubr.f32.gmra.mxu1 %v1780_v30  ;;  %2552 = vmatprep.subr.mxu0 %v2900_v0  ;;  %v52_v30 = vld [vmem:[%s4753_s0 + $0x130] sm:$0xff] }
  0x3c   :  { %2414 = vmatprep.mubr.msk.f32.mxu1 %vm2901_vm0, %v2900_v0  ;;  %2553 = vmatpush3.msra.mxu0 %v2977_v7 }
  0x3d   :  { %2236 = vmatmul.mubr.f32.gmra.mxu0 %v21_v31  ;;  %2731 = vmatprep.subr.mxu1 %v2900_v0  ;;  %v1812_v31 = vld [vmem:[%s4753_s0 + $0x2b8] sm:$0xff] }
  0x3e   :  { %2238 = vmatprep.mubr.msk.f32.mxu0 %vm2901_vm0, %v2900_v0  ;;  %2732 = vmatpush3.msra.mxu1 %v2977_v7  ;;  %v1800_v7 = vld [vmem:[%s4753_s0 + $0x258] sm:$0xff] }
  0x3f   :  { %2415 = vmatmul.mubr.f32.gmra.mxu1 %v1781_v32  ;;  %2554 = vmatprep.subr.mxu0 %v2900_v0  ;;  %v53_v32 = vld [vmem:[%s4753_s0 + $0x138] sm:$0xff] }
  0x40   :  { %2417 = vmatprep.mubr.msk.f32.mxu1 %vm2901_vm0, %v2900_v0  ;;  %2555 = vmatpush3.msra.mxu0 %v2986_v8 }
  0x41   :  { %2239 = vmatmul.mubr.f32.gmra.mxu0 %v22_v33  ;;  %2733 = vmatprep.subr.mxu1 %v2900_v0  ;;  %v1813_v33 = vld [vmem:[%s4753_s0 + $0x2c0] sm:$0xff] }
  0x42   :  { %2241 = vmatprep.mubr.msk.f32.mxu0 %vm2901_vm0, %v2900_v0  ;;  %2734 = vmatpush3.msra.mxu1 %v2986_v8  ;;  %v41_v8 = vld [vmem:[%s4753_s0 + $0xd8] sm:$0xff] }
  0x43   :  { %2418 = vmatmul.mubr.f32.gmra.mxu1 %v1782_v34  ;;  %2556 = vmatprep.subr.mxu0 %v2900_v0  ;;  %v54_v34 = vld [vmem:[%s4753_s0 + $0x140] sm:$0xff] }
  0x44   :  { %2420 = vmatprep.mubr.msk.f32.mxu1 %vm2901_vm0, %v2900_v0  ;;  %2557 = vmatpush3.msra.mxu0 %v2995_v9 }
  0x45   :  { %2242 = vmatmul.mubr.f32.gmra.mxu0 %v23_v35  ;;  %2735 = vmatprep.subr.mxu1 %v2900_v0  ;;  %v1814_v35 = vld [vmem:[%s4753_s0 + $0x2c8] sm:$0xff] }
  0x46   :  { %2244 = vmatprep.mubr.msk.f32.mxu0 %vm2901_vm0, %v2900_v0  ;;  %2736 = vmatpush3.msra.mxu1 %v2995_v9  ;;  %v1801_v9 = vld [vmem:[%s4753_s0 + $0x260] sm:$0xff] }
  0x47   :  { %2421 = vmatmul.mubr.f32.gmra.mxu1 %v1783_v36  ;;  %2558 = vmatprep.subr.mxu0 %v2900_v0  ;;  %v55_v36 = vld [vmem:[%s4753_s0 + $0x148] sm:$0xff] }
  0x48   :  { %2423 = vmatprep.mubr.msk.f32.mxu1 %vm2901_vm0, %v2900_v0  ;;  %2559 = vmatpush3.msra.mxu0 %v3004_v10 }
  0x49   :  { %2245 = vmatmul.mubr.f32.gmra.mxu0 %v24_v37  ;;  %2737 = vmatprep.subr.mxu1 %v2900_v0  ;;  %v1815_v37 = vld [vmem:[%s4753_s0 + $0x2d0] sm:$0xff] }
  0x4a   :  { %2247 = vmatprep.mubr.msk.f32.mxu0 %vm2901_vm0, %v2900_v0  ;;  %2738 = vmatpush3.msra.mxu1 %v3004_v10  ;;  %v42_v10 = vld [vmem:[%s4753_s0 + $0xe0] sm:$0xff] }
  0x4b   :  { %2424 = vmatmul.mubr.f32.gmra.mxu1 %v1784_v38  ;;  %2560 = vmatprep.subr.mxu0 %v2900_v0  ;;  %v56_v38 = vld [vmem:[%s4753_s0 + $0x150] sm:$0xff] }
  0x4c   :  { %2426 = vmatprep.mubr.msk.f32.mxu1 %vm2901_vm0, %v2900_v0  ;;  %2561 = vmatpush3.msra.mxu0 %v3013_v11 }
  0x4d   :  { %2248 = vmatmul.mubr.f32.gmra.mxu0 %v25_v39  ;;  %2739 = vmatprep.subr.mxu1 %v2900_v0  ;;  %v1816_v39 = vld [vmem:[%s4753_s0 + $0x2d8] sm:$0xff] }
  0x4e   :  { %2250 = vmatprep.mubr.msk.f32.mxu0 %vm2901_vm0, %v2900_v0  ;;  %2740 = vmatpush3.msra.mxu1 %v3013_v11  ;;  %v1802_v11 = vld [vmem:[%s4753_s0 + $0x268] sm:$0xff] }
  0x4f   :  { %2427 = vmatmul.mubr.f32.gmra.mxu1 %v1785_v40  ;;  %2562 = vmatprep.subr.mxu0 %v2900_v0  ;;  %v57_v40 = vld [vmem:[%s4753_s0 + $0x158] sm:$0xff] }
  0x50   :  { %2429 = vmatprep.mubr.msk.f32.mxu1 %vm2901_vm0, %v2900_v0  ;;  %2563 = vmatpush3.msra.mxu0 %v3022_v12 }
  0x51   :  { %2251 = vmatmul.mubr.f32.gmra.mxu0 %v26_v41  ;;  %2741 = vmatprep.subr.mxu1 %v2900_v0  ;;  %v1817_v41 = vld [vmem:[%s4753_s0 + $0x2e0] sm:$0xff] }
  0x52   :  { %2253 = vmatprep.mubr.msk.f32.mxu0 %vm2901_vm0, %v2900_v0  ;;  %2742 = vmatpush3.msra.mxu1 %v3022_v12  ;;  %v43_v12 = vld [vmem:[%s4753_s0 + $0xe8] sm:$0xff] }
  0x53   :  { %2430 = vmatmul.mubr.f32.gmra.mxu1 %v1786_v42  ;;  %2564 = vmatprep.subr.mxu0 %v2900_v0  ;;  %v58_v42 = vld [vmem:[%s4753_s0 + $0x160] sm:$0xff] }
  0x54   :  { %2432 = vmatprep.mubr.msk.f32.mxu1 %vm2901_vm0, %v2900_v0  ;;  %2565 = vmatpush3.msra.mxu0 %v3031_v13 }
  0x55   :  { %2254 = vmatmul.mubr.f32.gmra.mxu0 %v27_v43  ;;  %2743 = vmatprep.subr.mxu1 %v2900_v0  ;;  %v1818_v43 = vld [vmem:[%s4753_s0 + $0x2e8] sm:$0xff] }
  0x56   :  { %2256 = vmatprep.mubr.msk.f32.mxu0 %vm2901_vm0, %v2900_v0  ;;  %2744 = vmatpush3.msra.mxu1 %v3031_v13  ;;  %v1803_v13 = vld [vmem:[%s4753_s0 + $0x270] sm:$0xff] }
  0x57   :  { %2433 = vmatmul.mubr.f32.gmra.mxu1 %v1787_v44  ;;  %2566 = vmatprep.subr.mxu0 %v2900_v0  ;;  %v59_v44 = vld [vmem:[%s4753_s0 + $0x168] sm:$0xff] }
  0x58   :  { %2435 = vmatprep.mubr.msk.f32.mxu1 %vm2901_vm0, %v2900_v0  ;;  %2567 = vmatpush3.msra.mxu0 %v3040_v14 }
  0x59   :  { %2257 = vmatmul.mubr.f32.gmra.mxu0 %v28_v45  ;;  %2745 = vmatprep.subr.mxu1 %v2900_v0  ;;  %v1819_v45 = vld [vmem:[%s4753_s0 + $0x2f0] sm:$0xff] }
  0x5a   :  { %2259 = vmatprep.mubr.msk.f32.mxu0 %vm2901_vm0, %v2900_v0  ;;  %2746 = vmatpush3.msra.mxu1 %v3040_v14  ;;  %v44_v14 = vld [vmem:[%s4753_s0 + $0xf0] sm:$0xff] }
  0x5b   :  { %2436 = vmatmul.mubr.f32.gmra.mxu1 %v1788_v46  ;;  %2568 = vmatprep.subr.mxu0 %v2900_v0  ;;  %v60_v46 = vld [vmem:[%s4753_s0 + $0x170] sm:$0xff] }
  0x5c   :  { %2438 = vmatprep.mubr.msk.f32.mxu1 %vm2901_vm0, %v2900_v0  ;;  %2569 = vmatpush3.msra.mxu0 %v3049_v15 }
  0x5d   :  { %2260 = vmatmul.mubr.f32.gmra.mxu0 %v29_v47  ;;  %2747 = vmatprep.subr.mxu1 %v2900_v0  ;;  %v1820_v47 = vld [vmem:[%s4753_s0 + $0x2f8] sm:$0xff] }
  0x5e   :  { %2262 = vmatprep.mubr.msk.f32.mxu0 %vm2901_vm0, %v2900_v0  ;;  %2748 = vmatpush3.msra.mxu1 %v3049_v15  ;;  %v1804_v15 = vld [vmem:[%s4753_s0 + $0x278] sm:$0xff] }
  0x5f   :  { %2439 = vmatmul.mubr.f32.gmra.mxu1 %v1789_v48  ;;  %2570 = vmatprep.subr.mxu0 %v2900_v0  ;;  %v61_v48 = vld [vmem:[%s4753_s0 + $0x178] sm:$0xff] }
  0x60   :  { %2441 = vmatprep.mubr.msk.f32.mxu1 %vm2901_vm0, %v2900_v0  ;;  %2571 = vmatpush3.msra.mxu0 %v3058_v16 }
  0x61   :  { %2263 = vmatmul.mubr.f32.gmra.mxu0 %v30_v49  ;;  %2749 = vmatprep.subr.mxu1 %v2900_v0  ;;  %v1821_v49 = vld [vmem:[%s4753_s0 + $0x300] sm:$0xff] }
  0x62   :  { %2265 = vmatprep.mubr.msk.f32.mxu0 %vm2901_vm0, %v2900_v0  ;;  %2750 = vmatpush3.msra.mxu1 %v3058_v16  ;;  %v45_v16 = vld [vmem:[%s4753_s0 + $0xf8] sm:$0xff] }
  0x63   :  { %2442 = vmatmul.mubr.f32.gmra.mxu1 %v1790_v50  ;;  %v62_v50 = vld [vmem:[%s4753_s0 + $0x180] sm:$0xff] }
  0x64   :  { %2444 = vmatprep.mubr.msk.f32.mxu1 %vm2901_vm0, %v2900_v0 }
  0x65   :  { %2266 = vmatmul.mubr.f32.gmra.mxu0 %v31_v51  ;;  %v1822_v51 = vld [vmem:[%s4753_s0 + $0x308] sm:$0xff] }
  0x66   :  { %2268 = vmatprep.mubr.msk.f32.mxu0 %vm2901_vm0, %v2900_v0 }
  0x67   :  { %2445 = vmatmul.mubr.f32.gmra.mxu1 %v1791_v52 }
  0x68   :  { %2447 = vmatprep.mubr.msk.f32.mxu1 %vm2901_vm0, %v2900_v0 }
  0x69   :  { %2269 = vmatmul.mubr.f32.gmra.mxu0 %v32_v53  ;;  %v1823_v53 = vld [vmem:[%s4753_s0 + $0x310] sm:$0xff] }
  0x6a   :  { %2271 = vmatprep.mubr.msk.f32.mxu0 %vm2901_vm0, %v2900_v0 }
  0x6b   :  { %2448 = vmatmul.mubr.f32.gmra.mxu1 %v1792_v54 }
  0x6c   :  { %2450 = vmatprep.mubr.msk.f32.mxu1 %vm2901_vm0, %v2900_v0 }
  0x6d   :  { %2272 = vmatmul.mubr.f32.gmra.mxu0 %v33_v55 }
  0x6e   :  { %2274 = vmatprep.mubr.msk.f32.mxu0 %vm2901_vm0, %v2900_v0 }
  0x6f   :  { %2451 = vmatmul.mubr.f32.gmra.mxu1 %v1793_v56 }
  0x70   :  { %2453 = vmatprep.mubr.msk.f32.mxu1 %vm2901_vm0, %v2900_v0 }
  0x71   :  { %2275 = vmatmul.mubr.f32.gmra.mxu0 %v34_v57  ;;  %v1872_v57 = vld [vmem:[%s4753_s0 + $0x498] sm:$0xff] }
  0x72   :  { %2277 = vmatprep.mubr.msk.f32.mxu0 %vm2901_vm0, %v2900_v0 }
  0x73   :  { %2454 = vmatmul.mubr.f32.gmra.mxu1 %v1794_v58 }
  0x74   :  { %2456 = vmatprep.mubr.msk.f32.mxu1 %vm2901_vm0, %v2900_v0 }
  0x75   :  { %2278 = vmatmul.mubr.f32.gmra.mxu0 %v35_v59 }
  0x76   :  { %2280 = vmatprep.mubr.msk.f32.mxu0 %vm2901_vm0, %v2900_v0 }
  0x77   :  { %2457 = vmatmul.mubr.f32.gmra.mxu1 %v1795_v60  ;;  %v1824_v60 = vld [vmem:[%s4753_s0 + $0x318] sm:$0xff] }
  0x78   :  { %2459 = vmatprep.mubr.msk.f32.mxu1 %vm2901_vm0, %v2900_v0 }
  0x79   :  { %2281 = vmatmul.mubr.f32.gmra.mxu0 %v36_v61 }
  0x7a   :  { %2283 = vmatprep.mubr.msk.f32.mxu0 %vm2901_vm0, %v2900_v0 }
  0x7b   :  { %2460 = vmatmul.mubr.f32.gmra.mxu1 %v1796_v62 }
  0x7c   :  { %2462 = vmatprep.mubr.msk.f32.mxu1 %vm2901_vm0, %v2900_v0 }
  0x7d   :  { %2284 = vmatmul.mubr.f32.gmra.mxu0 %v37_v63 }
  0x7e   :  { %2286 = vmatprep.mubr.msk.f32.mxu0 %vm2901_vm0, %v2900_v0 }
  0x7f   :  { %2463 = vmatmul.mubr.f32.gmra.mxu1 %v1797_v1  ;;  %v1873_v1 = vld [vmem:[%s4753_s0 + $0x4a0] sm:$0xff] }
  0x80   :  { %2465 = vmatprep.mubr.msk.f32.mxu1 %vm2901_vm0, %v2900_v0 }
  0x81   :  { %2287 = vmatmul.mubr.f32.gmra.mxu0 %v38_v2 }
  0x82   :  { %2289 = vmatprep.mubr.msk.f32.mxu0 %vm2901_vm0, %v2900_v0 }
  0x83   :  { %2466 = vmatmul.mubr.f32.gmra.mxu1 %v1798_v3 }
  0x84   :  { %2468 = vmatprep.mubr.msk.f32.mxu1 %vm2901_vm0, %v2900_v0 }
  0x85   :  { %2290 = vmatmul.mubr.f32.gmra.mxu0 %v39_v4  ;;  %v1825_v4 = vld [vmem:[%s4753_s0 + $0x320] sm:$0xff] }
  0x86   :  { %2292 = vmatprep.mubr.msk.f32.mxu0 %vm2901_vm0, %v2900_v0 }
  0x87   :  { %2469 = vmatmul.mubr.f32.gmra.mxu1 %v1799_v5 }
  0x88   :  { %2471 = vmatprep.mubr.msk.f32.mxu1 %vm2901_vm0, %v2900_v0 }
  0x89   :  { %2293 = vmatmul.mubr.f32.gmra.mxu0 %v40_v6 }
  0x8a   :  { %2295 = vmatprep.mubr.msk.f32.mxu0 %vm2901_vm0, %v2900_v0 }
  0x8b   :  { %2472 = vmatmul.mubr.f32.gmra.mxu1 %v1800_v7 }
  0x8c   :  { %2474 = vmatprep.mubr.msk.f32.mxu1 %vm2901_vm0, %v2900_v0 }
  0x8d   :  { %2296 = vmatmul.mubr.f32.gmra.mxu0 %v41_v8  ;;  %v1874_v8 = vld [vmem:[%s4753_s0 + $0x4a8] sm:$0xff] }
  0x8e   :  { %2298 = vmatprep.mubr.msk.f32.mxu0 %vm2901_vm0, %v2900_v0 }
  0x8f   :  { %2475 = vmatmul.mubr.f32.gmra.mxu1 %v1801_v9 }
  0x90   :  { %2477 = vmatprep.mubr.msk.f32.mxu1 %vm2901_vm0, %v2900_v0 }
  0x91   :  { %2299 = vmatmul.mubr.f32.gmra.mxu0 %v42_v10 }
  0x92   :  { %2301 = vmatprep.mubr.msk.f32.mxu0 %vm2901_vm0, %v2900_v0 }
  0x93   :  { %2478 = vmatmul.mubr.f32.gmra.mxu1 %v1802_v11  ;;  %v1826_v11 = vld [vmem:[%s4753_s0 + $0x328] sm:$0xff] }
  0x94   :  { %2480 = vmatprep.mubr.msk.f32.mxu1 %vm2901_vm0, %v2900_v0 }
  0x95   :  { %2302 = vmatmul.mubr.f32.gmra.mxu0 %v43_v12 }
  0x96   :  { %2304 = vmatprep.mubr.msk.f32.mxu0 %vm2901_vm0, %v2900_v0 }
  0x97   :  { %2481 = vmatmul.mubr.f32.gmra.mxu1 %v1803_v13 }
  0x98   :  { %2483 = vmatprep.mubr.msk.f32.mxu1 %vm2901_vm0, %v2900_v0 }
  0x99   :  { %2305 = vmatmul.mubr.f32.gmra.mxu0 %v44_v14 }
  0x9a   :  { %2307 = vmatprep.mubr.msk.f32.mxu0 %vm2901_vm0, %v2900_v0 }
  0x9b   :  { %2484 = vmatmul.mubr.f32.gmra.mxu1 %v1804_v15  ;;  %v1875_v15 = vld [vmem:[%s4753_s0 + $0x4b0] sm:$0xff] }
  0x9c   :  { %2486 = vmatprep.mubr.msk.f32.mxu1 %vm2901_vm0, %v2900_v0 }
  0x9d   :  { %2308 = vmatmul.mubr.f32.gmra.mxu0 %v45_v16 }
  0x9e   :  { %2310 = vmatprep.mubr.msk.f32.mxu0 %vm2901_vm0, %v2900_v0 }
  0x9f   :  { %2487 = vmatmul.mubr.f32.gmra.mxu1 %v1805_v17 }
  0xa0   :  { %2489 = vmatprep.mubr.msk.f32.mxu1 %vm2901_vm0, %v2900_v0 }
  0xa1   :  { %2311 = vmatmul.mubr.f32.gmra.mxu0 %v46_v18  ;;  %v1827_v18 = vld [vmem:[%s4753_s0 + $0x330] sm:$0xff] }
  0xa2   :  { %2313 = vmatprep.mubr.msk.f32.mxu0 %vm2901_vm0, %v2900_v0 }
  0xa3   :  { %2490 = vmatmul.mubr.f32.gmra.mxu1 %v1806_v19 }
  0xa4   :  { %2492 = vmatprep.mubr.msk.f32.mxu1 %vm2901_vm0, %v2900_v0 }
  0xa5   :  { %2314 = vmatmul.mubr.f32.gmra.mxu0 %v47_v20 }
  0xa6   :  { %2316 = vmatprep.mubr.msk.f32.mxu0 %vm2901_vm0, %v2900_v0 }
  0xa7   :  { %2493 = vmatmul.mubr.f32.gmra.mxu1 %v1807_v21 }
  0xa8   :  { %2495 = vmatprep.mubr.msk.f32.mxu1 %vm2901_vm0, %v2900_v0 }
  0xa9   :  { %2317 = vmatmul.mubr.f32.gmra.mxu0 %v48_v22  ;;  %v1876_v22 = vld [vmem:[%s4753_s0 + $0x4b8] sm:$0xff] }
  0xaa   :  { %2319 = vmatprep.mubr.msk.f32.mxu0 %vm2901_vm0, %v2900_v0 }
  0xab   :  { %2496 = vmatmul.mubr.f32.gmra.mxu1 %v1808_v23 }
  0xac   :  { %2498 = vmatprep.mubr.msk.f32.mxu1 %vm2901_vm0, %v2900_v0 }
  0xad   :  { %2320 = vmatmul.mubr.f32.gmra.mxu0 %v49_v24 }
  0xae   :  { %2322 = vmatprep.mubr.msk.f32.mxu0 %vm2901_vm0, %v2900_v0 }
  0xaf   :  { %2499 = vmatmul.mubr.f32.gmra.mxu1 %v1809_v25  ;;  %v1828_v25 = vld [vmem:[%s4753_s0 + $0x338] sm:$0xff] }
  0xb0   :  { %2501 = vmatprep.mubr.msk.f32.mxu1 %vm2901_vm0, %v2900_v0 }
  0xb1   :  { %2323 = vmatmul.mubr.f32.gmra.mxu0 %v50_v26 }
  0xb2   :  { %2325 = vmatprep.mubr.msk.f32.mxu0 %vm2901_vm0, %v2900_v0 }
  0xb3   :  { %2502 = vmatmul.mubr.f32.gmra.mxu1 %v1810_v27 }
  0xb4   :  { %2504 = vmatprep.mubr.msk.f32.mxu1 %vm2901_vm0, %v2900_v0 }
  0xb5   :  { %2326 = vmatmul.mubr.f32.gmra.mxu0 %v51_v28 }
  0xb6   :  { %2328 = vmatprep.mubr.msk.f32.mxu0 %vm2901_vm0, %v2900_v0 }
  0xb7   :  { %2505 = vmatmul.mubr.f32.gmra.mxu1 %v1811_v29  ;;  %v1877_v29 = vld [vmem:[%s4753_s0 + $0x4c0] sm:$0xff] }
  0xb8   :  { %2507 = vmatprep.mubr.msk.f32.mxu1 %vm2901_vm0, %v2900_v0 }
  0xb9   :  { %2329 = vmatmul.mubr.f32.gmra.mxu0 %v52_v30 }
  0xba   :  { %2331 = vmatprep.mubr.msk.f32.mxu0 %vm2901_vm0, %v2900_v0 }
  0xbb   :  { %2508 = vmatmul.mubr.f32.gmra.mxu1 %v1812_v31 }
  0xbc   :  { %2510 = vmatprep.mubr.msk.f32.mxu1 %vm2901_vm0, %v2900_v0 }
  0xbd   :  { %2332 = vmatmul.mubr.f32.gmra.mxu0 %v53_v32  ;;  %v1829_v32 = vld [vmem:[%s4753_s0 + $0x340] sm:$0xff] }
  0xbe   :  { %2334 = vmatprep.mubr.msk.f32.mxu0 %vm2901_vm0, %v2900_v0 }
  0xbf   :  { %2511 = vmatmul.mubr.f32.gmra.mxu1 %v1813_v33 }
  0xc0   :  { %2513 = vmatprep.mubr.msk.f32.mxu1 %vm2901_vm0, %v2900_v0 }
  0xc1   :  { %2335 = vmatmul.mubr.f32.gmra.mxu0 %v54_v34 }
  0xc2   :  { %2337 = vmatprep.mubr.msk.f32.mxu0 %vm2901_vm0, %v2900_v0 }
  0xc3   :  { %2514 = vmatmul.mubr.f32.gmra.mxu1 %v1814_v35 }
  0xc4   :  { %2516 = vmatprep.mubr.msk.f32.mxu1 %vm2901_vm0, %v2900_v0 }
  0xc5   :  { %2338 = vmatmul.mubr.f32.gmra.mxu0 %v55_v36  ;;  %v1878_v36 = vld [vmem:[%s4753_s0 + $0x4c8] sm:$0xff] }
  0xc6   :  { %2340 = vmatprep.mubr.msk.f32.mxu0 %vm2901_vm0, %v2900_v0 }
  0xc7   :  { %2517 = vmatmul.mubr.f32.gmra.mxu1 %v1815_v37 }
  0xc8   :  { %2519 = vmatprep.mubr.msk.f32.mxu1 %vm2901_vm0, %v2900_v0 }
  0xc9   :  { %2341 = vmatmul.mubr.f32.gmra.mxu0 %v56_v38 }
  0xca   :  { %2343 = vmatprep.mubr.msk.f32.mxu0 %vm2901_vm0, %v2900_v0 }
  0xcb   :  { %2520 = vmatmul.mubr.f32.gmra.mxu1 %v1816_v39  ;;  %v1830_v39 = vld [vmem:[%s4753_s0 + $0x348] sm:$0xff] }
  0xcc   :  { %2522 = vmatprep.mubr.msk.f32.mxu1 %vm2901_vm0, %v2900_v0 }
  0xcd   :  { %2344 = vmatmul.mubr.f32.gmra.mxu0 %v57_v40 }
  0xce   :  { %2346 = vmatprep.mubr.msk.f32.mxu0 %vm2901_vm0, %v2900_v0 }
  0xcf   :  { %2523 = vmatmul.mubr.f32.gmra.mxu1 %v1817_v41 }
  0xd0   :  { %2525 = vmatprep.mubr.msk.f32.mxu1 %vm2901_vm0, %v2900_v0 }
  0xd1   :  { %2347 = vmatmul.mubr.f32.gmra.mxu0 %v58_v42 }
  0xd2   :  { %2349 = vmatprep.mubr.msk.f32.mxu0 %vm2901_vm0, %v2900_v0 }
  0xd3   :  { %2526 = vmatmul.mubr.f32.gmra.mxu1 %v1818_v43  ;;  %v1879_v43 = vld [vmem:[%s4753_s0 + $0x4d0] sm:$0xff] }
  0xd4   :  { %2528 = vmatprep.mubr.msk.f32.mxu1 %vm2901_vm0, %v2900_v0 }
  0xd5   :  { %2350 = vmatmul.mubr.f32.gmra.mxu0 %v59_v44 }
  0xd6   :  { %2352 = vmatprep.mubr.msk.f32.mxu0 %vm2901_vm0, %v2900_v0 }
  0xd7   :  { %2529 = vmatmul.mubr.f32.gmra.mxu1 %v1819_v45 }
  0xd8   :  { %2531 = vmatprep.mubr.msk.f32.mxu1 %vm2901_vm0, %v2900_v0 }
  0xd9   :  { %2353 = vmatmul.mubr.f32.gmra.mxu0 %v60_v46  ;;  %v1831_v46 = vld [vmem:[%s4753_s0 + $0x350] sm:$0xff] }
  0xda   :  { %2355 = vmatprep.mubr.msk.f32.mxu0 %vm2901_vm0, %v2900_v0 }
  0xdb   :  { %2532 = vmatmul.mubr.f32.gmra.mxu1 %v1820_v47 }
  0xdc   :  { %2534 = vmatprep.mubr.msk.f32.mxu1 %vm2901_vm0, %v2900_v0 }
  0xdd   :  { %2356 = vmatmul.mubr.f32.gmra.mxu0 %v61_v48 }
  0xde   :  { %2358 = vmatprep.mubr.msk.f32.mxu0 %vm2901_vm0, %v2900_v0 }
  0xdf   :  { %2535 = vmatmul.mubr.f32.gmra.mxu1 %v1821_v49 }
  0xe0   :  { %2537 = vmatprep.mubr.msk.f32.mxu1 %vm2901_vm0, %v2900_v0 }
  0xe1   :  { %v3620_v52 = vpop.f32.mrf.mxu0  ;;  %2359 = vmatmul.mubr.f32.gmra.mxu0 %v62_v50  ;;  %v1880_v50 = vld [vmem:[%s4753_s0 + $0x4d8] sm:$0xff] }
  0xe2   :  { %2572 = vmatprep.mubr.msk.f32.mxu0 %vm2901_vm0, %v2900_v0 }
  0xe3   :  { %v3627_v54 = vpop.f32.mrf.mxu1  ;;  %2538 = vmatmul.mubr.f32.gmra.mxu1 %v1822_v51  ;;  %v2216_v55 = vpop.f32.mrf.mxu0 }
  0xe4   :  { %2751 = vmatprep.mubr.msk.f32.mxu1 %vm2901_vm0, %v2900_v0  ;;  %v1832_v55 = vld [vmem:[%s4753_s0 + $0x358] sm:$0xff] }
  0xe5   :  { %v2395_v58 = vpop.f32.mrf.mxu1  ;;  %v3636_v59 = vpop.f32.mrf.mxu0  ;;  %2573 = vmatmul.mubr.f32.vlgmr.msra.gmra.mxu0 %v1823_v53 }
  0xe6   :  { %2575 = vmatprep.mubr.msk.f32.mxu0 %vm2901_vm0, %v2900_v0 }
  0xe7   :  { %v3643_v61 = vpop.f32.mrf.mxu1  ;;  %2752 = vmatmul.mubr.f32.vlgmr.msra.gmra.mxu1 %v1872_v57  ;;  %v2219_v62 = vpop.f32.mrf.mxu0 }
  0xe8   :  { %2754 = vmatprep.mubr.msk.f32.mxu1 %vm2901_vm0, %v2900_v0  ;;  %v1881_v62 = vld [vmem:[%s4753_s0 + $0x4e0] sm:$0xff] }
  0xe9   :  { %v2398_v2 = vpop.f32.mrf.mxu1  ;;  %v3652_v3 = vpop.f32.mrf.mxu0  ;;  %2576 = vmatmul.mubr.f32.gmra.mxu0 %v1824_v60 }
  0xea   :  { %2578 = vmatprep.mubr.msk.f32.mxu0 %vm2901_vm0, %v2900_v0 }
  0xeb   :  { %v3659_v5 = vpop.f32.mrf.mxu1  ;;  %2755 = vmatmul.mubr.f32.gmra.mxu1 %v1873_v1  ;;  %v2222_v6 = vpop.f32.mrf.mxu0 }
  0xec   :  { %2757 = vmatprep.mubr.msk.f32.mxu1 %vm2901_vm0, %v2900_v0 }
  0xed   :  { %v2401_v9 = vpop.f32.mrf.mxu1  ;;  %v3668_v10 = vpop.f32.mrf.mxu0  ;;  %2579 = vmatmul.mubr.f32.gmra.mxu0 %v1825_v4  ;;  %v1833_v4 = vld [vmem:[%s4753_s0 + $0x360] sm:$0xff] }
  0xee   :  { %2581 = vmatprep.mubr.msk.f32.mxu0 %vm2901_vm0, %v2900_v0 }
  0xef   :  { %v3675_v12 = vpop.f32.mrf.mxu1  ;;  %2758 = vmatmul.mubr.f32.gmra.mxu1 %v1874_v8  ;;  %v2225_v13 = vpop.f32.mrf.mxu0 }
  0xf0   :  { %2760 = vmatprep.mubr.msk.f32.mxu1 %vm2901_vm0, %v2900_v0 }
  0xf1   :  { %v2404_v16 = vpop.f32.mrf.mxu1  ;;  %v3684_v17 = vpop.f32.mrf.mxu0  ;;  %2582 = vmatmul.mubr.f32.gmra.mxu0 %v1826_v11  ;;  %v1882_v11 = vld [vmem:[%s4753_s0 + $0x4e8] sm:$0xff] }
  0xf2   :  { %2584 = vmatprep.mubr.msk.f32.mxu0 %vm2901_vm0, %v2900_v0  ;;  %v1834_v16 = vld [vmem:[%s4753_s0 + $0x368] sm:$0xff] }
  0xf3   :  { %v3691_v19 = vpop.f32.mrf.mxu1  ;;  %2761 = vmatmul.mubr.f32.gmra.mxu1 %v1875_v15  ;;  %v2228_v20 = vpop.f32.mrf.mxu0 }
  0xf4   :  { %2763 = vmatprep.mubr.msk.f32.mxu1 %vm2901_vm0, %v2900_v0 }
  0xf5   :  { %v2407_v23 = vpop.f32.mrf.mxu1  ;;  %v3700_v24 = vpop.f32.mrf.mxu0  ;;  %2585 = vmatmul.mubr.f32.gmra.mxu0 %v1827_v18 }
  0xf6   :  { %2587 = vmatprep.mubr.msk.f32.mxu0 %vm2901_vm0, %v2900_v0  ;;  %v1883_v23 = vld [vmem:[%s4753_s0 + $0x4f0] sm:$0xff] }
  0xf7   :  { %v3707_v26 = vpop.f32.mrf.mxu1  ;;  %2764 = vmatmul.mubr.f32.gmra.mxu1 %v1876_v22  ;;  %v2231_v27 = vpop.f32.mrf.mxu0 }
  0xf8   :  { %2766 = vmatprep.mubr.msk.f32.mxu1 %vm2901_vm0, %v2900_v0 }
  0xf9   :  { %v2410_v30 = vpop.f32.mrf.mxu1  ;;  %v3716_v31 = vpop.f32.mrf.mxu0  ;;  %2588 = vmatmul.mubr.f32.gmra.mxu0 %v1828_v25 }
  0xfa   :  { %2590 = vmatprep.mubr.msk.f32.mxu0 %vm2901_vm0, %v2900_v0 }
  0xfb   :  { %v3723_v33 = vpop.f32.mrf.mxu1  ;;  %2767 = vmatmul.mubr.f32.gmra.mxu1 %v1877_v29  ;;  %v2234_v34 = vpop.f32.mrf.mxu0  ;;  %v1835_v29 = vld [vmem:[%s4753_s0 + $0x370] sm:$0xff] }
  0xfc   :  { %2769 = vmatprep.mubr.msk.f32.mxu1 %vm2901_vm0, %v2900_v0 }
  0xfd   :  { %v2413_v37 = vpop.f32.mrf.mxu1  ;;  %v3732_v38 = vpop.f32.mrf.mxu0  ;;  %2591 = vmatmul.mubr.f32.gmra.mxu0 %v1829_v32 }
  0xfe   :  { %2593 = vmatprep.mubr.msk.f32.mxu0 %vm2901_vm0, %v2900_v0 }
  0xff   :  { %v3739_v40 = vpop.f32.mrf.mxu1  ;;  %2770 = vmatmul.mubr.f32.gmra.mxu1 %v1878_v36  ;;  %v2237_v41 = vpop.f32.mrf.mxu0  ;;  %v1884_v36 = vld [vmem:[%s4753_s0 + $0x4f8] sm:$0xff] }
 0x100   :  { %2772 = vmatprep.mubr.msk.f32.mxu1 %vm2901_vm0, %v2900_v0  ;;  %v1836_v41 = vld [vmem:[%s4753_s0 + $0x378] sm:$0xff] }
 0x101   :  { %v2416_v44 = vpop.f32.mrf.mxu1  ;;  %v3748_v45 = vpop.f32.mrf.mxu0  ;;  %2594 = vmatmul.mubr.f32.gmra.mxu0 %v1830_v39 }
 0x102   :  { %2596 = vmatprep.mubr.msk.f32.mxu0 %vm2901_vm0, %v2900_v0 }
 0x103   :  { %v3755_v47 = vpop.f32.mrf.mxu1  ;;  %2773 = vmatmul.mubr.f32.gmra.mxu1 %v1879_v43  ;;  %v2240_v48 = vpop.f32.mrf.mxu0 }
 0x104   :  { %2775 = vmatprep.mubr.msk.f32.mxu1 %vm2901_vm0, %v2900_v0  ;;  %v1885_v48 = vld [vmem:[%s4753_s0 + $0x500] sm:$0xff] }
 0x105   :  { %v2419_v51 = vpop.f32.mrf.mxu1  ;;  %v3764_v53 = vpop.f32.mrf.mxu0  ;;  %2597 = vmatmul.mubr.f32.gmra.mxu0 %v1831_v46 }
 0x106   :  { %2599 = vmatprep.mubr.msk.f32.mxu0 %vm2901_vm0, %v2900_v0 }
 0x107   :  { %v3771_v57 = vpop.f32.mrf.mxu1  ;;  %2776 = vmatmul.mubr.f32.gmra.mxu1 %v1880_v50  ;;  %v2243_v58 = vpop.f32.mrf.mxu0 }
 0x108   :  { %2778 = vmatprep.mubr.msk.f32.mxu1 %vm2901_vm0, %v2900_v0 }
 0x109   :  { %v2422_v1 = vpop.f32.mrf.mxu1  ;;  %v3780_v2 = vpop.f32.mrf.mxu0  ;;  %2600 = vmatmul.mubr.f32.gmra.mxu0 %v1832_v55  ;;  %v1837_v55 = vld [vmem:[%s4753_s0 + $0x380] sm:$0xff] }
 0x10a   :  { %2602 = vmatprep.mubr.msk.f32.mxu0 %vm2901_vm0, %v2900_v0 }
 0x10b   :  { %v3787_v6 = vpop.f32.mrf.mxu1  ;;  %2779 = vmatmul.mubr.f32.gmra.mxu1 %v1881_v62  ;;  %v2246_v8 = vpop.f32.mrf.mxu0 }
 0x10c   :  { %2781 = vmatprep.mubr.msk.f32.mxu1 %vm2901_vm0, %v2900_v0 }
 0x10d   :  { %v2425_v13 = vpop.f32.mrf.mxu1  ;;  %v3796_v15 = vpop.f32.mrf.mxu0  ;;  %2603 = vmatmul.mubr.f32.gmra.mxu0 %v1833_v4  ;;  %v1886_v4 = vld [vmem:[%s4753_s0 + $0x508] sm:$0xff] }
 0x10e   :  { %2605 = vmatprep.mubr.msk.f32.mxu0 %vm2901_vm0, %v2900_v0  ;;  %v1838_v13 = vld [vmem:[%s4753_s0 + $0x388] sm:$0xff] }
 0x10f   :  { %v3803_v18 = vpop.f32.mrf.mxu1  ;;  %2782 = vmatmul.mubr.f32.gmra.mxu1 %v1882_v11  ;;  %v2249_v20 = vpop.f32.mrf.mxu0 }
 0x110   :  { %2784 = vmatprep.mubr.msk.f32.mxu1 %vm2901_vm0, %v2900_v0 }
 0x111   :  { %v2428_v25 = vpop.f32.mrf.mxu1  ;;  %v3812_v27 = vpop.f32.mrf.mxu0  ;;  %2606 = vmatmul.mubr.f32.gmra.mxu0 %v1834_v16 }
 0x112   :  { %2608 = vmatprep.mubr.msk.f32.mxu0 %vm2901_vm0, %v2900_v0  ;;  %v1887_v25 = vld [vmem:[%s4753_s0 + $0x510] sm:$0xff] }
 0x113   :  { %v3819_v30 = vpop.f32.mrf.mxu1  ;;  %2785 = vmatmul.mubr.f32.gmra.mxu1 %v1883_v23  ;;  %v2252_v32 = vpop.f32.mrf.mxu0 }
 0x114   :  { %2787 = vmatprep.mubr.msk.f32.mxu1 %vm2901_vm0, %v2900_v0 }
 0x115   :  { %v2431_v37 = vpop.f32.mrf.mxu1  ;;  %v3828_v39 = vpop.f32.mrf.mxu0  ;;  %2609 = vmatmul.mubr.f32.gmra.mxu0 %v1835_v29 }
 0x116   :  { %2611 = vmatprep.mubr.msk.f32.mxu0 %vm2901_vm0, %v2900_v0 }
 0x117   :  { %v3835_v43 = vpop.f32.mrf.mxu1  ;;  %2788 = vmatmul.mubr.f32.gmra.mxu1 %v1884_v36  ;;  %v2255_v44 = vpop.f32.mrf.mxu0  ;;  %v1839_v36 = vld [vmem:[%s4753_s0 + $0x390] sm:$0xff] }
 0x118   :  { %2790 = vmatprep.mubr.msk.f32.mxu1 %vm2901_vm0, %v2900_v0 }
 0x119   :  { %v2434_v50 = vpop.f32.mrf.mxu1  ;;  %v3844_v51 = vpop.f32.mrf.mxu0  ;;  %2612 = vmatmul.mubr.f32.gmra.mxu0 %v1836_v41 }
 0x11a   :  { %2614 = vmatprep.mubr.msk.f32.mxu0 %vm2901_vm0, %v2900_v0 }
 0x11b   :  { %v3851_v58 = vpop.f32.mrf.mxu1  ;;  %2791 = vmatmul.mubr.f32.gmra.mxu1 %v1885_v48  ;;  %v2258_v62 = vpop.f32.mrf.mxu0  ;;  %v1888_v48 = vld [vmem:[%s4753_s0 + $0x518] sm:$0xff] }
 0x11c   :  { %2793 = vmatprep.mubr.msk.f32.mxu1 %vm2901_vm0, %v2900_v0  ;;  %v1840_v62 = vld [vmem:[%s4753_s0 + $0x398] sm:$0xff] }
 0x11d   :  { %v2437_v8 = vpop.f32.mrf.mxu1  ;;  %v3860_v11 = vpop.f32.mrf.mxu0  ;;  %2615 = vmatmul.mubr.f32.gmra.mxu0 %v1837_v55 }
 0x11e   :  { %2617 = vmatprep.mubr.msk.f32.mxu0 %vm2901_vm0, %v2900_v0 }
 0x11f   :  { %v3867_v16 = vpop.f32.mrf.mxu1  ;;  %2794 = vmatmul.mubr.f32.gmra.mxu1 %v1886_v4  ;;  %v2261_v20 = vpop.f32.mrf.mxu0 }
 0x120   :  { %2796 = vmatprep.mubr.msk.f32.mxu1 %vm2901_vm0, %v2900_v0  ;;  %v1889_v20 = vld [vmem:[%s4753_s0 + $0x520] sm:$0xff] }
 0x121   :  { %v2440_v29 = vpop.f32.mrf.mxu1  ;;  %v3876_v32 = vpop.f32.mrf.mxu0  ;;  %2618 = vmatmul.mubr.f32.gmra.mxu0 %v1838_v13 }
 0x122   :  { %2620 = vmatprep.mubr.msk.f32.mxu0 %vm2901_vm0, %v2900_v0 }
 0x123   :  { %v3883_v37 = vpop.f32.mrf.mxu1  ;;  %2797 = vmatmul.mubr.f32.gmra.mxu1 %v1887_v25  ;;  %v2264_v41 = vpop.f32.mrf.mxu0 }
 0x124   :  { %2799 = vmatprep.mubr.msk.f32.mxu1 %vm2901_vm0, %v2900_v0 }
 0x125   :  { %v2443_v50 = vpop.f32.mrf.mxu1  ;;  %v3892_v55 = vpop.f32.mrf.mxu0  ;;  %2621 = vmatmul.mubr.f32.gmra.mxu0 %v1839_v36  ;;  %v1841_v36 = vld [vmem:[%s4753_s0 + $0x3a0] sm:$0xff] }
 0x126   :  { %2623 = vmatprep.mubr.msk.f32.mxu0 %vm2901_vm0, %v2900_v0 }
 0x127   :  { %v3899_v4 = vpop.f32.mrf.mxu1  ;;  %2800 = vmatmul.mubr.f32.gmra.mxu1 %v1888_v48  ;;  %v2267_v8 = vpop.f32.mrf.mxu0 }
 0x128   :  { %2802 = vmatprep.mubr.msk.f32.mxu1 %vm2901_vm0, %v2900_v0 }
 0x129   :  { %v2446_v25 = vpop.f32.mrf.mxu1  ;;  %v3908_v29 = vpop.f32.mrf.mxu0  ;;  %2624 = vmatmul.mubr.f32.gmra.mxu0 %v1840_v62  ;;  %v1890_v62 = vld [vmem:[%s4753_s0 + $0x528] sm:$0xff] }
 0x12a   :  { %2626 = vmatprep.mubr.msk.f32.mxu0 %vm2901_vm0, %v2900_v0 }
 0x12b   :  { %v3915_v41 = vpop.f32.mrf.mxu1  ;;  %2803 = vmatmul.mubr.f32.gmra.mxu1 %v1889_v20  ;;  %v2270_v48 = vpop.f32.mrf.mxu0  ;;  %v1842_v20 = vld [vmem:[%s4753_s0 + $0x3a8] sm:$0xff] }
 0x12c   :  { %2805 = vmatprep.mubr.msk.f32.mxu1 %vm2901_vm0, %v2900_v0 }
 0x12d   :  { %v2449_v8 = vpop.f32.mrf.mxu1  ;;  %v3924_v25 = vpop.f32.mrf.mxu0  ;;  %2627 = vmatmul.mubr.f32.gmra.mxu0 %v1841_v36  ;;  %v1891_v36 = vld [vmem:[%s4753_s0 + $0x530] sm:$0xff] }
 0x12e   :  { %2629 = vmatprep.mubr.msk.f32.mxu0 %vm2901_vm0, %v2900_v0 }
 0x12f   :  { %v3931_v48 = vpop.f32.mrf.mxu1  ;;  %2806 = vmatmul.mubr.f32.gmra.mxu1 %v1890_v62  ;;  %v2273_v50 = vpop.f32.mrf.mxu0 }
 0x130   :  { %2808 = vmatprep.mubr.msk.f32.mxu1 %vm2901_vm0, %v2900_v0  ;;  %v1843_v50 = vld [vmem:[%s4753_s0 + $0x3b0] sm:$0xff] }
 0x131   :  { %v2452_v8 = vpop.f32.mrf.mxu1  ;;  %v3940_v44 = vpop.f32.mrf.mxu0  ;;  %2630 = vmatmul.mubr.f32.gmra.mxu0 %v1842_v20  ;;  %v1892_v20 = vld [vmem:[%s4753_s0 + $0x538] sm:$0xff] }
 0x132   :  { %2632 = vmatprep.mubr.msk.f32.mxu0 %vm2901_vm0, %v2900_v0 }
 0x133   :  { %v3947_v62 = vpop.f32.mrf.mxu1  ;;  %2809 = vmatmul.mubr.f32.gmra.mxu1 %v1891_v36  ;;  %v2276_v13 = vpop.f32.mrf.mxu0 }
 0x134   :  { %2811 = vmatprep.mubr.msk.f32.mxu1 %vm2901_vm0, %v2900_v0  ;;  %v1844_v13 = vld [vmem:[%s4753_s0 + $0x3b8] sm:$0xff] }
 0x135   :  { %v2455_v8 = vpop.f32.mrf.mxu1  ;;  %v3956_v1 = vpop.f32.mrf.mxu0  ;;  %2633 = vmatmul.mubr.f32.gmra.mxu0 %v1843_v50  ;;  %v1893_v50 = vld [vmem:[%s4753_s0 + $0x540] sm:$0xff] }
 0x136   :  { %2635 = vmatprep.mubr.msk.f32.mxu0 %vm2901_vm0, %v2900_v0 }
 0x137   :  { %v3963_v36 = vpop.f32.mrf.mxu1  ;;  %2812 = vmatmul.mubr.f32.gmra.mxu1 %v1892_v20  ;;  %v2279_v23 = vpop.f32.mrf.mxu0 }
 0x138   :  { %2814 = vmatprep.mubr.msk.f32.mxu1 %vm2901_vm0, %v2900_v0  ;;  %v1845_v23 = vld [vmem:[%s4753_s0 + $0x3c0] sm:$0xff] }
 0x139   :  { %v2458_v8 = vpop.f32.mrf.mxu1  ;;  %v3972_v34 = vpop.f32.mrf.mxu0  ;;  %2636 = vmatmul.mubr.f32.gmra.mxu0 %v1844_v13  ;;  %v1894_v13 = vld [vmem:[%s4753_s0 + $0x548] sm:$0xff] }
 0x13a   :  { %2638 = vmatprep.mubr.msk.f32.mxu0 %vm2901_vm0, %v2900_v0 }
 0x13b   :  { %v3979_v20 = vpop.f32.mrf.mxu1  ;;  %2815 = vmatmul.mubr.f32.gmra.mxu1 %v1893_v50  ;;  %v2282_v46 = vpop.f32.mrf.mxu0 }
 0x13c   :  { %2817 = vmatprep.mubr.msk.f32.mxu1 %vm2901_vm0, %v2900_v0  ;;  %v1846_v46 = vld [vmem:[%s4753_s0 + $0x3c8] sm:$0xff] }
 0x13d   :  { %v2461_v8 = vpop.f32.mrf.mxu1  ;;  %v3988_v9 = vpop.f32.mrf.mxu0  ;;  %2639 = vmatmul.mubr.f32.gmra.mxu0 %v1845_v23  ;;  %v1895_v23 = vld [vmem:[%s4753_s0 + $0x550] sm:$0xff] }
 0x13e   :  { %2641 = vmatprep.mubr.msk.f32.mxu0 %vm2901_vm0, %v2900_v0 }
 0x13f   :  { %v3995_v50 = vpop.f32.mrf.mxu1  ;;  %2818 = vmatmul.mubr.f32.gmra.mxu1 %v1894_v13  ;;  %v2285_v22 = vpop.f32.mrf.mxu0 }
 0x140   :  { %2820 = vmatprep.mubr.msk.f32.mxu1 %vm2901_vm0, %v2900_v0  ;;  %v1847_v22 = vld [vmem:[%s4753_s0 + $0x3d0] sm:$0xff] }
 0x141   :  { %v2464_v8 = vpop.f32.mrf.mxu1  ;;  %v4004_v49 = vpop.f32.mrf.mxu0  ;;  %2642 = vmatmul.mubr.f32.gmra.mxu0 %v1846_v46  ;;  %v1896_v46 = vld [vmem:[%s4753_s0 + $0x558] sm:$0xff] }
 0x142   :  { %2644 = vmatprep.mubr.msk.f32.mxu0 %vm2901_vm0, %v2900_v0 }
 0x143   :  { %v4011_v13 = vpop.f32.mrf.mxu1  ;;  %2821 = vmatmul.mubr.f32.gmra.mxu1 %v1895_v23  ;;  %v2288_v60 = vpop.f32.mrf.mxu0 }
 0x144   :  { %4805 = vst [vmem:[#allocation2_spill] sm:$0xff] %v4011_v13  ;;  %2823 = vmatprep.mubr.msk.f32.mxu1 %vm2901_vm0, %v2900_v0  ;;  %v1848_v60 = vld [vmem:[%s4753_s0 + $0x3d8] sm:$0xff] }
 0x145   :  { %v2467_v8 = vpop.f32.mrf.mxu1  ;;  %v4020_v35 = vpop.f32.mrf.mxu0  ;;  %2645 = vmatmul.mubr.f32.gmra.mxu0 %v1847_v22  ;;  %v1897_v22 = vld [vmem:[%s4753_s0 + $0x560] sm:$0xff] }
 0x146   :  { %4806 = vst [vmem:[#allocation3_spill] sm:$0xff] %v4020_v35  ;;  %2647 = vmatprep.mubr.msk.f32.mxu0 %vm2901_vm0, %v2900_v0 }
 0x147   :  { %v4027_v23 = vpop.f32.mrf.mxu1  ;;  %2824 = vmatmul.mubr.f32.gmra.mxu1 %v1896_v46  ;;  %v2291_v42 = vpop.f32.mrf.mxu0 }
 0x148   :  { %4807 = vst [vmem:[#allocation4_spill] sm:$0xff] %v4027_v23  ;;  %2826 = vmatprep.mubr.msk.f32.mxu1 %vm2901_vm0, %v2900_v0  ;;  %v1849_v42 = vld [vmem:[%s4753_s0 + $0x3e0] sm:$0xff] }
 0x149   :  { %v2470_v8 = vpop.f32.mrf.mxu1  ;;  %v4036_v21 = vpop.f32.mrf.mxu0  ;;  %2648 = vmatmul.mubr.f32.gmra.mxu0 %v1848_v60  ;;  %v1898_v60 = vld [vmem:[%s4753_s0 + $0x568] sm:$0xff] }
 0x14a   :  { %4808 = vst [vmem:[#allocation5_spill] sm:$0xff] %v4036_v21  ;;  %2650 = vmatprep.mubr.msk.f32.mxu0 %vm2901_vm0, %v2900_v0 }
 0x14b   :  { %v4043_v46 = vpop.f32.mrf.mxu1  ;;  %2827 = vmatmul.mubr.f32.gmra.mxu1 %v1897_v22  ;;  %v2294_v28 = vpop.f32.mrf.mxu0 }
 0x14c   :  { %4809 = vst [vmem:[#allocation6_spill] sm:$0xff] %v4043_v46  ;;  %2829 = vmatprep.mubr.msk.f32.mxu1 %vm2901_vm0, %v2900_v0  ;;  %v1850_v28 = vld [vmem:[%s4753_s0 + $0x3e8] sm:$0xff]  ;;  %v4854_v46 = vmax.f32 %v3620_v52, %v3627_v54 }
 0x14d   :  { %v2473_v8 = vpop.f32.mrf.mxu1  ;;  %v4052_v7 = vpop.f32.mrf.mxu0  ;;  %2651 = vmatmul.mubr.f32.gmra.mxu0 %v1849_v42  ;;  %v1899_v42 = vld [vmem:[%s4753_s0 + $0x570] sm:$0xff] }
 0x14e   :  { %4810 = vst [vmem:[#allocation7_spill] sm:$0xff] %v4052_v7  ;;  %2653 = vmatprep.mubr.msk.f32.mxu0 %vm2901_vm0, %v2900_v0 }
 0x14f   :  { %v4059_v22 = vpop.f32.mrf.mxu1  ;;  %2830 = vmatmul.mubr.f32.gmra.mxu1 %v1898_v60  ;;  %v2297_v14 = vpop.f32.mrf.mxu0 }
 0x150   :  { %4811 = vst [vmem:[#allocation8_spill] sm:$0xff] %v4059_v22  ;;  %2832 = vmatprep.mubr.msk.f32.mxu1 %vm2901_vm0, %v2900_v0  ;;  %v1851_v14 = vld [vmem:[%s4753_s0 + $0x3f0] sm:$0xff] }
 0x151   :  { %v2476_v8 = vpop.f32.mrf.mxu1  ;;  %v4068_v56 = vpop.f32.mrf.mxu0  ;;  %2654 = vmatmul.mubr.f32.gmra.mxu0 %v1850_v28  ;;  %v1900_v28 = vld [vmem:[%s4753_s0 + $0x578] sm:$0xff] }
 0x152   :  { %4812 = vst [vmem:[#allocation9_spill] sm:$0xff] %v4068_v56  ;;  %2656 = vmatprep.mubr.msk.f32.mxu0 %vm2901_vm0, %v2900_v0 }
 0x153   :  { %v4075_v60 = vpop.f32.mrf.mxu1  ;;  %2833 = vmatmul.mubr.f32.gmra.mxu1 %v1899_v42  ;;  %v2300_v63 = vpop.f32.mrf.mxu0 }
 0x154   :  { %4813 = vst [vmem:[#allocation10_spill] sm:$0xff] %v4075_v60  ;;  %2835 = vmatprep.mubr.msk.f32.mxu1 %vm2901_vm0, %v2900_v0  ;;  %v1852_v63 = vld [vmem:[%s4753_s0 + $0x3f8] sm:$0xff] }
 0x155   :  { %v2479_v8 = vpop.f32.mrf.mxu1  ;;  %v4084_v7 = vpop.f32.mrf.mxu0  ;;  %2657 = vmatmul.mubr.f32.gmra.mxu0 %v1851_v14  ;;  %v1901_v14 = vld [vmem:[%s4753_s0 + $0x580] sm:$0xff] }
 0x156   :  { %4814 = vst [vmem:[#allocation11_spill] sm:$0xff] %v4084_v7  ;;  %2659 = vmatprep.mubr.msk.f32.mxu0 %vm2901_vm0, %v2900_v0 }
 0x157   :  { %v4091_v42 = vpop.f32.mrf.mxu1  ;;  %2836 = vmatmul.mubr.f32.gmra.mxu1 %v1900_v28  ;;  %v2303_v22 = vpop.f32.mrf.mxu0 }
 0x158   :  { %4815 = vst [vmem:[#allocation12_spill] sm:$0xff] %v4091_v42  ;;  %2838 = vmatprep.mubr.msk.f32.mxu1 %vm2901_vm0, %v2900_v0  ;;  %v1853_v22 = vld [vmem:[%s4753_s0 + $0x400] sm:$0xff] }
 0x159   :  { %v2482_v8 = vpop.f32.mrf.mxu1  ;;  %v4100_v56 = vpop.f32.mrf.mxu0  ;;  %2660 = vmatmul.mubr.f32.gmra.mxu0 %v1852_v63  ;;  %v1902_v63 = vld [vmem:[%s4753_s0 + $0x588] sm:$0xff] }
 0x15a   :  { %4816 = vst [vmem:[#allocation13_spill] sm:$0xff] %v4100_v56  ;;  %2662 = vmatprep.mubr.msk.f32.mxu0 %vm2901_vm0, %v2900_v0 }
 0x15b   :  { %v4107_v28 = vpop.f32.mrf.mxu1  ;;  %2839 = vmatmul.mubr.f32.gmra.mxu1 %v1901_v14  ;;  %v2306_v60 = vpop.f32.mrf.mxu0 }
 0x15c   :  { %4817 = vst [vmem:[#allocation14_spill] sm:$0xff] %v4107_v28  ;;  %2841 = vmatprep.mubr.msk.f32.mxu1 %vm2901_vm0, %v2900_v0  ;;  %v1854_v60 = vld [vmem:[%s4753_s0 + $0x408] sm:$0xff] }
 0x15d   :  { %v2485_v8 = vpop.f32.mrf.mxu1  ;;  %v4116_v7 = vpop.f32.mrf.mxu0  ;;  %2663 = vmatmul.mubr.f32.gmra.mxu0 %v1853_v22  ;;  %v1903_v22 = vld [vmem:[%s4753_s0 + $0x590] sm:$0xff] }
 0x15e   :  { %4818 = vst [vmem:[#allocation15_spill] sm:$0xff] %v4116_v7  ;;  %2665 = vmatprep.mubr.msk.f32.mxu0 %vm2901_vm0, %v2900_v0 }
 0x15f   :  { %v4123_v14 = vpop.f32.mrf.mxu1  ;;  %2842 = vmatmul.mubr.f32.gmra.mxu1 %v1902_v63  ;;  %v2309_v42 = vpop.f32.mrf.mxu0 }
 0x160   :  { %4819 = vst [vmem:[#allocation16_spill] sm:$0xff] %v4123_v14  ;;  %2844 = vmatprep.mubr.msk.f32.mxu1 %vm2901_vm0, %v2900_v0  ;;  %v1855_v42 = vld [vmem:[%s4753_s0 + $0x410] sm:$0xff] }
 0x161   :  { %v2488_v8 = vpop.f32.mrf.mxu1  ;;  %v4132_v56 = vpop.f32.mrf.mxu0  ;;  %2666 = vmatmul.mubr.f32.gmra.mxu0 %v1854_v60  ;;  %v1904_v60 = vld [vmem:[%s4753_s0 + $0x598] sm:$0xff] }
 0x162   :  { %4820 = vst [vmem:[#allocation17_spill] sm:$0xff] %v4132_v56  ;;  %2668 = vmatprep.mubr.msk.f32.mxu0 %vm2901_vm0, %v2900_v0 }
 0x163   :  { %v4139_v63 = vpop.f32.mrf.mxu1  ;;  %2845 = vmatmul.mubr.f32.gmra.mxu1 %v1903_v22  ;;  %v2312_v28 = vpop.f32.mrf.mxu0 }
 0x164   :  { %4821 = vst [vmem:[#allocation18_spill] sm:$0xff] %v4139_v63  ;;  %2847 = vmatprep.mubr.msk.f32.mxu1 %vm2901_vm0, %v2900_v0  ;;  %v1856_v28 = vld [vmem:[%s4753_s0 + $0x418] sm:$0xff] }
 0x165   :  { %v2491_v8 = vpop.f32.mrf.mxu1  ;;  %v4148_v7 = vpop.f32.mrf.mxu0  ;;  %2669 = vmatmul.mubr.f32.gmra.mxu0 %v1855_v42  ;;  %v1905_v42 = vld [vmem:[%s4753_s0 + $0x5a0] sm:$0xff] }
 0x166   :  { %4822 = vst [vmem:[#allocation19_spill] sm:$0xff] %v4148_v7  ;;  %2671 = vmatprep.mubr.msk.f32.mxu0 %vm2901_vm0, %v2900_v0 }
 0x167   :  { %v4155_v22 = vpop.f32.mrf.mxu1  ;;  %2848 = vmatmul.mubr.f32.gmra.mxu1 %v1904_v60  ;;  %v2315_v14 = vpop.f32.mrf.mxu0 }
 0x168   :  { %4823 = vst [vmem:[#allocation20_spill] sm:$0xff] %v4155_v22  ;;  %2850 = vmatprep.mubr.msk.f32.mxu1 %vm2901_vm0, %v2900_v0  ;;  %v1857_v14 = vld [vmem:[%s4753_s0 + $0x420] sm:$0xff] }
 0x169   :  { %v2494_v8 = vpop.f32.mrf.mxu1  ;;  %v4164_v56 = vpop.f32.mrf.mxu0  ;;  %2672 = vmatmul.mubr.f32.gmra.mxu0 %v1856_v28  ;;  %v1906_v28 = vld [vmem:[%s4753_s0 + $0x5a8] sm:$0xff] }
 0x16a   :  { %4824 = vst [vmem:[#allocation21_spill] sm:$0xff] %v4164_v56  ;;  %2674 = vmatprep.mubr.msk.f32.mxu0 %vm2901_vm0, %v2900_v0 }
 0x16b   :  { %v4171_v60 = vpop.f32.mrf.mxu1  ;;  %2851 = vmatmul.mubr.f32.gmra.mxu1 %v1905_v42  ;;  %v2318_v63 = vpop.f32.mrf.mxu0 }
 0x16c   :  { %4825 = vst [vmem:[#allocation22_spill] sm:$0xff] %v4171_v60  ;;  %2853 = vmatprep.mubr.msk.f32.mxu1 %vm2901_vm0, %v2900_v0  ;;  %v1858_v63 = vld [vmem:[%s4753_s0 + $0x428] sm:$0xff] }
 0x16d   :  { %v2497_v8 = vpop.f32.mrf.mxu1  ;;  %v4180_v7 = vpop.f32.mrf.mxu0  ;;  %2675 = vmatmul.mubr.f32.gmra.mxu0 %v1857_v14  ;;  %v1907_v14 = vld [vmem:[%s4753_s0 + $0x5b0] sm:$0xff] }
 0x16e   :  { %4826 = vst [vmem:[#allocation23_spill] sm:$0xff] %v4180_v7  ;;  %2677 = vmatprep.mubr.msk.f32.mxu0 %vm2901_vm0, %v2900_v0 }
 0x16f   :  { %v4187_v42 = vpop.f32.mrf.mxu1  ;;  %2854 = vmatmul.mubr.f32.gmra.mxu1 %v1906_v28  ;;  %v2321_v22 = vpop.f32.mrf.mxu0 }
 0x170   :  { %4827 = vst [vmem:[#allocation24_spill] sm:$0xff] %v4187_v42  ;;  %2856 = vmatprep.mubr.msk.f32.mxu1 %vm2901_vm0, %v2900_v0  ;;  %v1859_v22 = vld [vmem:[%s4753_s0 + $0x430] sm:$0xff] }
 0x171   :  { %v2500_v8 = vpop.f32.mrf.mxu1  ;;  %v4196_v56 = vpop.f32.mrf.mxu0  ;;  %2678 = vmatmul.mubr.f32.gmra.mxu0 %v1858_v63  ;;  %v1908_v63 = vld [vmem:[%s4753_s0 + $0x5b8] sm:$0xff] }
 0x172   :  { %4828 = vst [vmem:[#allocation25_spill] sm:$0xff] %v4196_v56  ;;  %2680 = vmatprep.mubr.msk.f32.mxu0 %vm2901_vm0, %v2900_v0 }
 0x173   :  { %v4203_v28 = vpop.f32.mrf.mxu1  ;;  %2857 = vmatmul.mubr.f32.gmra.mxu1 %v1907_v14  ;;  %v2324_v60 = vpop.f32.mrf.mxu0 }
 0x174   :  { %4829 = vst [vmem:[#allocation26_spill] sm:$0xff] %v4203_v28  ;;  %2859 = vmatprep.mubr.msk.f32.mxu1 %vm2901_vm0, %v2900_v0  ;;  %v1860_v60 = vld [vmem:[%s4753_s0 + $0x438] sm:$0xff] }
 0x175   :  { %v2503_v8 = vpop.f32.mrf.mxu1  ;;  %v4212_v7 = vpop.f32.mrf.mxu0  ;;  %2681 = vmatmul.mubr.f32.gmra.mxu0 %v1859_v22  ;;  %v1909_v22 = vld [vmem:[%s4753_s0 + $0x5c0] sm:$0xff] }
 0x176   :  { %4830 = vst [vmem:[#allocation27_spill] sm:$0xff] %v4212_v7  ;;  %2683 = vmatprep.mubr.msk.f32.mxu0 %vm2901_vm0, %v2900_v0 }
 0x177   :  { %v4219_v14 = vpop.f32.mrf.mxu1  ;;  %2860 = vmatmul.mubr.f32.gmra.mxu1 %v1908_v63  ;;  %v2327_v42 = vpop.f32.mrf.mxu0 }
 0x178   :  { %4831 = vst [vmem:[#allocation28_spill] sm:$0xff] %v4219_v14  ;;  %2862 = vmatprep.mubr.msk.f32.mxu1 %vm2901_vm0, %v2900_v0  ;;  %v1861_v42 = vld [vmem:[%s4753_s0 + $0x440] sm:$0xff] }
 0x179   :  { %v2506_v8 = vpop.f32.mrf.mxu1  ;;  %v4228_v56 = vpop.f32.mrf.mxu0  ;;  %2684 = vmatmul.mubr.f32.gmra.mxu0 %v1860_v60  ;;  %v1910_v60 = vld [vmem:[%s4753_s0 + $0x5c8] sm:$0xff] }
 0x17a   :  { %4832 = vst [vmem:[#allocation29_spill] sm:$0xff] %v4228_v56  ;;  %2686 = vmatprep.mubr.msk.f32.mxu0 %vm2901_vm0, %v2900_v0 }
 0x17b   :  { %v4235_v63 = vpop.f32.mrf.mxu1  ;;  %2863 = vmatmul.mubr.f32.gmra.mxu1 %v1909_v22  ;;  %v2330_v28 = vpop.f32.mrf.mxu0 }
 0x17c   :  { %4833 = vst [vmem:[#allocation30_spill] sm:$0xff] %v4235_v63  ;;  %2865 = vmatprep.mubr.msk.f32.mxu1 %vm2901_vm0, %v2900_v0  ;;  %v1862_v28 = vld [vmem:[%s4753_s0 + $0x448] sm:$0xff] }
 0x17d   :  { %v2509_v8 = vpop.f32.mrf.mxu1  ;;  %v4244_v7 = vpop.f32.mrf.mxu0  ;;  %2687 = vmatmul.mubr.f32.gmra.mxu0 %v1861_v42  ;;  %v1911_v42 = vld [vmem:[%s4753_s0 + $0x5d0] sm:$0xff] }
 0x17e   :  { %4834 = vst [vmem:[#allocation31_spill] sm:$0xff] %v4244_v7  ;;  %2689 = vmatprep.mubr.msk.f32.mxu0 %vm2901_vm0, %v2900_v0 }
 0x17f   :  { %v4251_v22 = vpop.f32.mrf.mxu1  ;;  %2866 = vmatmul.mubr.f32.gmra.mxu1 %v1910_v60  ;;  %v2333_v14 = vpop.f32.mrf.mxu0 }
 0x180   :  { %4835 = vst [vmem:[#allocation32_spill] sm:$0xff] %v4251_v22  ;;  %2868 = vmatprep.mubr.msk.f32.mxu1 %vm2901_vm0, %v2900_v0  ;;  %v1863_v14 = vld [vmem:[%s4753_s0 + $0x450] sm:$0xff] }
 0x181   :  { %v2512_v8 = vpop.f32.mrf.mxu1  ;;  %v4260_v56 = vpop.f32.mrf.mxu0  ;;  %2690 = vmatmul.mubr.f32.gmra.mxu0 %v1862_v28  ;;  %v1912_v28 = vld [vmem:[%s4753_s0 + $0x5d8] sm:$0xff] }
 0x182   :  { %4836 = vst [vmem:[#allocation33_spill] sm:$0xff] %v4260_v56  ;;  %2692 = vmatprep.mubr.msk.f32.mxu0 %vm2901_vm0, %v2900_v0 }
 0x183   :  { %v4267_v60 = vpop.f32.mrf.mxu1  ;;  %2869 = vmatmul.mubr.f32.gmra.mxu1 %v1911_v42  ;;  %v2336_v63 = vpop.f32.mrf.mxu0 }
 0x184   :  { %4837 = vst [vmem:[#allocation34_spill] sm:$0xff] %v4267_v60  ;;  %2871 = vmatprep.mubr.msk.f32.mxu1 %vm2901_vm0, %v2900_v0  ;;  %v1864_v63 = vld [vmem:[%s4753_s0 + $0x458] sm:$0xff] }
 0x185   :  { %v2515_v8 = vpop.f32.mrf.mxu1  ;;  %v4276_v7 = vpop.f32.mrf.mxu0  ;;  %2693 = vmatmul.mubr.f32.gmra.mxu0 %v1863_v14  ;;  %v1913_v14 = vld [vmem:[%s4753_s0 + $0x5e0] sm:$0xff] }
 0x186   :  { %4838 = vst [vmem:[#allocation35_spill] sm:$0xff] %v4276_v7  ;;  %2695 = vmatprep.mubr.msk.f32.mxu0 %vm2901_vm0, %v2900_v0 }
 0x187   :  { %v4283_v42 = vpop.f32.mrf.mxu1  ;;  %2872 = vmatmul.mubr.f32.gmra.mxu1 %v1912_v28  ;;  %v2339_v22 = vpop.f32.mrf.mxu0 }
 0x188   :  { %4839 = vst [vmem:[#allocation36_spill] sm:$0xff] %v4283_v42  ;;  %2874 = vmatprep.mubr.msk.f32.mxu1 %vm2901_vm0, %v2900_v0  ;;  %v1865_v22 = vld [vmem:[%s4753_s0 + $0x460] sm:$0xff] }
 0x189   :  { %v2518_v8 = vpop.f32.mrf.mxu1  ;;  %v4292_v56 = vpop.f32.mrf.mxu0  ;;  %2696 = vmatmul.mubr.f32.gmra.mxu0 %v1864_v63  ;;  %v1914_v63 = vld [vmem:[%s4753_s0 + $0x5e8] sm:$0xff] }
 0x18a   :  { %4840 = vst [vmem:[#allocation37_spill] sm:$0xff] %v4292_v56  ;;  %2698 = vmatprep.mubr.msk.f32.mxu0 %vm2901_vm0, %v2900_v0 }
 0x18b   :  { %v4299_v28 = vpop.f32.mrf.mxu1  ;;  %2875 = vmatmul.mubr.f32.gmra.mxu1 %v1913_v14  ;;  %v2342_v60 = vpop.f32.mrf.mxu0 }
 0x18c   :  { %4841 = vst [vmem:[#allocation38_spill] sm:$0xff] %v4299_v28  ;;  %2877 = vmatprep.mubr.msk.f32.mxu1 %vm2901_vm0, %v2900_v0  ;;  %v1866_v60 = vld [vmem:[%s4753_s0 + $0x468] sm:$0xff] }
 0x18d   :  { %v2521_v8 = vpop.f32.mrf.mxu1  ;;  %v4308_v7 = vpop.f32.mrf.mxu0  ;;  %2699 = vmatmul.mubr.f32.gmra.mxu0 %v1865_v22  ;;  %v1915_v22 = vld [vmem:[%s4753_s0 + $0x5f0] sm:$0xff] }
 0x18e   :  { %4842 = vst [vmem:[#allocation39_spill] sm:$0xff] %v4308_v7  ;;  %2701 = vmatprep.mubr.msk.f32.mxu0 %vm2901_vm0, %v2900_v0 }
 0x18f   :  { %v4315_v14 = vpop.f32.mrf.mxu1  ;;  %2878 = vmatmul.mubr.f32.gmra.mxu1 %v1914_v63  ;;  %v2345_v42 = vpop.f32.mrf.mxu0 }
 0x190   :  { %4843 = vst [vmem:[#allocation40_spill] sm:$0xff] %v4315_v14  ;;  %2880 = vmatprep.mubr.msk.f32.mxu1 %vm2901_vm0, %v2900_v0  ;;  %v1867_v42 = vld [vmem:[%s4753_s0 + $0x470] sm:$0xff] }
 0x191   :  { %v2524_v8 = vpop.f32.mrf.mxu1  ;;  %v4324_v56 = vpop.f32.mrf.mxu0  ;;  %2702 = vmatmul.mubr.f32.gmra.mxu0 %v1866_v60  ;;  %v1916_v60 = vld [vmem:[%s4753_s0 + $0x5f8] sm:$0xff] }
 0x192   :  { %4844 = vst [vmem:[#allocation41_spill] sm:$0xff] %v4324_v56  ;;  %2704 = vmatprep.mubr.msk.f32.mxu0 %vm2901_vm0, %v2900_v0 }
 0x193   :  { %v4331_v63 = vpop.f32.mrf.mxu1  ;;  %2881 = vmatmul.mubr.f32.gmra.mxu1 %v1915_v22  ;;  %v2348_v28 = vpop.f32.mrf.mxu0 }
 0x194   :  { %4845 = vst [vmem:[#allocation42_spill] sm:$0xff] %v4331_v63  ;;  %2883 = vmatprep.mubr.msk.f32.mxu1 %vm2901_vm0, %v2900_v0  ;;  %v1868_v28 = vld [vmem:[%s4753_s0 + $0x478] sm:$0xff] }
 0x195   :  { %v2527_v8 = vpop.f32.mrf.mxu1  ;;  %v4340_v7 = vpop.f32.mrf.mxu0  ;;  %2705 = vmatmul.mubr.f32.gmra.mxu0 %v1867_v42  ;;  %v1917_v42 = vld [vmem:[%s4753_s0 + $0x600] sm:$0xff] }
 0x196   :  { %4846 = vst [vmem:[#allocation43_spill] sm:$0xff] %v4340_v7  ;;  %2707 = vmatprep.mubr.msk.f32.mxu0 %vm2901_vm0, %v2900_v0 }
 0x197   :  { %v4347_v22 = vpop.f32.mrf.mxu1  ;;  %2884 = vmatmul.mubr.f32.gmra.mxu1 %v1916_v60  ;;  %v2351_v14 = vpop.f32.mrf.mxu0 }
 0x198   :  { %4847 = vst [vmem:[#allocation44_spill] sm:$0xff] %v4347_v22  ;;  %2886 = vmatprep.mubr.msk.f32.mxu1 %vm2901_vm0, %v2900_v0  ;;  %v1869_v14 = vld [vmem:[%s4753_s0 + $0x480] sm:$0xff] }
 0x199   :  { %v2530_v8 = vpop.f32.mrf.mxu1  ;;  %v4356_v56 = vpop.f32.mrf.mxu0  ;;  %2708 = vmatmul.mubr.f32.gmra.mxu0 %v1868_v28  ;;  %v1918_v28 = vld [vmem:[%s4753_s0 + $0x608] sm:$0xff] }
 0x19a   :  { %4848 = vst [vmem:[#allocation45_spill] sm:$0xff] %v4356_v56  ;;  %2710 = vmatprep.mubr.msk.f32.mxu0 %vm2901_vm0, %v2900_v0 }
 0x19b   :  { %v4363_v60 = vpop.f32.mrf.mxu1  ;;  %2887 = vmatmul.mubr.f32.gmra.mxu1 %v1917_v42  ;;  %v2354_v63 = vpop.f32.mrf.mxu0 }
 0x19c   :  { %4849 = vst [vmem:[#allocation46_spill] sm:$0xff] %v4363_v60  ;;  %2889 = vmatprep.mubr.msk.f32.mxu1 %vm2901_vm0, %v2900_v0  ;;  %v1870_v63 = vld [vmem:[%s4753_s0 + $0x488] sm:$0xff] }
 0x19d   :  { %v2533_v8 = vpop.f32.mrf.mxu1  ;;  %v4372_v7 = vpop.f32.mrf.mxu0  ;;  %2711 = vmatmul.mubr.f32.gmra.mxu0 %v1869_v14  ;;  %v1919_v14 = vld [vmem:[%s4753_s0 + $0x610] sm:$0xff] }
 0x19e   :  { %4850 = vst [vmem:[#allocation47_spill] sm:$0xff] %v4372_v7  ;;  %2713 = vmatprep.mubr.msk.f32.mxu0 %vm2901_vm0, %v2900_v0 }
 0x19f   :  { %v4379_v42 = vpop.f32.mrf.mxu1  ;;  %2890 = vmatmul.mubr.f32.gmra.mxu1 %v1918_v28  ;;  %v2357_v22 = vpop.f32.mrf.mxu0 }
 0x1a0   :  { %4851 = vst [vmem:[#allocation48_spill] sm:$0xff] %v4379_v42  ;;  %2892 = vmatprep.mubr.msk.f32.mxu1 %vm2901_vm0, %v2900_v0  ;;  %v1871_v22 = vld [vmem:[%s4753_s0 + $0x490] sm:$0xff] }
 0x1a1   :  { %v2536_v8 = vpop.f32.mrf.mxu1  ;;  %v4388_v56 = vpop.f32.mrf.mxu0  ;;  %2714 = vmatmul.mubr.f32.gmra.mxu0 %v1870_v63  ;;  %v1920_v63 = vld [vmem:[%s4753_s0 + $0x618] sm:$0xff] }
 0x1a2   :  { %4852 = vst [vmem:[#allocation49_spill] sm:$0xff] %v4388_v56  ;;  %2716 = vmatprep.mubr.msk.f32.mxu0 %vm2901_vm0, %v2900_v0 }
 0x1a3   :  { %v4395_v28 = vpop.f32.mrf.mxu1  ;;  %2893 = vmatmul.mubr.f32.gmra.mxu1 %v1919_v14  ;;  %v2360_v60 = vpop.f32.mrf.mxu0 }
 0x1a4   :  { %4853 = vst [vmem:[#allocation50_spill] sm:$0xff] %v4395_v28  ;;  %2895 = vmatprep.mubr.msk.f32.mxu1 %vm2901_vm0, %v2900_v0  ;;  %v4410_v60 = vld [vmem:[%s4754_s2] ss:$0 sm:$0xff] }
 0x1a5   :  { %v2539_v8 = vpop.f32.mrf.mxu1  ;;  %v914_v7 = vpop.f32.mrf.mxu0  ;;  %2717 = vmatmul.mubr.f32.gmra.mxu0 %v1871_v22  ;;  %v4855_v22 = vmax.f32 %v3636_v59, %v3643_v61 }
 0x1a6   :  { %v1158_v21 = vmax.f32 %v4854_v46, %v914_v7 }
 0x1a7   :  { %v1323_v23 = vpop.f32.mrf.mxu1  ;;  %2896 = vmatmul.mubr.f32.gmra.mxu1 %v1920_v63  ;;  %v2574_v14 = vpop.f32.mrf.mxu0 }
 0x1a8   :  { %v1567_v0 = vmax.f32 %v1158_v21, %v1323_v23  ;;  %v4856_v23 = vmax.f32 %v3652_v3, %v3659_v5 }
 0x1a9   :  { %v2753_v42 = vpop.f32.mrf.mxu1  ;;  %v919_v28 = vpop.f32.mrf.mxu0 }
 0x1aa   :  { %v1623_v56 = vadd.f32 %v4410_v60, %v1567_v0  ;;  %v1159_v8 = vmax.f32 %v4855_v22, %v919_v28 }
 0x1ab   :  { %v1328_v35 = vpop.f32.mrf.mxu1  ;;  %v2577_v52 = vpop.f32.mrf.mxu0 }
 0x1ac   :  { %v1672_v54 = vmax.f32 %v1623_v56, 0.0  ;;  %v1568_v7 = vmax.f32 %v1159_v8, %v1328_v35  ;;  %v4857_v35 = vmax.f32 %v3668_v10, %v3675_v12 }
 0x1ad   :  { %v2756_v46 = vpop.f32.mrf.mxu1  ;;  %v924_v13 = vpop.f32.mrf.mxu0 }
 0x1ae   :  { %1721 = vst [vmem:[%s4755_s3] sm:$0xff] %v1672_v54  ;;  %v1624_v21 = vadd.f32 %v4410_v60, %v1568_v7  ;;  %v1160_v42 = vmax.f32 %v4856_v23, %v924_v13  ;;  %v4858_v46 = vmax.f32 %v3684_v17, %v3691_v19 }
 0x1af   :  { %v1333_v63 = vpop.f32.mrf.mxu1  ;;  %v2580_v14 = vpop.f32.mrf.mxu0 }
 0x1b0   :  { %v1673_v59 = vmax.f32 %v1624_v21, 0.0  ;;  %v1569_v61 = vmax.f32 %v1160_v42, %v1333_v63 }
 0x1b1   :  { %v2759_v28 = vpop.f32.mrf.mxu1  ;;  %v929_v0 = vpop.f32.mrf.mxu0 }
 0x1b2   :  { %1722 = vst [vmem:[%s4755_s3 + $0x8] sm:$0xff] %v1673_v59  ;;  %v1625_v56 = vadd.f32 %v4410_v60, %v1569_v61  ;;  %v1161_v22 = vmax.f32 %v4857_v35, %v929_v0  ;;  %v4859_v61 = vmax.f32 %v3700_v24, %v3707_v26 }
 0x1b3   :  { %v1338_v8 = vpop.f32.mrf.mxu1  ;;  %v2583_v52 = vpop.f32.mrf.mxu0 }
 0x1b4   :  { %v1674_v3 = vmax.f32 %v1625_v56, 0.0  ;;  %v1570_v5 = vmax.f32 %v1161_v22, %v1338_v8  ;;  %v4860_v52 = vmax.f32 %v3716_v31, %v3723_v33 }
 0x1b5   :  { %v2762_v13 = vpop.f32.mrf.mxu1  ;;  %v934_v54 = vpop.f32.mrf.mxu0 }
 0x1b6   :  { %1723 = vst [vmem:[%s4755_s3 + $0x10] sm:$0xff] %v1674_v3  ;;  %v1626_v7 = vadd.f32 %v4410_v60, %v1570_v5  ;;  %v1162_v21 = vmax.f32 %v4858_v46, %v934_v54 }
 0x1b7   :  { %v1343_v23 = vpop.f32.mrf.mxu1  ;;  %v2586_v42 = vpop.f32.mrf.mxu0 }
 0x1b8   :  { %v1675_v10 = vmax.f32 %v1626_v7, 0.0  ;;  %v1571_v12 = vmax.f32 %v1162_v21, %v1343_v23  ;;  %v4861_v21 = vmax.f32 %v3732_v38, %v3739_v40 }
 0x1b9   :  { %v2765_v63 = vpop.f32.mrf.mxu1  ;;  %v939_v14 = vpop.f32.mrf.mxu0 }
 0x1ba   :  { %1724 = vst [vmem:[%s4755_s3 + $0x18] sm:$0xff] %v1675_v10  ;;  %v1627_v59 = vadd.f32 %v4410_v60, %v1571_v12  ;;  %v1163_v28 = vmax.f32 %v4859_v61, %v939_v14 }
 0x1bb   :  { %v1348_v0 = vpop.f32.mrf.mxu1  ;;  %v2589_v56 = vpop.f32.mrf.mxu0 }
 0x1bc   :  { %v1676_v17 = vmax.f32 %v1627_v59, 0.0  ;;  %v1572_v19 = vmax.f32 %v1163_v28, %v1348_v0  ;;  %v4862_v59 = vmax.f32 %v3748_v45, %v3755_v47 }
 0x1bd   :  { %v2768_v35 = vpop.f32.mrf.mxu1  ;;  %v944_v22 = vpop.f32.mrf.mxu0 }
 0x1be   :  { %1725 = vst [vmem:[%s4755_s3 + $0x20] sm:$0xff] %v1676_v17  ;;  %v1628_v8 = vadd.f32 %v4410_v60, %v1572_v19  ;;  %v1164_v3 = vmax.f32 %v4860_v52, %v944_v22  ;;  %v4863_v35 = vmax.f32 %v3764_v53, %v3771_v57 }
 0x1bf   :  { %v1353_v5 = vpop.f32.mrf.mxu1  ;;  %v2592_v13 = vpop.f32.mrf.mxu0 }
 0x1c0   :  { %v1677_v24 = vmax.f32 %v1628_v8, 0.0  ;;  %v1573_v26 = vmax.f32 %v1164_v3, %v1353_v5 }
 0x1c1   :  { %v2771_v54 = vpop.f32.mrf.mxu1  ;;  %v949_v7 = vpop.f32.mrf.mxu0 }
 0x1c2   :  { %1726 = vst [vmem:[%s4755_s3 + $0x28] sm:$0xff] %v1677_v24  ;;  %v1629_v46 = vadd.f32 %v4410_v60, %v1573_v26  ;;  %v1165_v23 = vmax.f32 %v4861_v21, %v949_v7  ;;  %v4864_v24 = vmax.f32 %v3780_v2, %v3787_v6 }
 0x1c3   :  { %v1358_v42 = vpop.f32.mrf.mxu1  ;;  %v2595_v10 = vpop.f32.mrf.mxu0 }
 0x1c4   :  { %v1678_v31 = vmax.f32 %v1629_v46, 0.0  ;;  %v1574_v33 = vmax.f32 %v1165_v23, %v1358_v42  ;;  %v4865_v42 = vmax.f32 %v3796_v15, %v3803_v18 }
 0x1c5   :  { %v2774_v12 = vpop.f32.mrf.mxu1  ;;  %v954_v63 = vpop.f32.mrf.mxu0 }
 0x1c6   :  { %1727 = vst [vmem:[%s4755_s3 + $0x30] sm:$0xff] %v1678_v31  ;;  %v1630_v14 = vadd.f32 %v4410_v60, %v1574_v33  ;;  %v1166_v61 = vmax.f32 %v4862_v59, %v954_v63  ;;  %v4866_v59 = vmax.f32 %v3812_v27, %v3819_v30 }
 0x1c7   :  { %v1363_v28 = vpop.f32.mrf.mxu1  ;;  %v2598_v0 = vpop.f32.mrf.mxu0 }
 0x1c8   :  { %v1679_v38 = vmax.f32 %v1630_v14, 0.0  ;;  %v1575_v40 = vmax.f32 %v1166_v61, %v1363_v28 }
 0x1c9   :  { %v2777_v56 = vpop.f32.mrf.mxu1  ;;  %v959_v17 = vpop.f32.mrf.mxu0 }
 0x1ca   :  { %1728 = vst [vmem:[%s4755_s3 + $0x38] sm:$0xff] %v1679_v38  ;;  %v1631_v19 = vadd.f32 %v4410_v60, %v1575_v40  ;;  %v1167_v22 = vmax.f32 %v4863_v35, %v959_v17  ;;  %v4867_v17 = vmax.f32 %v3828_v39, %v3835_v43 }
 0x1cb   :  { %v1368_v8 = vpop.f32.mrf.mxu1  ;;  %v2601_v52 = vpop.f32.mrf.mxu0 }
 0x1cc   :  { %v1680_v45 = vmax.f32 %v1631_v19, 0.0  ;;  %v1576_v47 = vmax.f32 %v1167_v22, %v1368_v8 }
 0x1cd   :  { %v2780_v3 = vpop.f32.mrf.mxu1  ;;  %v964_v5 = vpop.f32.mrf.mxu0 }
 0x1ce   :  { %1729 = vst [vmem:[%s4755_s3 + $0x40] sm:$0xff] %v1680_v45  ;;  %v1632_v13 = vadd.f32 %v4410_v60, %v1576_v47  ;;  %v1168_v26 = vmax.f32 %v4864_v24, %v964_v5  ;;  %v4868_v47 = vmax.f32 %v3844_v51, %v3851_v58 }
 0x1cf   :  { %v1373_v54 = vpop.f32.mrf.mxu1  ;;  %v2604_v7 = vpop.f32.mrf.mxu0 }
 0x1d0   :  { %v1681_v53 = vmax.f32 %v1632_v13, 0.0  ;;  %v1577_v57 = vmax.f32 %v1168_v26, %v1373_v54  ;;  %v4869_v7 = vmax.f32 %v3860_v11, %v3867_v16 }
 0x1d1   :  { %v2783_v46 = vpop.f32.mrf.mxu1  ;;  %v969_v21 = vpop.f32.mrf.mxu0 }
 0x1d2   :  { %1730 = vst [vmem:[%s4755_s3 + $0x48] sm:$0xff] %v1681_v53  ;;  %v1633_v23 = vadd.f32 %v4410_v60, %v1577_v57  ;;  %v1169_v10 = vmax.f32 %v4865_v42, %v969_v21 }
 0x1d3   :  { %v1378_v31 = vpop.f32.mrf.mxu1  ;;  %v2607_v33 = vpop.f32.mrf.mxu0 }
 0x1d4   :  { %v1682_v2 = vmax.f32 %v1633_v23, 0.0  ;;  %v1578_v6 = vmax.f32 %v1169_v10, %v1378_v31  ;;  %v4870_v10 = vmax.f32 %v3876_v32, %v3883_v37 }
 0x1d5   :  { %v2786_v12 = vpop.f32.mrf.mxu1  ;;  %v974_v63 = vpop.f32.mrf.mxu0 }
 0x1d6   :  { %1731 = vst [vmem:[%s4755_s3 + $0x50] sm:$0xff] %v1682_v2  ;;  %v1634_v14 = vadd.f32 %v4410_v60, %v1578_v6  ;;  %v1170_v61 = vmax.f32 %v4866_v59, %v974_v63 }
 0x1d7   :  { %v1383_v28 = vpop.f32.mrf.mxu1  ;;  %v2610_v0 = vpop.f32.mrf.mxu0 }
 0x1d8   :  { %v1683_v15 = vmax.f32 %v1634_v14, 0.0  ;;  %v1579_v18 = vmax.f32 %v1170_v61, %v1383_v28  ;;  %v4871_v14 = vmax.f32 %v3892_v55, %v3899_v4 }
 0x1d9   :  { %v2789_v38 = vpop.f32.mrf.mxu1  ;;  %v979_v40 = vpop.f32.mrf.mxu0 }
 0x1da   :  { %1732 = vst [vmem:[%s4755_s3 + $0x58] sm:$0xff] %v1683_v15  ;;  %v1635_v56 = vadd.f32 %v4410_v60, %v1579_v18  ;;  %v1171_v19 = vmax.f32 %v4867_v17, %v979_v40  ;;  %v4872_v38 = vmax.f32 %v3908_v29, %v3915_v41 }
 0x1db   :  { %v1388_v35 = vpop.f32.mrf.mxu1  ;;  %v2613_v22 = vpop.f32.mrf.mxu0 }
 0x1dc   :  { %v1684_v27 = vmax.f32 %v1635_v56, 0.0  ;;  %v1580_v30 = vmax.f32 %v1171_v19, %v1388_v35 }
 0x1dd   :  { %v2792_v8 = vpop.f32.mrf.mxu1  ;;  %v984_v52 = vpop.f32.mrf.mxu0 }
 0x1de   :  { %1733 = vst [vmem:[%s4755_s3 + $0x60] sm:$0xff] %v1684_v27  ;;  %v1636_v45 = vadd.f32 %v4410_v60, %v1580_v30  ;;  %v1172_v3 = vmax.f32 %v4868_v47, %v984_v52  ;;  %v4873_v27 = vmax.f32 %v3924_v25, %v3931_v48 }
 0x1df   :  { %v1393_v5 = vpop.f32.mrf.mxu1  ;;  %v2616_v13 = vpop.f32.mrf.mxu0 }
 0x1e0   :  { %v1685_v39 = vmax.f32 %v1636_v45, 0.0  ;;  %v1581_v43 = vmax.f32 %v1172_v3, %v1393_v5  ;;  %v4874_v5 = vmax.f32 %v3940_v44, %v3947_v62 }
 0x1e1   :  { %v2795_v24 = vpop.f32.mrf.mxu1  ;;  %v989_v26 = vpop.f32.mrf.mxu0 }
 0x1e2   :  { %1734 = vst [vmem:[%s4755_s3 + $0x68] sm:$0xff] %v1685_v39  ;;  %v1637_v54 = vadd.f32 %v4410_v60, %v1581_v43  ;;  %v1173_v53 = vmax.f32 %v4869_v7, %v989_v26  ;;  %v4875_v7 = vmax.f32 %v3956_v1, %v3963_v36 }
 0x1e3   :  { %v1398_v57 = vpop.f32.mrf.mxu1  ;;  %v2619_v46 = vpop.f32.mrf.mxu0 }
 0x1e4   :  { %v1686_v51 = vmax.f32 %v1637_v54, 0.0  ;;  %v1582_v58 = vmax.f32 %v1173_v53, %v1398_v57 }
 0x1e5   :  { %v2798_v21 = vpop.f32.mrf.mxu1  ;;  %v994_v23 = vpop.f32.mrf.mxu0 }
 0x1e6   :  { %1735 = vst [vmem:[%s4755_s3 + $0x70] sm:$0xff] %v1686_v51  ;;  %v1638_v42 = vadd.f32 %v4410_v60, %v1582_v58  ;;  %v1174_v31 = vmax.f32 %v4870_v10, %v994_v23  ;;  %v4876_v23 = vmax.f32 %v3972_v34, %v3979_v20 }
 0x1e7   :  { %v1403_v33 = vpop.f32.mrf.mxu1  ;;  %v2622_v2 = vpop.f32.mrf.mxu0 }
 0x1e8   :  { %v1687_v11 = vmax.f32 %v1638_v42, 0.0  ;;  %v1583_v16 = vmax.f32 %v1174_v31, %v1403_v33 }
 0x1e9   :  { %v2801_v6 = vpop.f32.mrf.mxu1  ;;  %v999_v12 = vpop.f32.mrf.mxu0 }
 0x1ea   :  { %1736 = vst [vmem:[%s4755_s3 + $0x78] sm:$0xff] %v1687_v11  ;;  %v1639_v63 = vadd.f32 %v4410_v60, %v1583_v16  ;;  %v1175_v59 = vmax.f32 %v4871_v14, %v999_v12  ;;  %v4877_v16 = vmax.f32 %v3988_v9, %v3995_v50 }
 0x1eb   :  { %v1408_v61 = vpop.f32.mrf.mxu1  ;;  %v2625_v28 = vpop.f32.mrf.mxu0 }
 0x1ec   :  { %v1688_v32 = vmax.f32 %v1639_v63, 0.0  ;;  %v1584_v37 = vmax.f32 %v1175_v59, %v1408_v61  ;;  %v4878_v28 = vld [vmem:[#allocation2_spill] sm:$0xff] }
 0x1ed   :  { %v2804_v0 = vpop.f32.mrf.mxu1  ;;  %v1004_v15 = vpop.f32.mrf.mxu0 }
 0x1ee   :  { %1737 = vst [vmem:[%s4755_s3 + $0x80] sm:$0xff] %v1688_v32  ;;  %v1640_v18 = vadd.f32 %v4410_v60, %v1584_v37  ;;  %v1176_v40 = vmax.f32 %v4872_v38, %v1004_v15  ;;  %v4879_v32 = vmax.f32 %v4004_v49, %v4878_v28 }
 0x1ef   :  { %v1413_v56 = vpop.f32.mrf.mxu1  ;;  %v2628_v17 = vpop.f32.mrf.mxu0 }
 0x1f0   :  { %v1689_v55 = vmax.f32 %v1640_v18, 0.0  ;;  %v1585_v4 = vmax.f32 %v1176_v40, %v1413_v56  ;;  %v4880_v56 = vld [vmem:[#allocation3_spill] sm:$0xff]  ;;  %v4881_v17 = vld [vmem:[#allocation4_spill] sm:$0xff] }
 0x1f1   :  { %v2807_v19 = vpop.f32.mrf.mxu1  ;;  %v1009_v35 = vpop.f32.mrf.mxu0 }
 0x1f2   :  { %1738 = vst [vmem:[%s4755_s3 + $0x88] sm:$0xff] %v1689_v55  ;;  %v1641_v22 = vadd.f32 %v4410_v60, %v1585_v4  ;;  %v1177_v30 = vmax.f32 %v4873_v27, %v1009_v35  ;;  %v4882_v55 = vmax.f32 %v4880_v56, %v4881_v17 }
 0x1f3   :  { %v1418_v8 = vpop.f32.mrf.mxu1  ;;  %v2631_v52 = vpop.f32.mrf.mxu0 }
 0x1f4   :  { %v1690_v29 = vmax.f32 %v1641_v22, 0.0  ;;  %v1586_v41 = vmax.f32 %v1177_v30, %v1418_v8  ;;  %v4883_v52 = vld [vmem:[#allocation5_spill] sm:$0xff] }
 0x1f5   :  { %v2810_v45 = vpop.f32.mrf.mxu1  ;;  %v1014_v47 = vpop.f32.mrf.mxu0 }
 0x1f6   :  { %1739 = vst [vmem:[%s4755_s3 + $0x90] sm:$0xff] %v1690_v29  ;;  %v1642_v3 = vadd.f32 %v4410_v60, %v1586_v41  ;;  %v1178_v13 = vmax.f32 %v4874_v5, %v1014_v47  ;;  %v4884_v29 = vld [vmem:[#allocation6_spill] sm:$0xff] }
 0x1f7   :  { %v1423_v39 = vpop.f32.mrf.mxu1  ;;  %v2634_v43 = vpop.f32.mrf.mxu0  ;;  %v4885_v41 = vmax.f32 %v4883_v52, %v4884_v29 }
 0x1f8   :  { %v1691_v25 = vmax.f32 %v1642_v3, 0.0  ;;  %v1587_v48 = vmax.f32 %v1178_v13, %v1423_v39 }
 0x1f9   :  { %v2813_v24 = vpop.f32.mrf.mxu1  ;;  %v1019_v26 = vpop.f32.mrf.mxu0 }
 0x1fa   :  { %1740 = vst [vmem:[%s4755_s3 + $0x98] sm:$0xff] %v1691_v25  ;;  %v1643_v54 = vadd.f32 %v4410_v60, %v1587_v48  ;;  %v1179_v53 = vmax.f32 %v4875_v7, %v1019_v26  ;;  %v4886_v48 = vld [vmem:[#allocation7_spill] sm:$0xff]  ;;  %v4887_v24 = vld [vmem:[#allocation8_spill] sm:$0xff] }
 0x1fb   :  { %v1428_v57 = vpop.f32.mrf.mxu1  ;;  %v2637_v46 = vpop.f32.mrf.mxu0  ;;  %v4888_v26 = vmax.f32 %v4886_v48, %v4887_v24 }
 0x1fc   :  { %v1692_v44 = vmax.f32 %v1643_v54, 0.0  ;;  %v1588_v62 = vmax.f32 %v1179_v53, %v1428_v57 }
 0x1fd   :  { %v2816_v51 = vpop.f32.mrf.mxu1  ;;  %v1024_v58 = vpop.f32.mrf.mxu0 }
 0x1fe   :  { %1741 = vst [vmem:[%s4755_s3 + $0xa0] sm:$0xff] %v1692_v44  ;;  %v1644_v21 = vadd.f32 %v4410_v60, %v1588_v62  ;;  %v1180_v42 = vmax.f32 %v4876_v23, %v1024_v58  ;;  %v4889_v58 = vld [vmem:[#allocation9_spill] sm:$0xff] }
 0x1ff   :  { %v1433_v10 = vpop.f32.mrf.mxu1  ;;  %v2640_v31 = vpop.f32.mrf.mxu0 }
 0x200   :  { %v1693_v1 = vmax.f32 %v1644_v21, 0.0  ;;  %v1589_v36 = vmax.f32 %v1180_v42, %v1433_v10  ;;  %v4890_v21 = vld [vmem:[#allocation10_spill] sm:$0xff] }
 0x201   :  { %v2819_v33 = vpop.f32.mrf.mxu1  ;;  %v1029_v2 = vpop.f32.mrf.mxu0  ;;  %v4891_v23 = vmax.f32 %v4889_v58, %v4890_v21 }
 0x202   :  { %1742 = vst [vmem:[%s4755_s3 + $0xa8] sm:$0xff] %v1693_v1  ;;  %v1645_v11 = vadd.f32 %v4410_v60, %v1589_v36  ;;  %v1181_v6 = vmax.f32 %v4877_v16, %v1029_v2  ;;  %v4892_v16 = vld [vmem:[#allocation11_spill] sm:$0xff] }
 0x203   :  { %v1438_v12 = vpop.f32.mrf.mxu1  ;;  %v2643_v63 = vpop.f32.mrf.mxu0 }
 0x204   :  { %v1694_v34 = vmax.f32 %v1645_v11, 0.0  ;;  %v1590_v20 = vmax.f32 %v1181_v6, %v1438_v12  ;;  %v4893_v6 = vld [vmem:[#allocation12_spill] sm:$0xff] }
 0x205   :  { %v2822_v14 = vpop.f32.mrf.mxu1  ;;  %v1034_v59 = vpop.f32.mrf.mxu0  ;;  %v4894_v12 = vmax.f32 %v4892_v16, %v4893_v6 }
 0x206   :  { %1743 = vst [vmem:[%s4755_s3 + $0xb0] sm:$0xff] %v1694_v34  ;;  %v1646_v61 = vadd.f32 %v4410_v60, %v1590_v20  ;;  %v1182_v37 = vmax.f32 %v4879_v32, %v1034_v59 }
 0x207   :  { %v1443_v0 = vpop.f32.mrf.mxu1  ;;  %v2646_v15 = vpop.f32.mrf.mxu0 }
 0x208   :  { %v1695_v9 = vmax.f32 %v1646_v61, 0.0  ;;  %v1591_v50 = vmax.f32 %v1182_v37, %v1443_v0  ;;  %v4895_v37 = vld [vmem:[#allocation13_spill] sm:$0xff]  ;;  %v4896_v0 = vld [vmem:[#allocation14_spill] sm:$0xff] }
 0x209   :  { %v2825_v18 = vpop.f32.mrf.mxu1  ;;  %v1039_v38 = vpop.f32.mrf.mxu0  ;;  %v4897_v15 = vmax.f32 %v4895_v37, %v4896_v0 }
 0x20a   :  { %1744 = vst [vmem:[%s4755_s3 + $0xb8] sm:$0xff] %v1695_v9  ;;  %v1647_v40 = vadd.f32 %v4410_v60, %v1591_v50  ;;  %v1183_v4 = vmax.f32 %v4882_v55, %v1039_v38 }
 0x20b   :  { %v1448_v19 = vpop.f32.mrf.mxu1  ;;  %v2649_v35 = vpop.f32.mrf.mxu0 }
 0x20c   :  { %v1696_v49 = vmax.f32 %v1647_v40, 0.0  ;;  %v1592_v22 = vmax.f32 %v1183_v4, %v1448_v19  ;;  %v4898_v4 = vld [vmem:[#allocation15_spill] sm:$0xff]  ;;  %v4899_v19 = vld [vmem:[#allocation16_spill] sm:$0xff] }
 0x20d   :  { %v2828_v27 = vpop.f32.mrf.mxu1  ;;  %v1044_v30 = vpop.f32.mrf.mxu0  ;;  %v4900_v35 = vmax.f32 %v4898_v4, %v4899_v19 }
 0x20e   :  { %1745 = vst [vmem:[%s4755_s3 + $0xc0] sm:$0xff] %v1696_v49  ;;  %v1648_v8 = vadd.f32 %v4410_v60, %v1592_v22  ;;  %v1184_v45 = vmax.f32 %v4885_v41, %v1044_v30 }
 0x20f   :  { %v1453_v47 = vpop.f32.mrf.mxu1  ;;  %v2652_v3 = vpop.f32.mrf.mxu0 }
 0x210   :  { %v1697_v5 = vmax.f32 %v1648_v8, 0.0  ;;  %v1593_v13 = vmax.f32 %v1184_v45, %v1453_v47  ;;  %v4901_v45 = vld [vmem:[#allocation17_spill] sm:$0xff]  ;;  %v4902_v47 = vld [vmem:[#allocation18_spill] sm:$0xff] }
 0x211   :  { %v2831_v39 = vpop.f32.mrf.mxu1  ;;  %v1049_v43 = vpop.f32.mrf.mxu0  ;;  %v4903_v3 = vmax.f32 %v4901_v45, %v4902_v47 }
 0x212   :  { %1746 = vst [vmem:[%s4755_s3 + $0xc8] sm:$0xff] %v1697_v5  ;;  %v1649_v25 = vadd.f32 %v4410_v60, %v1593_v13  ;;  %v1185_v54 = vmax.f32 %v4888_v26, %v1049_v43 }
 0x213   :  { %v1458_v7 = vpop.f32.mrf.mxu1  ;;  %v2655_v53 = vpop.f32.mrf.mxu0 }
 0x214   :  { %v1698_v57 = vmax.f32 %v1649_v25, 0.0  ;;  %v1594_v46 = vmax.f32 %v1185_v54, %v1458_v7  ;;  %v4904_v54 = vld [vmem:[#allocation19_spill] sm:$0xff]  ;;  %v4905_v7 = vld [vmem:[#allocation20_spill] sm:$0xff] }
 0x215   :  { %v2834_v44 = vpop.f32.mrf.mxu1  ;;  %v1054_v62 = vpop.f32.mrf.mxu0  ;;  %v4906_v53 = vmax.f32 %v4904_v54, %v4905_v7 }
 0x216   :  { %1747 = vst [vmem:[%s4755_s3 + $0xd0] sm:$0xff] %v1698_v57  ;;  %v1650_v51 = vadd.f32 %v4410_v60, %v1594_v46  ;;  %v1186_v42 = vmax.f32 %v4891_v23, %v1054_v62 }
 0x217   :  { %v1463_v10 = vpop.f32.mrf.mxu1  ;;  %v2658_v31 = vpop.f32.mrf.mxu0 }
 0x218   :  { %v1699_v1 = vmax.f32 %v1650_v51, 0.0  ;;  %v1595_v36 = vmax.f32 %v1186_v42, %v1463_v10  ;;  %v4907_v42 = vld [vmem:[#allocation21_spill] sm:$0xff]  ;;  %v4908_v10 = vld [vmem:[#allocation22_spill] sm:$0xff] }
 0x219   :  { %v2837_v33 = vpop.f32.mrf.mxu1  ;;  %v1059_v2 = vpop.f32.mrf.mxu0  ;;  %v4909_v31 = vmax.f32 %v4907_v42, %v4908_v10 }
 0x21a   :  { %1748 = vst [vmem:[%s4755_s3 + $0xd8] sm:$0xff] %v1699_v1  ;;  %v1651_v11 = vadd.f32 %v4410_v60, %v1595_v36  ;;  %v1187_v63 = vmax.f32 %v4894_v12, %v1059_v2 }
 0x21b   :  { %v1468_v34 = vpop.f32.mrf.mxu1  ;;  %v2661_v20 = vpop.f32.mrf.mxu0 }
 0x21c   :  { %v1700_v14 = vmax.f32 %v1651_v11, 0.0  ;;  %v1596_v59 = vmax.f32 %v1187_v63, %v1468_v34  ;;  %v4910_v63 = vld [vmem:[#allocation23_spill] sm:$0xff]  ;;  %v4911_v34 = vld [vmem:[#allocation24_spill] sm:$0xff] }
 0x21d   :  { %v2840_v61 = vpop.f32.mrf.mxu1  ;;  %v1064_v28 = vpop.f32.mrf.mxu0  ;;  %v4912_v20 = vmax.f32 %v4910_v63, %v4911_v34 }
 0x21e   :  { %1749 = vst [vmem:[%s4755_s3 + $0xe0] sm:$0xff] %v1700_v14  ;;  %v1652_v32 = vadd.f32 %v4410_v60, %v1596_v59  ;;  %v1188_v9 = vmax.f32 %v4897_v15, %v1064_v28 }
 0x21f   :  { %v1473_v50 = vpop.f32.mrf.mxu1  ;;  %v2664_v18 = vpop.f32.mrf.mxu0 }
 0x220   :  { %v1701_v38 = vmax.f32 %v1652_v32, 0.0  ;;  %v1597_v40 = vmax.f32 %v1188_v9, %v1473_v50  ;;  %v4913_v9 = vld [vmem:[#allocation25_spill] sm:$0xff]  ;;  %v4914_v50 = vld [vmem:[#allocation26_spill] sm:$0xff] }
 0x221   :  { %v2843_v56 = vpop.f32.mrf.mxu1  ;;  %v1069_v17 = vpop.f32.mrf.mxu0  ;;  %v4915_v18 = vmax.f32 %v4913_v9, %v4914_v50 }
 0x222   :  { %1750 = vst [vmem:[%s4755_s3 + $0xe8] sm:$0xff] %v1701_v38  ;;  %v1653_v55 = vadd.f32 %v4410_v60, %v1597_v40  ;;  %v1189_v49 = vmax.f32 %v4900_v35, %v1069_v17 }
 0x223   :  { %v1478_v22 = vpop.f32.mrf.mxu1  ;;  %v2667_v27 = vpop.f32.mrf.mxu0 }
 0x224   :  { %v1702_v30 = vmax.f32 %v1653_v55, 0.0  ;;  %v1598_v8 = vmax.f32 %v1189_v49, %v1478_v22  ;;  %v4916_v49 = vld [vmem:[#allocation27_spill] sm:$0xff]  ;;  %v4917_v22 = vld [vmem:[#allocation28_spill] sm:$0xff] }
 0x225   :  { %v2846_v52 = vpop.f32.mrf.mxu1  ;;  %v1074_v29 = vpop.f32.mrf.mxu0  ;;  %v4918_v27 = vmax.f32 %v4916_v49, %v4917_v22 }
 0x226   :  { %1751 = vst [vmem:[%s4755_s3 + $0xf0] sm:$0xff] %v1702_v30  ;;  %v1654_v41 = vadd.f32 %v4410_v60, %v1598_v8  ;;  %v1190_v5 = vmax.f32 %v4903_v3, %v1074_v29 }
 0x227   :  { %v1483_v13 = vpop.f32.mrf.mxu1  ;;  %v2670_v39 = vpop.f32.mrf.mxu0 }
 0x228   :  { %v1703_v43 = vmax.f32 %v1654_v41, 0.0  ;;  %v1599_v25 = vmax.f32 %v1190_v5, %v1483_v13  ;;  %v4919_v5 = vld [vmem:[#allocation29_spill] sm:$0xff]  ;;  %v4920_v13 = vld [vmem:[#allocation30_spill] sm:$0xff] }
 0x229   :  { %v2849_v48 = vpop.f32.mrf.mxu1  ;;  %v1079_v24 = vpop.f32.mrf.mxu0  ;;  %v4921_v39 = vmax.f32 %v4919_v5, %v4920_v13 }
 0x22a   :  { %1752 = vst [vmem:[%s4755_s3 + $0xf8] sm:$0xff] %v1703_v43  ;;  %v1655_v26 = vadd.f32 %v4410_v60, %v1599_v25  ;;  %v1191_v57 = vmax.f32 %v4906_v53, %v1079_v24 }
 0x22b   :  { %v1488_v46 = vpop.f32.mrf.mxu1  ;;  %v2673_v44 = vpop.f32.mrf.mxu0 }
 0x22c   :  { %v1704_v62 = vmax.f32 %v1655_v26, 0.0  ;;  %v1600_v51 = vmax.f32 %v1191_v57, %v1488_v46  ;;  %v4922_v57 = vld [vmem:[#allocation31_spill] sm:$0xff]  ;;  %v4923_v46 = vld [vmem:[#allocation32_spill] sm:$0xff] }
 0x22d   :  { %v2852_v58 = vpop.f32.mrf.mxu1  ;;  %v1084_v21 = vpop.f32.mrf.mxu0  ;;  %v4924_v44 = vmax.f32 %v4922_v57, %v4923_v46 }
 0x22e   :  { %1753 = vst [vmem:[%s4755_s3 + $0x100] sm:$0xff] %v1704_v62  ;;  %v1656_v23 = vadd.f32 %v4410_v60, %v1600_v51  ;;  %v1192_v1 = vmax.f32 %v4909_v31, %v1084_v21 }
 0x22f   :  { %v1493_v36 = vpop.f32.mrf.mxu1  ;;  %v2676_v33 = vpop.f32.mrf.mxu0 }
 0x230   :  { %v1705_v2 = vmax.f32 %v1656_v23, 0.0  ;;  %v1601_v11 = vmax.f32 %v1192_v1, %v1493_v36  ;;  %v4925_v1 = vld [vmem:[#allocation33_spill] sm:$0xff]  ;;  %v4926_v36 = vld [vmem:[#allocation34_spill] sm:$0xff] }
 0x231   :  { %v2855_v16 = vpop.f32.mrf.mxu1  ;;  %v1089_v6 = vpop.f32.mrf.mxu0  ;;  %v4927_v33 = vmax.f32 %v4925_v1, %v4926_v36 }
 0x232   :  { %1754 = vst [vmem:[%s4755_s3 + $0x108] sm:$0xff] %v1705_v2  ;;  %v1657_v12 = vadd.f32 %v4410_v60, %v1601_v11  ;;  %v1193_v14 = vmax.f32 %v4912_v20, %v1089_v6 }
 0x233   :  { %v1498_v59 = vpop.f32.mrf.mxu1  ;;  %v2679_v61 = vpop.f32.mrf.mxu0 }
 0x234   :  { %v1706_v28 = vmax.f32 %v1657_v12, 0.0  ;;  %v1602_v32 = vmax.f32 %v1193_v14, %v1498_v59  ;;  %v4928_v14 = vld [vmem:[#allocation35_spill] sm:$0xff]  ;;  %v4929_v59 = vld [vmem:[#allocation36_spill] sm:$0xff] }
 0x235   :  { %v2858_v37 = vpop.f32.mrf.mxu1  ;;  %v1094_v0 = vpop.f32.mrf.mxu0  ;;  %v4930_v61 = vmax.f32 %v4928_v14, %v4929_v59 }
 0x236   :  { %1755 = vst [vmem:[%s4755_s3 + $0x110] sm:$0xff] %v1706_v28  ;;  %v1658_v15 = vadd.f32 %v4410_v60, %v1602_v32  ;;  %v1194_v38 = vmax.f32 %v4915_v18, %v1094_v0 }
 0x237   :  { %v1503_v40 = vpop.f32.mrf.mxu1  ;;  %v2682_v56 = vpop.f32.mrf.mxu0 }
 0x238   :  { %v1707_v17 = vmax.f32 %v1658_v15, 0.0  ;;  %v1603_v55 = vmax.f32 %v1194_v38, %v1503_v40  ;;  %v4931_v38 = vld [vmem:[#allocation37_spill] sm:$0xff]  ;;  %v4932_v40 = vld [vmem:[#allocation38_spill] sm:$0xff] }
 0x239   :  { %v2861_v4 = vpop.f32.mrf.mxu1  ;;  %v1099_v19 = vpop.f32.mrf.mxu0  ;;  %v4933_v56 = vmax.f32 %v4931_v38, %v4932_v40 }
 0x23a   :  { %1756 = vst [vmem:[%s4755_s3 + $0x118] sm:$0xff] %v1707_v17  ;;  %v1659_v35 = vadd.f32 %v4410_v60, %v1603_v55  ;;  %v1195_v30 = vmax.f32 %v4918_v27, %v1099_v19 }
 0x23b   :  { %v1508_v8 = vpop.f32.mrf.mxu1  ;;  %v2685_v52 = vpop.f32.mrf.mxu0 }
 0x23c   :  { %v1708_v29 = vmax.f32 %v1659_v35, 0.0  ;;  %v1604_v41 = vmax.f32 %v1195_v30, %v1508_v8  ;;  %v4934_v30 = vld [vmem:[#allocation39_spill] sm:$0xff]  ;;  %v4935_v8 = vld [vmem:[#allocation40_spill] sm:$0xff] }
 0x23d   :  { %v2864_v45 = vpop.f32.mrf.mxu1  ;;  %v1104_v47 = vpop.f32.mrf.mxu0  ;;  %v4936_v52 = vmax.f32 %v4934_v30, %v4935_v8 }
 0x23e   :  { %1757 = vst [vmem:[%s4755_s3 + $0x120] sm:$0xff] %v1708_v29  ;;  %v1660_v3 = vadd.f32 %v4410_v60, %v1604_v41  ;;  %v1196_v43 = vmax.f32 %v4921_v39, %v1104_v47 }
 0x23f   :  { %v1513_v25 = vpop.f32.mrf.mxu1  ;;  %v2688_v48 = vpop.f32.mrf.mxu0 }
 0x240   :  { %v1709_v24 = vmax.f32 %v1660_v3, 0.0  ;;  %v1605_v26 = vmax.f32 %v1196_v43, %v1513_v25  ;;  %v4937_v43 = vld [vmem:[#allocation41_spill] sm:$0xff]  ;;  %v4938_v25 = vld [vmem:[#allocation42_spill] sm:$0xff] }
 0x241   :  { %v2867_v54 = vpop.f32.mrf.mxu1  ;;  %v1109_v7 = vpop.f32.mrf.mxu0  ;;  %v4939_v48 = vmax.f32 %v4937_v43, %v4938_v25 }
 0x242   :  { %1758 = vst [vmem:[%s4755_s3 + $0x128] sm:$0xff] %v1709_v24  ;;  %v1661_v53 = vadd.f32 %v4410_v60, %v1605_v26  ;;  %v1197_v62 = vmax.f32 %v4924_v44, %v1109_v7 }
 0x243   :  { %v1518_v51 = vpop.f32.mrf.mxu1  ;;  %v2691_v58 = vpop.f32.mrf.mxu0 }
 0x244   :  { %v1710_v21 = vmax.f32 %v1661_v53, 0.0  ;;  %v1606_v23 = vmax.f32 %v1197_v62, %v1518_v51  ;;  %v4940_v62 = vld [vmem:[#allocation43_spill] sm:$0xff]  ;;  %v4941_v51 = vld [vmem:[#allocation44_spill] sm:$0xff] }
 0x245   :  { %v2870_v42 = vpop.f32.mrf.mxu1  ;;  %v1114_v10 = vpop.f32.mrf.mxu0  ;;  %v4942_v58 = vmax.f32 %v4940_v62, %v4941_v51 }
 0x246   :  { %1759 = vst [vmem:[%s4755_s3 + $0x130] sm:$0xff] %v1710_v21  ;;  %v1662_v31 = vadd.f32 %v4410_v60, %v1606_v23  ;;  %v1198_v2 = vmax.f32 %v4927_v33, %v1114_v10 }
 0x247   :  { %v1523_v11 = vpop.f32.mrf.mxu1  ;;  %v2694_v16 = vpop.f32.mrf.mxu0 }
 0x248   :  { %v1711_v6 = vmax.f32 %v1662_v31, 0.0  ;;  %v1607_v12 = vmax.f32 %v1198_v2, %v1523_v11  ;;  %v4943_v2 = vld [vmem:[#allocation45_spill] sm:$0xff]  ;;  %v4944_v11 = vld [vmem:[#allocation46_spill] sm:$0xff] }
 0x249   :  { %v2873_v63 = vpop.f32.mrf.mxu1  ;;  %v1119_v34 = vpop.f32.mrf.mxu0  ;;  %v4945_v16 = vmax.f32 %v4943_v2, %v4944_v11 }
 0x24a   :  { %1760 = vst [vmem:[%s4755_s3 + $0x138] sm:$0xff] %v1711_v6  ;;  %v1663_v20 = vadd.f32 %v4410_v60, %v1607_v12  ;;  %v1199_v28 = vmax.f32 %v4930_v61, %v1119_v34 }
 0x24b   :  { %v1528_v32 = vpop.f32.mrf.mxu1  ;;  %v2697_v37 = vpop.f32.mrf.mxu0 }
 0x24c   :  { %v1712_v0 = vmax.f32 %v1663_v20, 0.0  ;;  %v1608_v15 = vmax.f32 %v1199_v28, %v1528_v32  ;;  %v4946_v28 = vld [vmem:[#allocation47_spill] sm:$0xff]  ;;  %v4947_v32 = vld [vmem:[#allocation48_spill] sm:$0xff] }
 0x24d   :  { %v2876_v9 = vpop.f32.mrf.mxu1  ;;  %v1124_v50 = vpop.f32.mrf.mxu0  ;;  %v4948_v37 = vmax.f32 %v4946_v28, %v4947_v32 }
 0x24e   :  { %1761 = vst [vmem:[%s4755_s3 + $0x140] sm:$0xff] %v1712_v0  ;;  %v1664_v18 = vadd.f32 %v4410_v60, %v1608_v15  ;;  %v1200_v17 = vmax.f32 %v4933_v56, %v1124_v50 }
 0x24f   :  { %v1533_v55 = vpop.f32.mrf.mxu1  ;;  %v2700_v4 = vpop.f32.mrf.mxu0 }
 0x250   :  { %v1713_v19 = vmax.f32 %v1664_v18, 0.0  ;;  %v1609_v35 = vmax.f32 %v1200_v17, %v1533_v55  ;;  %v4949_v17 = vld [vmem:[#allocation49_spill] sm:$0xff]  ;;  %v4950_v55 = vld [vmem:[#allocation50_spill] sm:$0xff] }
 0x251   :  { %v2879_v49 = vpop.f32.mrf.mxu1  ;;  %v1129_v22 = vpop.f32.mrf.mxu0  ;;  %v4951_v4 = vmax.f32 %v4949_v17, %v4950_v55 }
 0x252   :  { %1762 = vst [vmem:[%s4755_s3 + $0x148] sm:$0xff] %v1713_v19  ;;  %v1665_v27 = vadd.f32 %v4410_v60, %v1609_v35  ;;  %v1201_v29 = vmax.f32 %v4936_v52, %v1129_v22 }
 0x253   :  { %v1538_v41 = vpop.f32.mrf.mxu1  ;;  %v2703_v45 = vpop.f32.mrf.mxu0 }
 0x254   :  { %v1714_v47 = vmax.f32 %v1665_v27, 0.0  ;;  %v1610_v3 = vmax.f32 %v1201_v29, %v1538_v41 }
 0x255   :  { %v2882_v5 = vpop.f32.mrf.mxu1  ;;  %v1134_v13 = vpop.f32.mrf.mxu0 }
 0x256   :  { %1763 = vst [vmem:[%s4755_s3 + $0x150] sm:$0xff] %v1714_v47  ;;  %v1666_v39 = vadd.f32 %v4410_v60, %v1610_v3  ;;  %v1202_v24 = vmax.f32 %v4939_v48, %v1134_v13 }
 0x257   :  { %v1543_v26 = vpop.f32.mrf.mxu1  ;;  %v2706_v54 = vpop.f32.mrf.mxu0 }
 0x258   :  { %v1715_v7 = vmax.f32 %v1666_v39, 0.0  ;;  %v1611_v53 = vmax.f32 %v1202_v24, %v1543_v26 }
 0x259   :  { %v2885_v57 = vpop.f32.mrf.mxu1  ;;  %v1139_v46 = vpop.f32.mrf.mxu0 }
 0x25a   :  { %1764 = vst [vmem:[%s4755_s3 + $0x158] sm:$0xff] %v1715_v7  ;;  %v1667_v44 = vadd.f32 %v4410_v60, %v1611_v53  ;;  %v1203_v21 = vmax.f32 %v4942_v58, %v1139_v46 }
 0x25b   :  { %v1548_v23 = vpop.f32.mrf.mxu1  ;;  %v2709_v42 = vpop.f32.mrf.mxu0 }
 0x25c   :  { %v1716_v10 = vmax.f32 %v1667_v44, 0.0  ;;  %v1612_v31 = vmax.f32 %v1203_v21, %v1548_v23 }
 0x25d   :  { %v2888_v1 = vpop.f32.mrf.mxu1  ;;  %v1144_v36 = vpop.f32.mrf.mxu0 }
 0x25e   :  { %1765 = vst [vmem:[%s4755_s3 + $0x160] sm:$0xff] %v1716_v10  ;;  %v1668_v33 = vadd.f32 %v4410_v60, %v1612_v31  ;;  %v1204_v6 = vmax.f32 %v4945_v16, %v1144_v36 }
 0x25f   :  { %v1553_v12 = vpop.f32.mrf.mxu1  ;;  %v2712_v63 = vpop.f32.mrf.mxu0 }
 0x260   :  { %v1717_v34 = vmax.f32 %v1668_v33, 0.0  ;;  %v1613_v20 = vmax.f32 %v1204_v6, %v1553_v12 }
 0x261   :  { %v2891_v14 = vpop.f32.mrf.mxu1  ;;  %v1149_v59 = vpop.f32.mrf.mxu0 }
 0x262   :  { %1766 = vst [vmem:[%s4755_s3 + $0x168] sm:$0xff] %v1717_v34  ;;  %v1669_v61 = vadd.f32 %v4410_v60, %v1613_v20  ;;  %v1205_v0 = vmax.f32 %v4948_v37, %v1149_v59 }
 0x263   :  { %v1558_v15 = vpop.f32.mrf.mxu1  ;;  %v2715_v9 = vpop.f32.mrf.mxu0 }
 0x264   :  { %v1718_v50 = vmax.f32 %v1669_v61, 0.0  ;;  %v1614_v18 = vmax.f32 %v1205_v0, %v1558_v15 }
 0x265   :  { %v2894_v38 = vpop.f32.mrf.mxu1  ;;  %v1154_v40 = vpop.f32.mrf.mxu0 }
 0x266   :  { %1767 = vst [vmem:[%s4755_s3 + $0x170] sm:$0xff] %v1718_v50  ;;  %v1670_v56 = vadd.f32 %v4410_v60, %v1614_v18  ;;  %v1206_v19 = vmax.f32 %v4951_v4, %v1154_v40 }
 0x267   :  { %v1563_v35 = vpop.f32.mrf.mxu1  ;;  %v2718_v49 = vpop.f32.mrf.mxu0 }
 0x268   :  { %v1719_v22 = vmax.f32 %v1670_v56, 0.0  ;;  %v1615_v27 = vmax.f32 %v1206_v19, %v1563_v35 }
 0x269   :  { %v2897_v30 = vpop.f32.mrf.mxu1 }
 0x26a   :  { %1768 = vst [vmem:[%s4755_s3 + $0x178] sm:$0xff] %v1719_v22  ;;  %v1671_v8 = vadd.f32 %v4410_v60, %v1615_v27 }
 0x26c   :  { %v1720_v52 = vmax.f32 %v1671_v8, 0.0 }
 0x26e   :  { %1769 = vst [vmem:[%s4755_s3 + $0x180] sm:$0xff] %v1720_v52 }

// kernel: net_forward.3
= control target key start
LH: loop header
LB: loop body
LE: loop exit
PB: predicated region body
PF: predicated region fallthrough
CT: control target
= control target key end

     0   :  { %s4438_s0 = inlined_call_operand.vmem [shape: f32[4,50,256], index: 0, kind: input, shape index: {}]   ;;  %s4439_s1 = inlined_call_operand.vmem [shape: f32[256,128], index: 1, kind: input, shape index: {}]   ;;  %s4440_s2 = inlined_call_operand.vmem [shape: f32[1,128], index: 2, kind: input, shape index: {}]   ;;  %s4441_s3 = inlined_call_operand.vmem [shape: f32[25,16,128], index: 3, kind: input, shape index: {}]   ;;  %s4442_s4 = inlined_call_operand.vmem [shape: f32[1,128], index: 4, kind: input, shape index: {}]   ;;  %s4443_s5 = inlined_call_operand.vmem [shape: f32[128,128], index: 5, kind: input, shape index: {}]   ;;  %s4444_s6 = inlined_call_operand.vmem [shape: f32[1,128], index: 6, kind: input, shape index: {}]   ;;  %s4445_s7 = inlined_call_operand.vmem [shape: f32[128,10], index: 7, kind: input, shape index: {}]   ;;  %s4446_s8 = inlined_call_operand.vmem [shape: f32[1,10], index: 8, kind: input, shape index: {}]   ;;  %s4447_s9 = inlined_call_operand.hbm [shape: f32[2,10], index: 9, kind: output, shape index: {}]  }
   0x1   :  { %v3467_v0 = vld [vmem:[%s4439_s1 + $0xf8] sm:$0xff]  ;;  %v3477_v2 = vld [vmem:[%s4439_s1 + $0xf0] sm:$0xff]  ;;  %v3491_v4 = vld [vmem:[%s4439_s1 + $0xe8] sm:$0xff] }
   0x2   :  { %v3472_v1 = vld [vmem:[%s4439_s1 + $0x78] sm:$0xff]  ;;  %2820 = vmatprep.subr.mxu0 %v3467_v0  ;;  %2873 = vmatprep.subr.mxu1 %v3467_v0  ;;  %v3484_v3 = vld [vmem:[%s4439_s1 + $0x70] sm:$0xff]  ;;  %v3498_v5 = vld [vmem:[%s4439_s1 + $0x68] sm:$0xff] }
   0x3   :  { %2821 = vmatpush3.msra.mxu0 %v3472_v1  ;;  %2874 = vmatpush3.msra.mxu1 %v3472_v1  ;;  %v3505_v6 = vld [vmem:[%s4439_s1 + $0xe0] sm:$0xff]  ;;  %v3519_v8 = vld [vmem:[%s4439_s1 + $0xd8] sm:$0xff]  ;;  %v3533_v10 = vld [vmem:[%s4439_s1 + $0xd0] sm:$0xff] }
   0x4   :  { %2822 = vmatprep.subr.mxu0 %v3477_v2  ;;  %2875 = vmatprep.subr.mxu1 %v3477_v2  ;;  %v3512_v7 = vld [vmem:[%s4439_s1 + $0x60] sm:$0xff]  ;;  %v3526_v9 = vld [vmem:[%s4439_s1 + $0x58] sm:$0xff]  ;;  %v3540_v11 = vld [vmem:[%s4439_s1 + $0x50] sm:$0xff] }
   0x5   :  { %2823 = vmatpush3.msra.mxu0 %v3484_v3  ;;  %2876 = vmatpush3.msra.mxu1 %v3484_v3  ;;  %v3547_v12 = vld [vmem:[%s4439_s1 + $0xc8] sm:$0xff]  ;;  %v3561_v14 = vld [vmem:[%s4439_s1 + $0xc0] sm:$0xff]  ;;  %v3575_v16 = vld [vmem:[%s4439_s1 + $0xb8] sm:$0xff] }
   0x6   :  { %2824 = vmatprep.subr.mxu0 %v3491_v4  ;;  %2877 = vmatprep.subr.mxu1 %v3491_v4  ;;  %v3554_v13 = vld [vmem:[%s4439_s1 + $0x48] sm:$0xff]  ;;  %v3568_v15 = vld [vmem:[%s4439_s1 + $0x40] sm:$0xff]  ;;  %v3582_v17 = vld [vmem:[%s4439_s1 + $0x38] sm:$0xff] }
   0x7   :  { %2825 = vmatpush3.msra.mxu0 %v3498_v5  ;;  %2878 = vmatpush3.msra.mxu1 %v3498_v5  ;;  %v3589_v18 = vld [vmem:[%s4439_s1 + $0xb0] sm:$0xff]  ;;  %v3603_v20 = vld [vmem:[%s4439_s1 + $0xa8] sm:$0xff]  ;;  %v3617_v22 = vld [vmem:[%s4439_s1 + $0xa0] sm:$0xff] }
   0x8   :  { %2826 = vmatprep.subr.mxu0 %v3505_v6  ;;  %2879 = vmatprep.subr.mxu1 %v3505_v6  ;;  %v3596_v19 = vld [vmem:[%s4439_s1 + $0x30] sm:$0xff]  ;;  %v3610_v21 = vld [vmem:[%s4439_s1 + $0x28] sm:$0xff]  ;;  %v3624_v23 = vld [vmem:[%s4439_s1 + $0x20] sm:$0xff] }
   0x9   :  { %2827 = vmatpush3.msra.mxu0 %v3512_v7  ;;  %2880 = vmatpush3.msra.mxu1 %v3512_v7  ;;  %v3631_v24 = vld [vmem:[%s4439_s1 + $0x98] sm:$0xff]  ;;  %v3645_v26 = vld [vmem:[%s4439_s1 + $0x90] sm:$0xff]  ;;  %v3659_v28 = vld [vmem:[%s4439_s1 + $0x88] sm:$0xff] }
   0xa   :  { %2828 = vmatprep.subr.mxu0 %v3519_v8  ;;  %2881 = vmatprep.subr.mxu1 %v3519_v8  ;;  %v3638_v25 = vld [vmem:[%s4439_s1 + $0x18] sm:$0xff]  ;;  %v3652_v27 = vld [vmem:[%s4439_s1 + $0x10] sm:$0xff]  ;;  %v3666_v29 = vld [vmem:[%s4439_s1 + $0x8] sm:$0xff] }
   0xb   :  { %2829 = vmatpush3.msra.mxu0 %v3526_v9  ;;  %2882 = vmatpush3.msra.mxu1 %v3526_v9  ;;  %v3673_v30 = vld [vmem:[%s4439_s1 + $0x80] sm:$0xff]  ;;  %v34_v32 = vld [vmem:[%s4438_s0 + $0x8] sm:$0xff] }
   0xc   :  { %2830 = vmatprep.subr.mxu0 %v3533_v10  ;;  %2883 = vmatprep.subr.mxu1 %v3533_v10  ;;  %v3680_v31 = vld [vmem:[%s4439_s1] sm:$0xff] }
   0xd   :  { %2831 = vmatpush3.msra.mxu0 %v3540_v11  ;;  %2884 = vmatpush3.msra.mxu1 %v3540_v11 }
   0xe   :  { %2832 = vmatprep.subr.mxu0 %v3547_v12  ;;  %2885 = vmatprep.subr.mxu1 %v3547_v12 }
   0xf   :  { %2833 = vmatpush3.msra.mxu0 %v3554_v13  ;;  %2886 = vmatpush3.msra.mxu1 %v3554_v13 }
  0x10   :  { %2834 = vmatprep.subr.mxu0 %v3561_v14  ;;  %2887 = vmatprep.subr.mxu1 %v3561_v14 }
  0x11   :  { %2835 = vmatpush3.msra.mxu0 %v3568_v15  ;;  %2888 = vmatpush3.msra.mxu1 %v3568_v15 }
  0x12   :  { %2836 = vmatprep.subr.mxu0 %v3575_v16  ;;  %2889 = vmatprep.subr.mxu1 %v3575_v16 }
  0x13   :  { %2837 = vmatpush3.msra.mxu0 %v3582_v17  ;;  %2890 = vmatpush3.msra.mxu1 %v3582_v17 }
  0x14   :  { %2838 = vmatprep.subr.mxu0 %v3589_v18  ;;  %2891 = vmatprep.subr.mxu1 %v3589_v18 }
  0x15   :  { %2839 = vmatpush3.msra.mxu0 %v3596_v19  ;;  %2892 = vmatpush3.msra.mxu1 %v3596_v19 }
  0x16   :  { %2840 = vmatprep.subr.mxu0 %v3603_v20  ;;  %2893 = vmatprep.subr.mxu1 %v3603_v20 }
  0x17   :  { %2841 = vmatpush3.msra.mxu0 %v3610_v21  ;;  %2894 = vmatpush3.msra.mxu1 %v3610_v21 }
  0x18   :  { %2842 = vmatprep.subr.mxu0 %v3617_v22  ;;  %2895 = vmatprep.subr.mxu1 %v3617_v22 }
  0x19   :  { %2843 = vmatpush3.msra.mxu0 %v3624_v23  ;;  %2896 = vmatpush3.msra.mxu1 %v3624_v23 }
  0x1a   :  { %2844 = vmatprep.subr.mxu0 %v3631_v24  ;;  %2897 = vmatprep.subr.mxu1 %v3631_v24 }
  0x1b   :  { %2845 = vmatpush3.msra.mxu0 %v3638_v25  ;;  %2898 = vmatpush3.msra.mxu1 %v3638_v25 }
  0x1c   :  { %2846 = vmatprep.subr.mxu0 %v3645_v26  ;;  %2899 = vmatprep.subr.mxu1 %v3645_v26 }
  0x1d   :  { %2847 = vmatpush3.msra.mxu0 %v3652_v27  ;;  %2900 = vmatpush3.msra.mxu1 %v3652_v27 }
  0x1e   :  { %2848 = vmatprep.subr.mxu0 %v3659_v28  ;;  %2901 = vmatprep.subr.mxu1 %v3659_v28 }
  0x1f   :  { %14 = vsyncpa [#allocation3], 0  ;;  %2849 = vmatpush3.msra.mxu0 %v3666_v29  ;;  %2902 = vmatpush3.msra.mxu1 %v3666_v29  ;;  %v2702_v33 = vld [vmem:[%s4438_s0 + $0x78] sm:$0xff]  ;;  %v33_v34 = vld [vmem:[%s4438_s0] sm:$0xff]  ;;  %vm3412_vm0 = vmmov 0   ;;  %vm573_vm1 = vcmask 130048  }
  0x20   :  { %2850 = vmatprep.subr.mxu0 %v3673_v30  ;;  %2903 = vmatprep.subr.mxu1 %v3673_v30  ;;  %v2701_v35 = vld [vmem:[%s4438_s0 + $0x70] sm:$0xff]  ;;  %v36_v36 = vld [vmem:[%s4438_s0 + $0x18] sm:$0xff]  ;;  %v2704_v37 = vld [vmem:[%s4438_s0 + $0x88] sm:$0xff]  ;;  %s3413_s10 = smov [#allocation2]   ;;  %vm2685_vm2 = vcmask 74752  }
  0x21   :  { %2851 = vmatpush3.msra.mxu0 %v3680_v31  ;;  %143 = vmatprep.mubr.f32.mxu0 %v34_v32  ;;  %v35_v38 = vld [vmem:[%s4438_s0 + $0x10] sm:$0xff]  ;;  %v2703_v39 = vld [vmem:[%s4438_s0 + $0x80] sm:$0xff]  ;;  %v38_v40 = vld [vmem:[%s4438_s0 + $0x28] sm:$0xff]  ;;  %s2693_s11 = sshll.u32 %s3413_s10, 4  ;;  %s2694_s11 = int_to_ptr.vmem [resolvable:$true] %s2693_s11 }
  0x22   :  { %2904 = vmatpush3.msra.mxu1 %v3680_v31  ;;  %258 = vmatprep.mubr.f32.mxu1 %v2702_v33  ;;  %v2706_v41 = vld [vmem:[%s4438_s0 + $0x98] sm:$0xff]  ;;  %v37_v42 = vld [vmem:[%s4438_s0 + $0x20] sm:$0xff]  ;;  %v2705_v43 = vld [vmem:[%s4438_s0 + $0x90] sm:$0xff]  ;;  %p3394_p1 = scmp.lt.s32.totalorder %s2694_s11, %s2694_s11 }
  0x23   :  { %144 = vmatmul.mubr.f32.vlgmr.msra.gmra.mxu0 %v33_v34  ;;  %259 = vmatmul.mubr.f32.vlgmr.msra.gmra.mxu1 %v2701_v35  ;;  %v40_v44 = vld [vmem:[%s4438_s0 + $0x38] sm:$0xff]  ;;  %v2708_v45 = vld [vmem:[%s4438_s0 + $0xa8] sm:$0xff]  ;;  %v39_v46 = vld [vmem:[%s4438_s0 + $0x30] sm:$0xff] }
  0x24   :  { %2926 = vmatprep.subr.mxu0 %v3467_v0  ;;  %2979 = vmatprep.subr.mxu1 %v3467_v0  ;;  %v2707_v47 = vld [vmem:[%s4438_s0 + $0xa0] sm:$0xff]  ;;  %v42_v48 = vld [vmem:[%s4438_s0 + $0x48] sm:$0xff]  ;;  %v2710_v49 = vld [vmem:[%s4438_s0 + $0xb8] sm:$0xff] }
  0x25   :  { %2927 = vmatpush3.msra.mxu0 %v3472_v1  ;;  %2980 = vmatpush3.msra.mxu1 %v3472_v1  ;;  %v41_v50 = vld [vmem:[%s4438_s0 + $0x40] sm:$0xff]  ;;  %v2709_v51 = vld [vmem:[%s4438_s0 + $0xb0] sm:$0xff]  ;;  %v44_v52 = vld [vmem:[%s4438_s0 + $0x58] sm:$0xff] }
  0x26   :  { %2928 = vmatprep.subr.mxu0 %v3477_v2  ;;  %2981 = vmatprep.subr.mxu1 %v3477_v2  ;;  %v2712_v53 = vld [vmem:[%s4438_s0 + $0xc8] sm:$0xff]  ;;  %v43_v54 = vld [vmem:[%s4438_s0 + $0x50] sm:$0xff]  ;;  %v2711_v55 = vld [vmem:[%s4438_s0 + $0xc0] sm:$0xff] }
  0x27   :  { %2929 = vmatpush3.msra.mxu0 %v3484_v3  ;;  %2982 = vmatpush3.msra.mxu1 %v3484_v3  ;;  %v46_v56 = vld [vmem:[%s4438_s0 + $0x68] sm:$0x3]  ;;  %v2714_v57 = vld [vmem:[%s4438_s0 + $0xd8] sm:$0x3]  ;;  %v45_v58 = vld [vmem:[%s4438_s0 + $0x60] sm:$0x3] }
  0x28   :  { %2930 = vmatprep.subr.mxu0 %v3491_v4  ;;  %2983 = vmatprep.subr.mxu1 %v3491_v4  ;;  %v2713_v59 = vld [vmem:[%s4438_s0 + $0xd0] sm:$0x3]  ;;  %v2716_v60 = vld [vmem:[%s4438_s0 + $0xe8] sm:$0xff]  ;;  %v2730_v61 = vld [vmem:[%s4438_s0 + $0x158] sm:$0xff] }
  0x29   :  { %148 = vmatprep.mubr.f32.mxu0 %v36_v36  ;;  %263 = vmatprep.mubr.f32.mxu1 %v2704_v37  ;;  %v2715_v62 = vld [vmem:[%s4438_s0 + $0xe0] sm:$0xff]  ;;  %v2729_v63 = vld [vmem:[%s4438_s0 + $0x150] sm:$0xff]  ;;  %v2718_v0 = vld [vmem:[%s4438_s0 + $0xf8] sm:$0xff] }
  0x2a   :  { %2931 = vmatpush3.msra.mxu0 %v3498_v5  ;;  %2984 = vmatpush3.msra.mxu1 %v3498_v5  ;;  %v2732_v1 = vld [vmem:[%s4438_s0 + $0x168] sm:$0xff]  ;;  %v2717_v2 = vld [vmem:[%s4438_s0 + $0xf0] sm:$0xff]  ;;  %v2731_v3 = vld [vmem:[%s4438_s0 + $0x160] sm:$0xff] }
  0x2b   :  { %149 = vmatmul.mubr.f32.gmra.mxu0 %v35_v38  ;;  %264 = vmatmul.mubr.f32.gmra.mxu1 %v2703_v39  ;;  %v2720_v4 = vld [vmem:[%s4438_s0 + $0x108] sm:$0xff]  ;;  %v2734_v5 = vld [vmem:[%s4438_s0 + $0x178] sm:$0xff] }
  0x2c   :  { %2932 = vmatprep.subr.mxu0 %v3505_v6  ;;  %2985 = vmatprep.subr.mxu1 %v3505_v6  ;;  %v2719_v6 = vld [vmem:[%s4438_s0 + $0x100] sm:$0xff] }
  0x2d   :  { %2933 = vmatpush3.msra.mxu0 %v3512_v7  ;;  %2986 = vmatpush3.msra.mxu1 %v3512_v7  ;;  %v2733_v7 = vld [vmem:[%s4438_s0 + $0x170] sm:$0xff] }
  0x2e   :  { %2934 = vmatprep.subr.mxu0 %v3519_v8  ;;  %2987 = vmatprep.subr.mxu1 %v3519_v8  ;;  %v2722_v8 = vld [vmem:[%s4438_s0 + $0x118] sm:$0xff] }
  0x2f   :  { %153 = vmatprep.mubr.f32.mxu0 %v38_v40  ;;  %268 = vmatprep.mubr.f32.mxu1 %v2706_v41 }
  0x30   :  { %2935 = vmatpush3.msra.mxu0 %v3526_v9  ;;  %2988 = vmatpush3.msra.mxu1 %v3526_v9  ;;  %v2736_v9 = vld [vmem:[%s4438_s0 + $0x188] sm:$0xff] }
  0x31   :  { %154 = vmatmul.mubr.f32.gmra.mxu0 %v37_v42  ;;  %269 = vmatmul.mubr.f32.gmra.mxu1 %v2705_v43 }
  0x32   :  { %2936 = vmatprep.subr.mxu0 %v3533_v10  ;;  %2989 = vmatprep.subr.mxu1 %v3533_v10  ;;  %v2721_v10 = vld [vmem:[%s4438_s0 + $0x110] sm:$0xff] }
  0x33   :  { %2937 = vmatpush3.msra.mxu0 %v3540_v11  ;;  %2990 = vmatpush3.msra.mxu1 %v3540_v11  ;;  %v2735_v11 = vld [vmem:[%s4438_s0 + $0x180] sm:$0xff] }
  0x34   :  { %2938 = vmatprep.subr.mxu0 %v3547_v12  ;;  %2991 = vmatprep.subr.mxu1 %v3547_v12  ;;  %v2724_v12 = vld [vmem:[%s4438_s0 + $0x128] sm:$0xff] }
  0x35   :  { %158 = vmatprep.mubr.f32.mxu0 %v40_v44  ;;  %273 = vmatprep.mubr.f32.mxu1 %v2708_v45 }
  0x36   :  { %2939 = vmatpush3.msra.mxu0 %v3554_v13  ;;  %2992 = vmatpush3.msra.mxu1 %v3554_v13  ;;  %v2738_v13 = vld [vmem:[%s4438_s0 + $0x198] sm:$0xff] }
  0x37   :  { %159 = vmatmul.mubr.f32.gmra.mxu0 %v39_v46  ;;  %274 = vmatmul.mubr.f32.gmra.mxu1 %v2707_v47 }
  0x38   :  { %2940 = vmatprep.subr.mxu0 %v3561_v14  ;;  %2993 = vmatprep.subr.mxu1 %v3561_v14  ;;  %v2723_v14 = vld [vmem:[%s4438_s0 + $0x120] sm:$0xff] }
  0x39   :  { %2941 = vmatpush3.msra.mxu0 %v3568_v15  ;;  %2994 = vmatpush3.msra.mxu1 %v3568_v15  ;;  %v2737_v15 = vld [vmem:[%s4438_s0 + $0x190] sm:$0xff] }
  0x3a   :  { %2942 = vmatprep.subr.mxu0 %v3575_v16  ;;  %2995 = vmatprep.subr.mxu1 %v3575_v16  ;;  %v2726_v16 = vld [vmem:[%s4438_s0 + $0x138] sm:$0xff] }
  0x3b   :  { %163 = vmatprep.mubr.f32.mxu0 %v42_v48  ;;  %278 = vmatprep.mubr.f32.mxu1 %v2710_v49 }
  0x3c   :  { %2943 = vmatpush3.msra.mxu0 %v3582_v17  ;;  %2996 = vmatpush3.msra.mxu1 %v3582_v17  ;;  %v2740_v17 = vld [vmem:[%s4438_s0 + $0x1a8] sm:$0xff] }
  0x3d   :  { %164 = vmatmul.mubr.f32.gmra.mxu0 %v41_v50  ;;  %279 = vmatmul.mubr.f32.gmra.mxu1 %v2709_v51 }
  0x3e   :  { %2944 = vmatprep.subr.mxu0 %v3589_v18  ;;  %2997 = vmatprep.subr.mxu1 %v3589_v18  ;;  %v2725_v18 = vld [vmem:[%s4438_s0 + $0x130] sm:$0xff] }
  0x3f   :  { %2945 = vmatpush3.msra.mxu0 %v3596_v19  ;;  %2998 = vmatpush3.msra.mxu1 %v3596_v19  ;;  %v2739_v19 = vld [vmem:[%s4438_s0 + $0x1a0] sm:$0xff] }
  0x40   :  { %2946 = vmatprep.subr.mxu0 %v3603_v20  ;;  %2999 = vmatprep.subr.mxu1 %v3603_v20  ;;  %v2728_v20 = vld [vmem:[%s4438_s0 + $0x148] sm:$0x3] }
  0x41   :  { %168 = vmatprep.mubr.f32.mxu0 %v44_v52  ;;  %283 = vmatprep.mubr.f32.mxu1 %v2712_v53 }
  0x42   :  { %2947 = vmatpush3.msra.mxu0 %v3610_v21  ;;  %3000 = vmatpush3.msra.mxu1 %v3610_v21  ;;  %v2742_v21 = vld [vmem:[%s4438_s0 + $0x1b8] sm:$0x3] }
  0x43   :  { %169 = vmatmul.mubr.f32.gmra.mxu0 %v43_v54  ;;  %284 = vmatmul.mubr.f32.gmra.mxu1 %v2711_v55 }
  0x44   :  { %2948 = vmatprep.subr.mxu0 %v3617_v22  ;;  %3001 = vmatprep.subr.mxu1 %v3617_v22  ;;  %v2727_v22 = vld [vmem:[%s4438_s0 + $0x140] sm:$0x3] }
  0x45   :  { %2949 = vmatpush3.msra.mxu0 %v3624_v23  ;;  %3002 = vmatpush3.msra.mxu1 %v3624_v23  ;;  %v2741_v23 = vld [vmem:[%s4438_s0 + $0x1b0] sm:$0x3] }
  0x46   :  { %2950 = vmatprep.subr.mxu0 %v3631_v24  ;;  %3003 = vmatprep.subr.mxu1 %v3631_v24  ;;  %v2745_v24 = vld [vmem:[%s4441_s3 + $0x18] sm:$0xff] }
  0x47   :  { %173 = vmatprep.mubr.f32.mxu0 %v46_v56  ;;  %288 = vmatprep.mubr.f32.mxu1 %v2714_v57 }
  0x48   :  { %2951 = vmatpush3.msra.mxu0 %v3638_v25  ;;  %3004 = vmatpush3.msra.mxu1 %v3638_v25  ;;  %v3411_v25 = vmov 0.0  }
  0x49   :  { %174 = vmatmul.mubr.f32.gmra.mxu0 %v45_v58  ;;  %289 = vmatmul.mubr.f32.gmra.mxu1 %v2713_v59 }
  0x4a   :  { %2952 = vmatprep.subr.mxu0 %v3645_v26  ;;  %3005 = vmatprep.subr.mxu1 %v3645_v26  ;;  %v567_v26 = vld [vmem:[%s4441_s3 + $0x8] sm:$0xff] }
  0x4b   :  { %2953 = vmatpush3.msra.mxu0 %v3652_v27  ;;  %3006 = vmatpush3.msra.mxu1 %v3652_v27  ;;  %v2744_v27 = vld [vmem:[%s4441_s3 + $0x10] sm:$0xff] }
  0x4c   :  { %2954 = vmatprep.subr.mxu0 %v3659_v28  ;;  %3007 = vmatprep.subr.mxu1 %v3659_v28  ;;  %v566_v28 = vld [vmem:[%s4441_s3] sm:$0xff] }
  0x4d   :  { %2955 = vmatpush3.msra.mxu0 %v3666_v29  ;;  %3008 = vmatpush3.msra.mxu1 %v3666_v29 }
  0x4e   :  { %2956 = vmatprep.subr.mxu0 %v3673_v30  ;;  %3009 = vmatprep.subr.mxu1 %v3673_v30 }
  0x4f   :  { %2957 = vmatpush3.msra.mxu0 %v3680_v31  ;;  %380 = vmatprep.mubr.f32.mxu0 %v2716_v60 }
  0x50   :  { %3010 = vmatpush3.msra.mxu1 %v3680_v31  ;;  %502 = vmatprep.mubr.f32.mxu1 %v2730_v61 }
  0x51   :  { %381 = vmatmul.mubr.f32.vlgmr.msra.gmra.mxu0 %v2715_v62  ;;  %503 = vmatmul.mubr.f32.vlgmr.msra.gmra.mxu1 %v2729_v63 }
  0x52   :  { %385 = vmatprep.mubr.f32.mxu0 %v2718_v0  ;;  %507 = vmatprep.mubr.f32.mxu1 %v2732_v1 }
  0x53   :  { %3141 = vmatprep.subr.mxu0 %v3411_v25  ;;  %3148 = vmatprep.subr.mxu1 %v3411_v25 }
  0x54   :  { %3142 = vmatpush3.msra.mxu0 %v2745_v24  ;;  %3149 = vmatpush3.msra.mxu1 %v567_v26  ;;  %v2752_v26 = vld [vmem:[%s4441_s3 + $0x38] sm:$0xff] }
  0x55   :  { %386 = vmatmul.mubr.f32.gmra.mxu0 %v2717_v2  ;;  %508 = vmatmul.mubr.f32.gmra.mxu1 %v2731_v3 }
  0x56   :  { %390 = vmatprep.mubr.f32.mxu0 %v2720_v4  ;;  %512 = vmatprep.mubr.f32.mxu1 %v2734_v5 }
  0x57   :  { %3143 = vmatprep.subr.mxu0 %v3411_v25  ;;  %3150 = vmatprep.subr.mxu1 %v3411_v25 }
  0x58   :  { %3144 = vmatpush3.msra.mxu0 %v2744_v27  ;;  %3151 = vmatpush3.msra.mxu1 %v566_v28 }
  0x59   :  { %391 = vmatmul.mubr.f32.gmra.mxu0 %v2719_v6  ;;  %513 = vmatmul.mubr.f32.gmra.mxu1 %v2733_v7 }
  0x5a   :  { %395 = vmatprep.mubr.f32.mxu0 %v2722_v8  ;;  %517 = vmatprep.mubr.f32.mxu1 %v2736_v9 }
  0x5b   :  { %3155 = vmatprep.subr.mxu0 %v3411_v25  ;;  %3162 = vmatprep.subr.mxu1 %v3411_v25 }
  0x5d   :  { %396 = vmatmul.mubr.f32.gmra.mxu0 %v2721_v10  ;;  %518 = vmatmul.mubr.f32.gmra.mxu1 %v2735_v11  ;;  %v3975_v10 = vld [vmem:[%s4440_s2] ss:$0 sm:$0xff] }
  0x5e   :  { %400 = vmatprep.mubr.f32.mxu0 %v2724_v12  ;;  %522 = vmatprep.mubr.f32.mxu1 %v2738_v13 }
  0x61   :  { %401 = vmatmul.mubr.f32.gmra.mxu0 %v2723_v14  ;;  %523 = vmatmul.mubr.f32.gmra.mxu1 %v2737_v15 }
  0x62   :  { %405 = vmatprep.mubr.f32.mxu0 %v2726_v16  ;;  %527 = vmatprep.mubr.f32.mxu1 %v2740_v17 }
  0x65   :  { %406 = vmatmul.mubr.f32.gmra.mxu0 %v2725_v18  ;;  %528 = vmatmul.mubr.f32.gmra.mxu1 %v2739_v19 }
  0x66   :  { %410 = vmatprep.mubr.f32.mxu0 %v2728_v20  ;;  %532 = vmatprep.mubr.f32.mxu1 %v2742_v21 }
  0x69   :  { %411 = vmatmul.mubr.f32.gmra.mxu0 %v2727_v22  ;;  %533 = vmatmul.mubr.f32.gmra.mxu1 %v2741_v23 }
  0x6a   :  { %3152 = vmatprep.mubr.msk.f32.mxu1 %vm3412_vm0, %v3411_v25  ;;  %3145 = vmatprep.mubr.msk.f32.mxu0 %vm3412_vm0, %v3411_v25 }
  0xe3   :  { %v2852_v29 = vpop.f32.mrf.mxu0  ;;  %v2905_v30 = vpop.f32.mrf.mxu1 }
  0xe5   :  { %v2853_v31 = vpop.f32.mrf.mxu0  ;;  %v2906_v32 = vpop.f32.mrf.mxu1 }
  0xe6   :  { %v2854_v60 = vadd.f32 %v2853_v31, %v2852_v29  ;;  %v2907_v61 = vadd.f32 %v2906_v32, %v2905_v30  ;;  %v2749_v32 = vld [vmem:[%s4441_s3 + $0x28] sm:$0xff] }
  0xe8   :  { %v294_v2 = vmax.f32 %v2854_v60, %v2907_v61 }
  0xeb   :  { %v2855_v33 = vpop.f32.mrf.mxu0  ;;  %v2908_v34 = vpop.f32.mrf.mxu1 }
  0xed   :  { %v2856_v35 = vpop.f32.mrf.mxu0  ;;  %v2909_v36 = vpop.f32.mrf.mxu1 }
  0xee   :  { %v2857_v3 = vadd.f32 %v2856_v35, %v2855_v33  ;;  %v2910_v4 = vadd.f32 %v2909_v36, %v2908_v34  ;;  %v2751_v33 = vld [vmem:[%s4441_s3 + $0x30] sm:$0xff] }
  0xf0   :  { %v295_v13 = vmax.f32 %v2857_v3, %v2910_v4  ;;  %v2754_v4 = vld [vmem:[%s4441_s3 + $0x40] sm:$0xff] }
  0xf1   :  { %v2858_v37 = vpop.f32.mrf.mxu0  ;;  %v2911_v38 = vpop.f32.mrf.mxu1 }
  0xf3   :  { %v2859_v39 = vpop.f32.mrf.mxu0  ;;  %v2912_v40 = vpop.f32.mrf.mxu1 }
  0xf4   :  { %v2860_v27 = vadd.f32 %v2859_v39, %v2858_v37  ;;  %v2913_v28 = vadd.f32 %v2912_v40, %v2911_v38  ;;  %v2748_v38 = vld [vmem:[%s4441_s3 + $0x20] sm:$0xff] }
  0xf6   :  { %v296_v40 = vmax.f32 %v2860_v27, %v2913_v28 }
  0xf7   :  { %v3942_v41 = vpop.f32.mrf.mxu0  ;;  %v3944_v42 = vpop.f32.mrf.mxu1 }
  0xf9   :  { %v3946_v43 = vpop.f32.mrf.mxu0  ;;  %v3948_v44 = vpop.f32.mrf.mxu1 }
  0xfd   :  { %v3950_v45 = vpop.f32.mrf.mxu0  ;;  %v3952_v46 = vpop.f32.mrf.mxu1 }
  0xff   :  { %v3954_v47 = vpop.f32.mrf.mxu0  ;;  %v3956_v48 = vpop.f32.mrf.mxu1 }
 0x103   :  { %v3958_v49 = vpop.f32.mrf.mxu0  ;;  %v3960_v50 = vpop.f32.mrf.mxu1 }
 0x105   :  { %v3962_v51 = vpop.f32.mrf.mxu0  ;;  %v3964_v52 = vpop.f32.mrf.mxu1 }
 0x109   :  { %v2870_v53 = vpop.f32.mrf.mxu0  ;;  %v2923_v54 = vpop.f32.mrf.mxu1 }
 0x10b   :  { %v2871_v55 = vpop.f32.mrf.mxu0  ;;  %v2924_v56 = vpop.f32.mrf.mxu1 }
 0x10c   :  { %v3966_v57 = vadd.f32 %v2871_v55, %v2870_v53  ;;  %v3968_v58 = vadd.f32 %v2924_v56, %v2923_v54  ;;  %v2758_v55 = vld [vmem:[%s4441_s3 + $0x58] sm:$0xff] }
 0x10e   :  { %v300_v59 = vmax.f32 %v3966_v57, %v3968_v58  ;;  %v2767_v57 = vld [vmem:[%s4441_s3 + $0x88] sm:$0xff] }
 0x111   :  { %v2958_v62 = vpop.f32.mrf.mxu0  ;;  %v3011_v63 = vpop.f32.mrf.mxu1 }
 0x113   :  { %v2959_v0 = vpop.f32.mrf.mxu0  ;;  %v3012_v1 = vpop.f32.mrf.mxu1 }
 0x114   :  { %v2960_v5 = vadd.f32 %v2959_v0, %v2958_v62  ;;  %v3013_v9 = vadd.f32 %v3012_v1, %v3011_v63  ;;  %v2755_v0 = vld [vmem:[%s4441_s3 + $0x48] sm:$0xff] }
 0x115   :  { %v2961_v6 = vpop.f32.mrf.mxu0  ;;  %v3014_v7 = vpop.f32.mrf.mxu1 }
 0x116   :  { %v416_v8 = vmax.f32 %v294_v2, %v2960_v5  ;;  %v2757_v2 = vld [vmem:[%s4441_s3 + $0x50] sm:$0xff] }
 0x117   :  { %v2962_v11 = vpop.f32.mrf.mxu0  ;;  %v3015_v12 = vpop.f32.mrf.mxu1 }
 0x118   :  { %v538_v14 = vmax.f32 %v416_v8, %v3013_v9  ;;  %v2963_v15 = vadd.f32 %v2962_v11, %v2961_v6  ;;  %v3016_v16 = vadd.f32 %v3015_v12, %v3014_v7  ;;  %v2764_v11 = vld [vmem:[%s4441_s3 + $0x78] sm:$0xff]  ;;  %v2863_v12 = vadd.f32 %v3946_v43, %v3942_v41  ;;  %v2763_v41 = vld [vmem:[%s4441_s3 + $0x70] sm:$0xff] }
 0x119   :  { %v2964_v17 = vpop.f32.mrf.mxu0  ;;  %v3017_v18 = vpop.f32.mrf.mxu1 }
 0x11a   :  { %v552_v19 = vadd.f32 %v3975_v10, %v538_v14  ;;  %v417_v20 = vmax.f32 %v295_v13, %v2963_v15  ;;  %v2916_v13 = vadd.f32 %v3948_v44, %v3944_v42  ;;  %v2761_v14 = vld [vmem:[%s4441_s3 + $0x68] sm:$0xff]  ;;  %v2760_v44 = vld [vmem:[%s4441_s3 + $0x60] sm:$0xff] }
 0x11b   :  { %v2965_v21 = vpop.f32.mrf.mxu0  ;;  %v3018_v22 = vpop.f32.mrf.mxu1 }
 0x11c   :  { %v559_v23 = vmax.f32 %v552_v19, 0.0  ;;  %v539_v24 = vmax.f32 %v417_v20, %v3016_v16  ;;  %v2966_v35 = vadd.f32 %v2965_v21, %v2964_v17  ;;  %v3019_v61 = vadd.f32 %v3018_v22, %v3017_v18 }
 0x11d   :  { %v3981_v29 = vpop.f32.mrf.mxu0  ;;  %v3983_v30 = vpop.f32.mrf.mxu1  ;;  %v297_v21 = vmax.f32 %v2863_v12, %v2916_v13 }
 0x11e   :  { %v572_v31 = vrot.slane %v559_v23, 2  ;;  %3153 = vmatmul.mubr.msk.f32.vlgmr.msra.gmra.mxu1 %vm573_vm1, %v559_v23  ;;  %v553_v34 = vadd.f32 %v3975_v10, %v539_v24  ;;  %v798_v39 = vrot.slane %v559_v23, 6  ;;  %v418_v60 = vmax.f32 %v296_v40, %v2966_v35  ;;  %v2770_v24 = vld [vmem:[%s4441_s3 + $0x98] sm:$0xff] }
 0x11f   :  { %v2968_v36 = vpop.f32.mrf.mxu0  ;;  %3163 = vmatpush3.msra.mxu1 %v2752_v26  ;;  %v3993_v37 = vpop.f32.mrf.mxu1  ;;  %3166 = vmatprep.mubr.msk.f32.mxu1 %vm3412_vm0, %v3411_v25  ;;  %v721_v63 = vrot.slane %v559_v23, 4  ;;  %v2866_v35 = vadd.f32 %v3954_v47, %v3950_v45  ;;  %v2775_v45 = vld [vmem:[%s4441_s3 + $0xb0] sm:$0xff]  ;;  %v2782_v40 = vld [vmem:[%s4441_s3 + $0xd8] sm:$0xff] }
 0x120   :  { %3146 = vmatmul.mubr.msk.f32.vlgmr.msra.gmra.mxu0 %vm573_vm1, %v572_v31  ;;  %3164 = vmatprep.subr.mxu1 %v3411_v25  ;;  %v4011_v56 = vmax.f32 %v553_v34, 0.0  ;;  %v540_v6 = vmax.f32 %v418_v60, %v3019_v61  ;;  %v2969_v43 = vadd.f32 %v2968_v36, %v3981_v29  ;;  %v3022_v28 = vadd.f32 %v3993_v37, %v3983_v30  ;;  %v2766_v30 = vld [vmem:[%s4441_s3 + $0x80] sm:$0xff]  ;;  %v2776_v34 = vld [vmem:[%s4441_s3 + $0xb8] sm:$0xff]  ;;  %v2773_v37 = vld [vmem:[%s4441_s3 + $0xa8] sm:$0xff] }
 0x121   :  { %3156 = vmatpush3.msra.mxu0 %v2749_v32  ;;  %v4002_v53 = vpop.f32.mrf.mxu0  ;;  %3165 = vmatpush3.msra.mxu1 %v2751_v33  ;;  %v4004_v54 = vpop.f32.mrf.mxu1  ;;  %v2919_v36 = vadd.f32 %v3956_v48, %v3952_v46  ;;  %v2772_v48 = vld [vmem:[%s4441_s3 + $0xa0] sm:$0xff]  ;;  %v2779_v61 = vld [vmem:[%s4441_s3 + $0xc8] sm:$0xff] }
 0x122   :  { %3157 = vmatprep.subr.mxu0 %v3411_v25  ;;  %3167 = vmatmul.mubr.msk.f32.vlgmr.msra.gmra.mxu1 %vm573_vm1, %v798_v39  ;;  %v952_v7 = vrot.slane %v4011_v56, 2  ;;  %v554_v42 = vadd.f32 %v3975_v10, %v540_v6  ;;  %v1106_v22 = vrot.slane %v4011_v56, 6  ;;  %v419_v27 = vmax.f32 %v297_v21, %v2969_v43  ;;  %v2785_v6 = vld [vmem:[%s4441_s3 + $0xe8] sm:$0xff] }
 0x123   :  { %3158 = vmatpush3.msra.mxu0 %v2748_v38  ;;  %3176 = vmatprep.subr.mxu1 %v3411_v25  ;;  %v4014_v62 = vpop.f32.mrf.mxu0  ;;  %v4019_v1 = vpop.f32.mrf.mxu1  ;;  %v1029_v29 = vrot.slane %v4011_v56, 4  ;;  %v298_v38 = vmax.f32 %v2866_v35, %v2919_v36  ;;  %v2797_v43 = vld [vmem:[%s4441_s3 + $0x128] sm:$0xff]  ;;  %v2510_v36 = vld [vmem:[%s4443_s5 + $0x60] sm:$0xff] }
 0x124   :  { %3159 = vmatprep.mubr.msk.f32.mxu0 %vm3412_vm0, %v3411_v25  ;;  %3169 = vmatprep.subr.mxu0 %v3411_v25  ;;  %v561_v26 = vmax.f32 %v554_v42, 0.0  ;;  %v541_v32 = vmax.f32 %v419_v27, %v3022_v28  ;;  %v2972_v46 = vadd.f32 %v4014_v62, %v4002_v53  ;;  %v2781_v62 = vld [vmem:[%s4441_s3 + $0xd0] sm:$0xff]  ;;  %v2800_v42 = vld [vmem:[%s4441_s3 + $0x138] sm:$0xff]  ;;  %v2809_v28 = vld [vmem:[%s4441_s3 + $0x168] sm:$0xff] }
 0x125   :  { %3177 = vmatpush3.msra.mxu1 %v2758_v55  ;;  %3160 = vmatmul.mubr.msk.f32.vlgmr.msra.gmra.mxu0 %vm573_vm1, %v721_v63  ;;  %v4028_v3 = vpop.f32.mrf.mxu0  ;;  %v4033_v5 = vpop.f32.mrf.mxu1  ;;  %v2812_v27 = vld [vmem:[%s4441_s3 + $0x178] sm:$0xff]  ;;  %v2511_v35 = vld [vmem:[%s4443_s5 + $0x68] sm:$0xff] }
 0x126   :  { %3170 = vmatpush3.msra.mxu0 %v2755_v0  ;;  %3178 = vmatprep.subr.mxu1 %v3411_v25  ;;  %v1260_v33 = vrot.slane %v561_v26, 2  ;;  %v555_v47 = vadd.f32 %v3975_v10, %v541_v32  ;;  %v1414_v39 = vrot.slane %v561_v26, 6  ;;  %v420_v55 = vmax.f32 %v298_v38, %v2972_v46  ;;  %v2814_v32 = vld [vmem:[%s4441_s3 + $0x180] sm:$0xff]  ;;  %v2504_v38 = vld [vmem:[%s4443_s5 + $0x30] sm:$0xff] }
 0x127   :  { %3171 = vmatprep.subr.mxu0 %v3411_v25  ;;  %3179 = vmatpush3.msra.mxu1 %v2757_v2  ;;  %v4038_v8 = vpop.f32.mrf.mxu0  ;;  %v4040_v9 = vpop.f32.mrf.mxu1  ;;  %v1337_v60 = vrot.slane %v561_v26, 4  ;;  %v2869_v2 = vadd.f32 %v3962_v51, %v3958_v49  ;;  %v2787_v49 = vld [vmem:[%s4441_s3 + $0xf0] sm:$0xff]  ;;  %v2506_v46 = vld [vmem:[%s4443_s5 + $0x40] sm:$0xff] }
 0x128   :  { %3180 = vmatprep.mubr.msk.f32.mxu1 %vm3412_vm0, %v3411_v25  ;;  %3172 = vmatpush3.msra.mxu0 %v2754_v4  ;;  %v562_v53 = vmax.f32 %v555_v47, 0.0  ;;  %v2922_v4 = vadd.f32 %v3964_v52, %v3960_v50  ;;  %v2975_v50 = vadd.f32 %v4038_v8, %v4028_v3  ;;  %v2784_v52 = vld [vmem:[%s4441_s3 + $0xe0] sm:$0xff]  ;;  %v2794_v3 = vld [vmem:[%s4441_s3 + $0x118] sm:$0xff]  ;;  %v3028_v13 = vadd.f32 %v4040_v9, %v4033_v5  ;;  %v2507_v47 = vld [vmem:[%s4443_s5 + $0x48] sm:$0xff] }
 0x129   :  { %3181 = vmatmul.mubr.msk.f32.vlgmr.msra.gmra.mxu1 %vm573_vm1, %v952_v7  ;;  %3190 = vmatprep.subr.mxu1 %v3411_v25  ;;  %v2976_v15 = vpop.f32.mrf.mxu0  ;;  %v3029_v16 = vpop.f32.mrf.mxu1  ;;  %v2790_v5 = vld [vmem:[%s4441_s3 + $0x100] sm:$0xff] }
 0x12a   :  { %3173 = vmatprep.mubr.msk.f32.mxu0 %vm3412_vm0, %v3411_v25  ;;  %3183 = vmatprep.subr.mxu0 %v3411_v25  ;;  %v1568_v0 = vrot.slane %v562_v53, 2  ;;  %v299_v7 = vmax.f32 %v2869_v2, %v2922_v4  ;;  %v2601_v2 = vld [vmem:[%s4445_s7 + $0x48] sm:$0xff]  ;;  %v2600_v4 = vld [vmem:[%s4445_s7 + $0x40] sm:$0xff] }
 0x12b   :  { %3191 = vmatpush3.msra.mxu1 %v2764_v11  ;;  %3174 = vmatmul.mubr.msk.f32.vlgmr.msra.gmra.mxu0 %vm573_vm1, %v4011_v56  ;;  %v2977_v17 = vpop.f32.mrf.mxu0  ;;  %v3030_v18 = vpop.f32.mrf.mxu1  ;;  %v3025_v56 = vadd.f32 %v4019_v1, %v4004_v54  ;;  %v2778_v54 = vld [vmem:[%s4441_s3 + $0xc0] sm:$0xff]  ;;  %v2788_v1 = vld [vmem:[%s4441_s3 + $0xf8] sm:$0xff]  ;;  %v1722_v11 = vrot.slane %v562_v53, 6 }
 0x12c   :  { %3184 = vmatpush3.msra.mxu0 %v2761_v14  ;;  %3192 = vmatprep.subr.mxu1 %v3411_v25  ;;  %v2978_v19 = vadd.f32 %v2977_v17, %v2976_v15  ;;  %v3031_v20 = vadd.f32 %v3030_v18, %v3029_v16  ;;  %v421_v12 = vmax.f32 %v299_v7, %v2975_v50  ;;  %v1645_v14 = vrot.slane %v562_v53, 4  ;;  %v2791_v15 = vld [vmem:[%s4441_s3 + $0x108] sm:$0xff]  ;;  %v2793_v16 = vld [vmem:[%s4441_s3 + $0x110] sm:$0xff]  ;;  %v2796_v18 = vld [vmem:[%s4441_s3 + $0x120] sm:$0xff] }
 0x12d   :  { %3185 = vmatprep.subr.mxu0 %v3411_v25  ;;  %3193 = vmatpush3.msra.mxu1 %v2763_v41  ;;  %v542_v63 = vmax.f32 %v420_v55, %v3025_v56  ;;  %v2500_v55 = vld [vmem:[%s4443_s5 + $0x10] sm:$0xff]  ;;  %v2499_v56 = vld [vmem:[%s4443_s5 + $0x8] sm:$0xff]  ;;  %v2596_v50 = vld [vmem:[%s4445_s7 + $0x20] sm:$0xff] }
 0x12e   :  { %3194 = vmatprep.mubr.msk.f32.mxu1 %vm3412_vm0, %v3411_v25  ;;  %3186 = vmatpush3.msra.mxu0 %v2760_v44  ;;  %v422_v23 = vmax.f32 %v300_v59, %v2978_v19  ;;  %v2769_v59 = vld [vmem:[%s4441_s3 + $0x90] sm:$0xff]  ;;  %v543_v9 = vmax.f32 %v421_v12, %v3028_v13 }
 0x12f   :  { %3195 = vmatmul.mubr.msk.f32.vlgmr.msra.gmra.mxu1 %vm573_vm1, %v1106_v22  ;;  %3204 = vmatprep.subr.mxu1 %v3411_v25  ;;  %v556_v51 = vadd.f32 %v3975_v10, %v542_v63  ;;  %v2799_v44 = vld [vmem:[%s4441_s3 + $0x130] sm:$0xff]  ;;  %v2803_v22 = vld [vmem:[%s4441_s3 + $0x148] sm:$0xff]  ;;  %v2604_v63 = vld [vmem:[%s4445_s7 + $0x60] sm:$0xff] }
 0x130   :  { %3187 = vmatprep.mubr.msk.f32.mxu0 %vm3412_vm0, %v3411_v25  ;;  %3197 = vmatprep.subr.mxu0 %v3411_v25  ;;  %v544_v58 = vmax.f32 %v422_v23, %v3031_v20  ;;  %v557_v17 = vadd.f32 %v3975_v10, %v543_v9  ;;  %v2805_v23 = vld [vmem:[%s4441_s3 + $0x150] sm:$0xff] }
 0x131   :  { %3205 = vmatpush3.msra.mxu1 %v2770_v24  ;;  %3188 = vmatmul.mubr.msk.f32.vlgmr.msra.gmra.mxu0 %vm573_vm1, %v1029_v29  ;;  %v563_v8 = vmax.f32 %v556_v51, 0.0  ;;  %v2802_v24 = vld [vmem:[%s4441_s3 + $0x140] sm:$0xff]  ;;  %v2811_v29 = vld [vmem:[%s4441_s3 + $0x170] sm:$0xff]  ;;  %v2597_v51 = vld [vmem:[%s4445_s7 + $0x28] sm:$0xff] }
 0x132   :  { %3198 = vmatpush3.msra.mxu0 %v2767_v57  ;;  %3206 = vmatprep.subr.mxu1 %v3411_v25  ;;  %v4100_v31 = vadd.f32 %v3975_v10, %v544_v58  ;;  %v2806_v10 = vld [vmem:[%s4441_s3 + $0x158] sm:$0xff]  ;;  %v564_v20 = vmax.f32 %v557_v17, 0.0  ;;  %v2808_v57 = vld [vmem:[%s4441_s3 + $0x160] sm:$0xff] }
 0x133   :  { %3199 = vmatprep.subr.mxu0 %v3411_v25  ;;  %3207 = vmatpush3.msra.mxu1 %v2769_v59  ;;  %v1876_v41 = vrot.slane %v563_v8, 2  ;;  %v2030_v19 = vrot.slane %v563_v8, 6  ;;  %v1953_v21 = vrot.slane %v563_v8, 4 }
 0x134   :  { %3208 = vmatprep.mubr.msk.f32.mxu1 %vm3412_vm0, %v3411_v25  ;;  %3200 = vmatpush3.msra.mxu0 %v2766_v30  ;;  %v2338_v58 = vrot.slane %v564_v20, 6  ;;  %v2261_v59 = vrot.slane %v564_v20, 4  ;;  %v2815_v30 = vld [vmem:[%s4441_s3 + $0x188] sm:$0xff] }
 0x135   :  { %3209 = vmatmul.mubr.msk.f32.vlgmr.msra.gmra.mxu1 %vm573_vm1, %v1260_v33  ;;  %3218 = vmatprep.subr.mxu1 %v3411_v25  ;;  %v565_v33 = vmax.f32 %v4100_v31, 0.0  ;;  %v2512_v31 = vld [vmem:[%s4443_s5 + $0x70] sm:$0xff] }
 0x136   :  { %3201 = vmatprep.mubr.msk.f32.mxu0 %vm3412_vm0, %v3411_v25  ;;  %3211 = vmatprep.subr.mxu0 %v3411_v25 }
 0x137   :  { %3219 = vmatpush3.msra.mxu1 %v2776_v34  ;;  %3202 = vmatmul.mubr.msk.f32.vlgmr.msra.gmra.mxu0 %vm573_vm1, %v561_v26  ;;  %v2184_v26 = vrot.slane %v564_v20, 2  ;;  %v2513_v34 = vld [vmem:[%s4443_s5 + $0x78] sm:$0xff] }
 0x138   :  { %3212 = vmatpush3.msra.mxu0 %v2773_v37  ;;  %3220 = vmatprep.subr.mxu1 %v3411_v25  ;;  %v2509_v37 = vld [vmem:[%s4443_s5 + $0x58] sm:$0xff] }
 0x139   :  { %3213 = vmatprep.subr.mxu0 %v3411_v25  ;;  %3221 = vmatpush3.msra.mxu1 %v2775_v45  ;;  %v2508_v45 = vld [vmem:[%s4443_s5 + $0x50] sm:$0xff] }
 0x13a   :  { %3222 = vmatprep.mubr.msk.f32.mxu1 %vm3412_vm0, %v3411_v25  ;;  %3214 = vmatpush3.msra.mxu0 %v2772_v48  ;;  %v2505_v48 = vld [vmem:[%s4443_s5 + $0x38] sm:$0xff] }
 0x13b   :  { %3223 = vmatmul.mubr.msk.f32.vlgmr.msra.gmra.mxu1 %vm573_vm1, %v1414_v39  ;;  %3232 = vmatprep.subr.mxu1 %v3411_v25  ;;  %v2503_v39 = vld [vmem:[%s4443_s5 + $0x28] sm:$0xff] }
 0x13c   :  { %3215 = vmatprep.mubr.msk.f32.mxu0 %vm3412_vm0, %v3411_v25  ;;  %3225 = vmatprep.subr.mxu0 %v3411_v25 }
 0x13d   :  { %3233 = vmatpush3.msra.mxu1 %v2782_v40  ;;  %3216 = vmatmul.mubr.msk.f32.vlgmr.msra.gmra.mxu0 %vm573_vm1, %v1337_v60  ;;  %v2502_v40 = vld [vmem:[%s4443_s5 + $0x20] sm:$0xff] }
 0x13e   :  { %3226 = vmatpush3.msra.mxu0 %v2779_v61  ;;  %3234 = vmatprep.subr.mxu1 %v3411_v25  ;;  %v2498_v60 = vld [vmem:[%s4443_s5] sm:$0xff]  ;;  %v2607_v61 = vld [vmem:[%s4445_s7 + $0x78] sm:$0xff] }
 0x13f   :  { %3227 = vmatprep.subr.mxu0 %v3411_v25  ;;  %3235 = vmatpush3.msra.mxu1 %v2781_v62  ;;  %v2606_v62 = vld [vmem:[%s4445_s7 + $0x70] sm:$0xff] }
 0x140   :  { %3236 = vmatprep.mubr.msk.f32.mxu1 %vm3412_vm0, %v3411_v25  ;;  %3228 = vmatpush3.msra.mxu0 %v2778_v54  ;;  %v2605_v54 = vld [vmem:[%s4445_s7 + $0x68] sm:$0xff] }
 0x141   :  { %3237 = vmatmul.mubr.msk.f32.vlgmr.msra.gmra.mxu1 %vm573_vm1, %v1568_v0  ;;  %3246 = vmatprep.subr.mxu1 %v3411_v25  ;;  %v2603_v0 = vld [vmem:[%s4445_s7 + $0x58] sm:$0xff] }
 0x142   :  { %3229 = vmatprep.mubr.msk.f32.mxu0 %vm3412_vm0, %v3411_v25  ;;  %3239 = vmatprep.subr.mxu0 %v3411_v25 }
 0x143   :  { %3247 = vmatpush3.msra.mxu1 %v2788_v1  ;;  %3230 = vmatmul.mubr.msk.f32.vlgmr.msra.gmra.mxu0 %vm573_vm1, %v562_v53  ;;  %v2501_v53 = vld [vmem:[%s4443_s5 + $0x18] sm:$0xff]  ;;  %v2602_v1 = vld [vmem:[%s4445_s7 + $0x50] sm:$0xff] }
 0x144   :  { %3240 = vmatpush3.msra.mxu0 %v2785_v6  ;;  %3248 = vmatprep.subr.mxu1 %v3411_v25  ;;  %v2599_v6 = vld [vmem:[%s4445_s7 + $0x38] sm:$0xff] }
 0x145   :  { %3241 = vmatprep.subr.mxu0 %v3411_v25  ;;  %3249 = vmatpush3.msra.mxu1 %v2787_v49  ;;  %v2598_v49 = vld [vmem:[%s4445_s7 + $0x30] sm:$0xff] }
 0x146   :  { %3250 = vmatprep.mubr.msk.f32.mxu1 %vm3412_vm0, %v3411_v25  ;;  %3242 = vmatpush3.msra.mxu0 %v2784_v52  ;;  %v2595_v52 = vld [vmem:[%s4445_s7 + $0x18] sm:$0xff] }
 0x147   :  { %3251 = vmatmul.mubr.msk.f32.vlgmr.msra.gmra.mxu1 %vm573_vm1, %v1722_v11  ;;  %3260 = vmatprep.subr.mxu1 %v3411_v25 }
 0x148   :  { %3243 = vmatprep.mubr.msk.f32.mxu0 %vm3412_vm0, %v3411_v25  ;;  %3253 = vmatprep.subr.mxu0 %v3411_v25 }
 0x149   :  { %3261 = vmatpush3.msra.mxu1 %v2794_v3  ;;  %3244 = vmatmul.mubr.msk.f32.vlgmr.msra.gmra.mxu0 %vm573_vm1, %v1645_v14 }
 0x14a   :  { %3254 = vmatpush3.msra.mxu0 %v2791_v15  ;;  %3262 = vmatprep.subr.mxu1 %v3411_v25 }
 0x14b   :  { %3255 = vmatprep.subr.mxu0 %v3411_v25  ;;  %3263 = vmatpush3.msra.mxu1 %v2793_v16 }
 0x14c   :  { %3264 = vmatprep.mubr.msk.f32.mxu1 %vm3412_vm0, %v3411_v25  ;;  %3256 = vmatpush3.msra.mxu0 %v2790_v5 }
 0x14d   :  { %3265 = vmatmul.mubr.msk.f32.vlgmr.msra.gmra.mxu1 %vm573_vm1, %v1876_v41  ;;  %3274 = vmatprep.subr.mxu1 %v3411_v25 }
 0x14e   :  { %3257 = vmatprep.mubr.msk.f32.mxu0 %vm3412_vm0, %v3411_v25  ;;  %3267 = vmatprep.subr.mxu0 %v3411_v25 }
 0x14f   :  { %3275 = vmatpush3.msra.mxu1 %v2800_v42  ;;  %3258 = vmatmul.mubr.msk.f32.vlgmr.msra.gmra.mxu0 %vm573_vm1, %v563_v8 }
 0x150   :  { %3268 = vmatpush3.msra.mxu0 %v2797_v43  ;;  %3276 = vmatprep.subr.mxu1 %v3411_v25 }
 0x151   :  { %3269 = vmatprep.subr.mxu0 %v3411_v25  ;;  %3277 = vmatpush3.msra.mxu1 %v2799_v44 }
 0x152   :  { %3278 = vmatprep.mubr.msk.f32.mxu1 %vm3412_vm0, %v3411_v25  ;;  %3270 = vmatpush3.msra.mxu0 %v2796_v18 }
 0x153   :  { %3279 = vmatmul.mubr.msk.f32.vlgmr.msra.gmra.mxu1 %vm573_vm1, %v2030_v19  ;;  %3288 = vmatprep.subr.mxu1 %v3411_v25 }
 0x154   :  { %3271 = vmatprep.mubr.msk.f32.mxu0 %vm3412_vm0, %v3411_v25  ;;  %3281 = vmatprep.subr.mxu0 %v3411_v25 }
 0x155   :  { %3289 = vmatpush3.msra.mxu1 %v2806_v10  ;;  %3272 = vmatmul.mubr.msk.f32.vlgmr.msra.gmra.mxu0 %vm573_vm1, %v1953_v21 }
 0x156   :  { %3282 = vmatpush3.msra.mxu0 %v2803_v22  ;;  %3290 = vmatprep.subr.mxu1 %v3411_v25 }
 0x157   :  { %3283 = vmatprep.subr.mxu0 %v3411_v25  ;;  %3291 = vmatpush3.msra.mxu1 %v2805_v23 }
 0x158   :  { %3292 = vmatprep.mubr.msk.f32.mxu1 %vm3412_vm0, %v3411_v25  ;;  %3284 = vmatpush3.msra.mxu0 %v2802_v24 }
 0x159   :  { %3293 = vmatmul.mubr.msk.f32.vlgmr.msra.gmra.mxu1 %vm573_vm1, %v2184_v26  ;;  %3302 = vmatprep.subr.mxu1 %v3411_v25 }
 0x15a   :  { %3285 = vmatprep.mubr.msk.f32.mxu0 %vm3412_vm0, %v3411_v25  ;;  %3295 = vmatprep.subr.mxu0 %v3411_v25 }
 0x15b   :  { %3303 = vmatpush3.msra.mxu1 %v2812_v27  ;;  %3286 = vmatmul.mubr.msk.f32.vlgmr.msra.gmra.mxu0 %vm573_vm1, %v564_v20 }
 0x15c   :  { %3296 = vmatpush3.msra.mxu0 %v2809_v28  ;;  %3304 = vmatprep.subr.mxu1 %v3411_v25 }
 0x15d   :  { %3297 = vmatprep.subr.mxu0 %v3411_v25  ;;  %3305 = vmatpush3.msra.mxu1 %v2811_v29 }
 0x15e   :  { %3306 = vmatprep.mubr.msk.f32.mxu1 %vm3412_vm0, %v3411_v25  ;;  %3298 = vmatpush3.msra.mxu0 %v2808_v57 }
 0x15f   :  { %3307 = vmatmul.mubr.msk.f32.vlgmr.msra.gmra.mxu1 %vm573_vm1, %v2338_v58  ;;  %3299 = vmatprep.mubr.msk.f32.mxu0 %vm3412_vm0, %v3411_v25 }
 0x160   :  { %3309 = vmatprep.subr.mxu0 %v3411_v25  ;;  %3300 = vmatmul.mubr.msk.f32.vlgmr.msra.gmra.mxu0 %vm573_vm1, %v2261_v59 }
 0x161   :  { %3310 = vmatpush3.msra.mxu0 %v2815_v30  ;;  %3313 = vmatprep.mubr.msk.f32.mxu0 %vm3412_vm0, %v3411_v25 }
 0x162   :  { %3311 = vmatprep.subr.mxu0 %v3411_v25  ;;  %3316 = vmatprep.subr.mxu1 %v3411_v25 }
 0x163   :  { %3312 = vmatpush3.msra.mxu0 %v2814_v32  ;;  %3348 = vmatprep.mubr.msk.f32.mxu1 %vm3412_vm0, %v3411_v25 }
 0x164   :  { %3314 = vmatmul.mubr.msk.f32.vlgmr.msra.gmra.mxu0 %vm573_vm1, %v565_v33  ;;  %3351 = vmatprep.subr.mxu0 %v3411_v25 }
 0x165   :  { %3383 = vmatprep.mubr.msk.f32.mxu0 %vm3412_vm0, %v3411_v25  ;;  %3317 = vmatpush3.msra.mxu1 %v2513_v34 }
 0x166   :  { %3318 = vmatprep.subr.mxu1 %v3411_v25  ;;  %3352 = vmatpush3.msra.mxu0 %v2607_v61 }
 0x167   :  { %3319 = vmatpush3.msra.mxu1 %v2512_v31  ;;  %3353 = vmatprep.subr.mxu0 %v3411_v25 }
 0x168   :  { %3320 = vmatprep.subr.mxu1 %v3411_v25  ;;  %3354 = vmatpush3.msra.mxu0 %v2606_v62 }
 0x169   :  { %3321 = vmatpush3.msra.mxu1 %v2511_v35  ;;  %3355 = vmatprep.subr.mxu0 %v3411_v25 }
 0x16a   :  { %3322 = vmatprep.subr.mxu1 %v3411_v25  ;;  %3356 = vmatpush3.msra.mxu0 %v2605_v54 }
 0x16b   :  { %3323 = vmatpush3.msra.mxu1 %v2510_v36  ;;  %3357 = vmatprep.subr.mxu0 %v3411_v25 }
 0x16c   :  { %3324 = vmatprep.subr.mxu1 %v3411_v25  ;;  %3358 = vmatpush3.msra.mxu0 %v2604_v63 }
 0x16d   :  { %3325 = vmatpush3.msra.mxu1 %v2509_v37  ;;  %3359 = vmatprep.subr.mxu0 %v3411_v25 }
 0x16e   :  { %3326 = vmatprep.subr.mxu1 %v3411_v25  ;;  %3360 = vmatpush3.msra.mxu0 %v2603_v0 }
 0x16f   :  { %3327 = vmatpush3.msra.mxu1 %v2508_v45  ;;  %3361 = vmatprep.subr.mxu0 %v3411_v25 }
 0x170   :  { %3328 = vmatprep.subr.mxu1 %v3411_v25  ;;  %3362 = vmatpush3.msra.mxu0 %v2602_v1 }
 0x171   :  { %3329 = vmatpush3.msra.mxu1 %v2507_v47  ;;  %3363 = vmatprep.subr.mxu0 %v3411_v25 }
 0x172   :  { %3330 = vmatprep.subr.mxu1 %v3411_v25  ;;  %3364 = vmatpush3.msra.mxu0 %v2601_v2 }
 0x173   :  { %3331 = vmatpush3.msra.mxu1 %v2506_v46  ;;  %3365 = vmatprep.subr.mxu0 %v3411_v25 }
 0x174   :  { %3332 = vmatprep.subr.mxu1 %v3411_v25  ;;  %3366 = vmatpush3.msra.mxu0 %v2600_v4 }
 0x175   :  { %3333 = vmatpush3.msra.mxu1 %v2505_v48  ;;  %3367 = vmatprep.subr.mxu0 %v3411_v25 }
 0x176   :  { %3334 = vmatprep.subr.mxu1 %v3411_v25  ;;  %3368 = vmatpush3.msra.mxu0 %v2599_v6 }
 0x177   :  { %3335 = vmatpush3.msra.mxu1 %v2504_v38  ;;  %3369 = vmatprep.subr.mxu0 %v3411_v25 }
 0x178   :  { %3336 = vmatprep.subr.mxu1 %v3411_v25  ;;  %3370 = vmatpush3.msra.mxu0 %v2598_v49 }
 0x179   :  { %3337 = vmatpush3.msra.mxu1 %v2503_v39  ;;  %3371 = vmatprep.subr.mxu0 %v3411_v25 }
 0x17a   :  { %3338 = vmatprep.subr.mxu1 %v3411_v25  ;;  %3372 = vmatpush3.msra.mxu0 %v2597_v51 }
 0x17b   :  { %3339 = vmatpush3.msra.mxu1 %v2502_v40  ;;  %3373 = vmatprep.subr.mxu0 %v3411_v25 }
 0x17c   :  { %3340 = vmatprep.subr.mxu1 %v3411_v25  ;;  %3374 = vmatpush3.msra.mxu0 %v2596_v50 }
 0x17d   :  { %3341 = vmatpush3.msra.mxu1 %v2501_v53  ;;  %3375 = vmatprep.subr.mxu0 %v3411_v25 }
 0x17e   :  { %3342 = vmatprep.subr.mxu1 %v3411_v25  ;;  %3376 = vmatpush3.msra.mxu0 %v2595_v52 }
 0x17f   :  { %3343 = vmatpush3.msra.mxu1 %v2500_v55  ;;  %3377 = vmatprep.subr.mxu0 %v3411_v25 }
 0x180   :  { %3344 = vmatprep.subr.mxu1 %v3411_v25 }
 0x181   :  { %3345 = vmatpush3.msra.mxu1 %v2499_v56 }
 0x182   :  { %3346 = vmatprep.subr.mxu1 %v3411_v25 }
 0x183   :  { %3347 = vmatpush3.msra.mxu1 %v2498_v60 }
 0x1de   :  { %v714_v7 = vpop.f32.mrf.mxu1 }
 0x1e0   :  { %v642_v11 = vpop.f32.mrf.mxu0  ;;  %v3154_v3 = vpop.f32.mrf.mxu1 }
 0x1e1   :  { %v715_v13 = vadd.f32 %v714_v7, %v642_v11 }
 0x1e2   :  { %v3147_v8 = vpop.f32.mrf.mxu0  ;;  %v867_v12 = vpop.f32.mrf.mxu1 }
 0x1e4   :  { %v3168_v14 = vpop.f32.mrf.mxu1 }
 0x1e5   :  { %v790_v15 = vpop.f32.mrf.mxu0 }
 0x1e6   :  { %v794_v16 = vadd.f32 %v790_v15, %v715_v13 }
 0x1e7   :  { %v3161_v5 = vpop.f32.mrf.mxu0 }
 0x1e8   :  { %v871_v9 = vadd.f32 %v867_v12, %v794_v16  ;;  %v2817_v5 = vld [vmem:[%s4442_s4] ss:$0 sm:$0xff] }
 0x1e9   :  { %v1021_v41 = vpop.f32.mrf.mxu1 }
 0x1eb   :  { %v944_v42 = vpop.f32.mrf.mxu0  ;;  %v3182_v43 = vpop.f32.mrf.mxu1 }
 0x1ec   :  { %v948_v44 = vadd.f32 %v944_v42, %v871_v9 }
 0x1ed   :  { %v3175_v17 = vpop.f32.mrf.mxu0 }
 0x1ee   :  { %v1025_v18 = vadd.f32 %v1021_v41, %v948_v44  ;;  %v2594_v44 = vld [vmem:[%s4445_s7 + $0x10] sm:$0xff]  ;;  %v2593_v17 = vld [vmem:[%s4445_s7 + $0x8] sm:$0xff] }
 0x1ef   :  { %v1175_v19 = vpop.f32.mrf.mxu1  ;;  %3378 = vmatpush3.msra.mxu0 %v2594_v44 }
 0x1f0   :  { %3379 = vmatprep.subr.mxu0 %v3411_v25 }
 0x1f1   :  { %v1098_v10 = vpop.f32.mrf.mxu0  ;;  %v3196_v20 = vpop.f32.mrf.mxu1  ;;  %3380 = vmatpush3.msra.mxu0 %v2593_v17 }
 0x1f2   :  { %v1102_v21 = vadd.f32 %v1098_v10, %v1025_v18  ;;  %v2592_v18 = vld [vmem:[%s4445_s7] sm:$0xff]  ;;  %3381 = vmatprep.subr.mxu0 %v3411_v25  ;;  %s3389_s7 = scalar_lea.vmem %s2694_s11, 32 }
 0x1f3   :  { %v3189_v22 = vpop.f32.mrf.mxu0  ;;  %3382 = vmatpush3.msra.mxu0 %v2592_v18  ;;  %p3390_p0 = scmp.ne.s32.totalorder %s2694_s11, %s3389_s7  ;;  %p3395_p2 = scmp.lt.s32.totalorder %s3389_s7, %s3389_s7 }
 0x1f4   :  { %v1179_v23 = vadd.f32 %v1175_v19, %v1102_v21  ;;  %v2818_v19 = vld [vmem:[%s4444_s6] ss:$0 sm:$0xff] }
 0x1f5   :  { %v1329_v24 = vpop.f32.mrf.mxu1  ;;  %p3396_p3 = por %p3395_p2, %p3394_p1 }
 0x1f7   :  { %v1252_v26 = vpop.f32.mrf.mxu0  ;;  %v3210_v27 = vpop.f32.mrf.mxu1  ;;  %p3397_p4 = pnand %p3396_p3, %p3390_p0 }
 0x1f8   :  { %v1256_v28 = vadd.f32 %v1252_v26, %v1179_v23  ;;  %v2819_v23 = vld [vmem:[%s4446_s8] ss:$0 sm:$0xff] }
 0x1f9   :  { %v3203_v29 = vpop.f32.mrf.mxu0 }
 0x1fa   :  { %v1333_v57 = vadd.f32 %v1329_v24, %v1256_v28 }
 0x1fb   :  { %v1483_v58 = vpop.f32.mrf.mxu1 }
 0x1fd   :  { %v1406_v59 = vpop.f32.mrf.mxu0  ;;  %v3224_v30 = vpop.f32.mrf.mxu1 }
 0x1fe   :  { %v1410_v32 = vadd.f32 %v1406_v59, %v1333_v57 }
 0x1ff   :  { %v3217_v33 = vpop.f32.mrf.mxu0 }
 0x200   :  { %v1487_v34 = vadd.f32 %v1483_v58, %v1410_v32 }
 0x201   :  { %v1637_v31 = vpop.f32.mrf.mxu1 }
 0x203   :  { %v1560_v35 = vpop.f32.mrf.mxu0  ;;  %v3238_v36 = vpop.f32.mrf.mxu1 }
 0x204   :  { %v1564_v37 = vadd.f32 %v1560_v35, %v1487_v34 }
 0x205   :  { %v3231_v45 = vpop.f32.mrf.mxu0 }
 0x206   :  { %v1641_v47 = vadd.f32 %v1637_v31, %v1564_v37 }
 0x207   :  { %v1791_v46 = vpop.f32.mrf.mxu1 }
 0x209   :  { %v1714_v48 = vpop.f32.mrf.mxu0  ;;  %v3252_v38 = vpop.f32.mrf.mxu1 }
 0x20a   :  { %v1718_v39 = vadd.f32 %v1714_v48, %v1641_v47 }
 0x20b   :  { %v3245_v40 = vpop.f32.mrf.mxu0 }
 0x20c   :  { %v1795_v53 = vadd.f32 %v1791_v46, %v1718_v39 }
 0x20d   :  { %v1945_v55 = vpop.f32.mrf.mxu1 }
 0x20f   :  { %v1868_v56 = vpop.f32.mrf.mxu0  ;;  %v3266_v60 = vpop.f32.mrf.mxu1 }
 0x210   :  { %v1872_v61 = vadd.f32 %v1868_v56, %v1795_v53 }
 0x211   :  { %v3259_v62 = vpop.f32.mrf.mxu0 }
 0x212   :  { %v1949_v54 = vadd.f32 %v1945_v55, %v1872_v61 }
 0x213   :  { %v2099_v63 = vpop.f32.mrf.mxu1 }
 0x215   :  { %v2022_v0 = vpop.f32.mrf.mxu0  ;;  %v3280_v1 = vpop.f32.mrf.mxu1 }
 0x216   :  { %v2026_v2 = vadd.f32 %v2022_v0, %v1949_v54 }
 0x217   :  { %v3273_v4 = vpop.f32.mrf.mxu0 }
 0x218   :  { %v2103_v6 = vadd.f32 %v2099_v63, %v2026_v2 }
 0x219   :  { %v2253_v49 = vpop.f32.mrf.mxu1 }
 0x21b   :  { %v2176_v51 = vpop.f32.mrf.mxu0  ;;  %v3294_v50 = vpop.f32.mrf.mxu1 }
 0x21c   :  { %v2180_v52 = vadd.f32 %v2176_v51, %v2103_v6 }
 0x21d   :  { %v3287_v7 = vpop.f32.mrf.mxu0 }
 0x21e   :  { %v2257_v11 = vadd.f32 %v2253_v49, %v2180_v52 }
 0x21f   :  { %v2407_v3 = vpop.f32.mrf.mxu1 }
 0x220   :  { %v2330_v8 = vpop.f32.mrf.mxu0 }
 0x221   :  { %v2334_v12 = vadd.f32 %v2330_v8, %v2257_v11  ;;  %v3308_v13 = vpop.f32.mrf.mxu1 }
 0x222   :  { %v3301_v14 = vpop.f32.mrf.mxu0 }
 0x223   :  { %v2411_v15 = vadd.f32 %v2407_v3, %v2334_v12 }
 0x224   :  { %v2484_v16 = vpop.f32.mrf.mxu0 }
 0x225   :  { %v2488_v9 = vadd.f32 %v2484_v16, %v2411_v15 }
 0x226   :  { %v3315_v41 = vpop.f32.mrf.mxu0 }
 0x227   :  { %v2496_v42 = vadd.f32 %v2817_v5, %v2488_v9 }
 0x229   :  { %v2497_v43 = vmax.f32 %v2496_v42, 0.0 }
 0x22b   :  { %3349 = vmatmul.mubr.f32.vlgmr.msra.gmra.mxu1 %v2497_v43 }
 0x2eb   :  { %v2587_v10 = vpop.f32.mrf.mxu1 }
 0x2ec   :  { %v2588_v20 = vadd.f32 %v2818_v19, %v2587_v10 }
 0x2ed   :  { %v3350_v21 = vpop.f32.mrf.mxu1 }
 0x2ee   :  { %v2591_v22 = vmax.f32 %v2588_v20, 0.0 }
 0x2f0   :  { %3384 = vmatmul.mubr.f32.vlgmr.msra.gmra.mxu0 %v2591_v22 }
 0x3b0   :  { %v2681_v24 = vpop.f32.mrf.mxu0 }
 0x3b1   :  { %v2682_v26 = vadd.f32 %v2819_v23, %v2681_v24 }
 0x3b2   :  { %v3385_v25 = vpop.f32.mrf.mxu0 }
 0x3b3   :  { %2686 = vst.msk [vmem:[#allocation2] sm:$0x3] %vm2685_vm2, %v2682_v26 }
 0x3b4   :  { %3400 = shalt.err (!%p3397_p4)
}
 0x3b5   :  { %2696 = dma.vmem_to_hbm [thread:$0]  %s2694_s11, 32, %s4447_s9, [#allocation3]  }
 0x3b6   :  { %3409 = dma.done.wait [#allocation3], 32  }
 0x3b7   :  { %3410 = vsyncadd [#allocation3], 4294967264 }
 0x3b8   :  { %2700 = vsyncpa [#allocation3], 1 }

</bundles_post_ra>
